<compile_context>
chip_gen: v6e
topology: v6e:2x2x1
jax: 0.10.0
libtpu: 0.0.40
codegen_flags: <defaults>
</compile_context>

<pallas_src>
import jax
import jax.numpy as jnp
from jax.experimental import pallas as pl
from jax.experimental.pallas import tpu as pltpu

SEQ_LEN = 5
VOCAB_SIZE = 6
NUM_HIDDEN = 64
NUM_HEADS = 4
HEAD_DIM = NUM_HIDDEN // NUM_HEADS            # 16
L = SEQ_LEN + 2                               # 7 tokens per example
FFN_DIM = 2 * NUM_HIDDEN                      # 128
OUT_DIM = 2 * SEQ_LEN + 1                     # 11
OUT_PAD = 128                                 # lane-dense padded head output
IN_LANES = 16                                 # token one-hot (8) | pos one-hot (8)

# Rows of the packed [8, 128] vector slab.
(V_N1G, V_N1B, V_N2G, V_N2B, V_F1B, V_F2B, V_QDEC, V_FCB) = range(8)


# ---------------------------------------------------------------------------
# Kernel helpers
# ---------------------------------------------------------------------------
def _mm(a, b):
    # Default MXU precision, f32 accumulate.
    return jnp.dot(a, b, preferred_element_type=jnp.float32)


def _layernorm(x, g, b, eps=1e-5):
    mu = jnp.mean(x, axis=-1, keepdims=True)
    var = jnp.mean((x - mu) ** 2, axis=-1, keepdims=True)
    return (x - mu) * jax.lax.rsqrt(var + eps) * g + b


def _attend(q_blocks, k_blocks, v_blocks, bd):
    """Multi-head attention over position blocks.

    q_blocks : list of [tb, 64] (or [1, 64]) query blocks (per-head
               projections folded into the outer projection).
    k_blocks / v_blocks : list of [tb, 64] key / value position blocks.
    bd : [64, 64] block-diagonal head-reduction mask, 1/sqrt(head_dim)
         folded in; scores come out replicated over each head's 16 lanes so
         the softmax never needs a cross-lane op.
    """
    outs = []
    for qi in q_blocks:
        s = [_mm(qi * kj, bd) for kj in k_blocks]         # [tb, 64] each
        m = s[0]
        for sj in s[1:]:
            m = jnp.maximum(m, sj)
        e0 = jnp.exp(s[0] - m)
        den = e0
        acc = e0 * v_blocks[0]
        for sj, vj in zip(s[1:], v_blocks[1:]):
            e = jnp.exp(sj - m)
            den = den + e
            acc = acc + e * vj
        # Deferred normalization: one reciprocal + one multiply per query.
        outs.append(acc * pl.reciprocal(den, approx=True))
    return outs


def _net_kernel(oh_ref, encin_ref, slabb_ref, decin_ref, slabd_ref, vec_ref,
                o_ref):
    tb = o_ref.shape[0]
    D = NUM_HIDDEN

    oh = oh_ref[0]                                        # [L*tb, 16]

    # Row-packed weight slabs (static slices, all free).
    w_eo = slabb_ref[0:D, :]                              # [64, 64]
    w_f2 = slabb_ref[D:D + FFN_DIM, :]                    # [128, 64]
    bd = slabb_ref[D + FFN_DIM:2 * D + FFN_DIM, :]        # [64, 64]
    w_f1 = slabd_ref[0:D, :]                              # [64, 128]
    w_dof = slabd_ref[D:2 * D, :]                         # [64, 128]

    n1_g = vec_ref[V_N1G:V_N1G + 1, :D]
    n1_b = vec_ref[V_N1B:V_N1B + 1, :D]
    n2_g = vec_ref[V_N2G:V_N2G + 1, :D]
    n2_b = vec_ref[V_N2B:V_N2B + 1, :D]
    f1_b = vec_ref[V_F1B:V_F1B + 1, :]                    # [1, 128]
    f2_b = vec_ref[V_F2B:V_F2B + 1, :D]                   # [1, 64]
    qdec = vec_ref[V_QDEC:V_QDEC + 1, :D]                 # [1, 64]
    fc_b = vec_ref[V_FCB:V_FCB + 1, :]                    # [1, 128]

    # Embedding lookup + positional channel + Net.c1 + encoder Q/K/V,
    # all folded into a single [L*tb, 16] x [16, 384] matmul.
    qkv = _mm(oh, encin_ref[...])                         # [L*tb, 384]
    q = qkv[:, 0:D]
    k = qkv[:, 128:128 + D]
    v = qkv[:, 256:256 + D]
    qb = [q[i * tb:(i + 1) * tb, :] for i in range(L)]
    kb = [k[i * tb:(i + 1) * tb, :] for i in range(L)]
    vb = [v[i * tb:(i + 1) * tb, :] for i in range(L)]

    # ---- EncodingLayer: multi-head self-attention --------------------------
    attn = jnp.concatenate(_attend(qb, kb, vb, bd), axis=0)   # [L*tb, 64]
    a = _layernorm(_mm(attn, w_eo), n1_g, n1_b)

    # ---- EncodingLayer: FFN + residual + norm -------------------------------
    f = jnp.maximum(_mm(a, w_f1) + f1_b, 0.0)             # [L*tb, 128]
    f = jnp.maximum(_mm(f, w_f2) + f2_b, 0.0)             # [L*tb, 64]
    xe = _layernorm(a + f, n2_g, n2_b)

    # ---- Decoder cross-attention (pre-folded learned query) + fused head ---
    kv = _mm(xe, decin_ref[...])                          # [L*tb, 256] (K|V)
    kdb = [kv[i * tb:(i + 1) * tb, 0:D] for i in range(L)]
    vdb = [kv[i * tb:(i + 1) * tb, 128:128 + D] for i in range(L)]
    (y,) = _attend([qdec], kdb, vdb, bd)                  # [tb, 64]
    # dec proj_out folded into fc1 on the host -> single matmul, lane-dense.
    o_ref[...] = _mm(y, w_dof) + fc_b


# ---------------------------------------------------------------------------
# Host-side parameter folding / packing
# ---------------------------------------------------------------------------
def _round_up(x, m):
    return (x + m - 1) // m * m


def _fold_mha_qkv(w, hw):
    """Fold per-head [16,16] projections into the outer [64,64] projection."""
    blocks = [hw[h] @ w[h * HEAD_DIM:(h + 1) * HEAD_DIM, :]
              for h in range(NUM_HEADS)]
    return jnp.concatenate(blocks, axis=0)                # effective (out, in)


def _pack_params(p):
    D = NUM_HIDDEN
    f32 = jnp.float32

    enc_q = _fold_mha_qkv(p["enc_wq"], p["enc_hwq"])
    enc_k = _fold_mha_qkv(p["enc_wk"], p["enc_hwk"])
    enc_v = _fold_mha_qkv(p["enc_wv"], p["enc_hwv"])
    dec_q = _fold_mha_qkv(p["dec_wq"], p["dec_hwq"])
    dec_k = _fold_mha_qkv(p["dec_wk"], p["dec_hwk"])
    dec_v = _fold_mha_qkv(p["dec_wv"], p["dec_hwv"])

    # Embedding table + positional channel folded through Net.c1:
    #   h = onehot16 @ T, T[v] = E[v] @ c1_w[:, :64]^T,
    #                     T[8+l] = pos_enc[l]*c1_w[:, 64]^T + c1_b.
    T = jnp.zeros((IN_LANES, D), f32)
    T = T.at[:VOCAB_SIZE].set(p["embedding"] @ p["c1_w"][:, :D].T)
    T = T.at[8:8 + L].set(p["pos_enc"] @ p["c1_w"][:, D:].T + p["c1_b"])

    # Fused (emb + pos + c1) -> encoder Q|K|V; each projection lives in its
    # own 128-lane column so the kernel slices are lane-offset-0.
    w_encin = jnp.zeros((IN_LANES, 3 * 128), f32)
    w_encin = w_encin.at[:, 0:D].set(T @ enc_q.T)
    w_encin = w_encin.at[:, 128:128 + D].set(T @ enc_k.T)
    w_encin = w_encin.at[:, 256:256 + D].set(T @ enc_v.T)

    # Scaled block-diagonal head-reduction mask (1/sqrt(head_dim) folded in).
    head_id = jnp.arange(D) // HEAD_DIM
    bd = (head_id[:, None] == head_id[None, :]).astype(f32)
    bd = bd / jnp.sqrt(jnp.float32(HEAD_DIM))

    # [256, 64]: enc w_o^T | enc FFN c2^T | head mask (row-packed slab).
    slab_b = jnp.concatenate(
        [p["enc_wo"].T, p["enc_c2_w"].T, bd], axis=0).astype(f32)

    # Decoder K | V lane-packed in columns 0 and 128 of one [64, 256] RHS.
    w_decin = jnp.zeros((D, 256), f32)
    w_decin = w_decin.at[:, 0:D].set(dec_k.T)
    w_decin = w_decin.at[:, 128:128 + D].set(dec_v.T)

    # [128, 128]: enc FFN c1^T | (dec proj_out @ fc1) fused head (lane-padded).
    w_dof = jnp.zeros((D, OUT_PAD), f32).at[:, :OUT_DIM].set(
        p["dec_wo"].T @ p["fc1_w"].T)
    slab_d = jnp.concatenate([p["enc_c1_w"].T, w_dof], axis=0).astype(f32)

    # Vector slab (layernorm affine, biases, pre-folded decoder query).
    qdec = (p["q_param"] @ dec_q.T).reshape(-1)           # [64]
    vec = jnp.zeros((8, OUT_PAD), f32)
    vec = vec.at[V_N1G, :D].set(p["enc_n1_g"].reshape(-1))
    vec = vec.at[V_N1B, :D].set(p["enc_n1_b"].reshape(-1))
    vec = vec.at[V_N2G, :D].set(p["enc_n2_g"].reshape(-1))
    vec = vec.at[V_N2B, :D].set(p["enc_n2_b"].reshape(-1))
    vec = vec.at[V_F1B, :FFN_DIM].set(p["enc_c1_b"].reshape(-1))
    vec = vec.at[V_F2B, :D].set(p["enc_c2_b"].reshape(-1))
    vec = vec.at[V_QDEC, :D].set(qdec)
    vec = vec.at[V_FCB, :OUT_DIM].set(p["fc1_b"].reshape(-1))
    return w_encin, slab_b, w_decin, slab_d, vec


# ---------------------------------------------------------------------------
# Pallas wrapper
# ---------------------------------------------------------------------------
def net_forward_pallas(tokens, params, tb=256):
    """tokens: int32 [B, L] in [0, VOCAB_SIZE). Returns float32 [B, OUT_DIM]."""
    B = tokens.shape[0]
    b8 = _round_up(B, 8)
    tb = _round_up(max(1, min(tb, b8)), 8)
    # Keep at least 2 grid steps when the batch allows (v7x has 2 TensorCores
    # and shards "parallel" grid axes across them).
    if tb == b8 and b8 >= 16:
        tb = _round_up((b8 + 1) // 2, 8)
    b_pad = _round_up(B, tb)
    g = b_pad // tb

    # Tiny one-hot input: lanes 0..7 token one-hot, lanes 8..15 position
    # one-hot. Row layout inside a grid block is position-major: l*tb + t.
    tok = jnp.pad(tokens, ((0, b_pad - B), (0, 0)))
    tok_t = tok.reshape(g, tb, L).transpose(0, 2, 1)              # [g, L, tb]
    oh_tok = jax.nn.one_hot(tok_t, 8, dtype=jnp.float32)          # [g, L, tb, 8]
    oh_pos = jax.nn.one_hot(jnp.arange(L), 8, dtype=jnp.float32)  # [L, 8]
    oh_pos = jnp.broadcast_to(oh_pos[None, :, None, :], (g, L, tb, 8))
    oh = jnp.concatenate([oh_tok, oh_pos], axis=-1).reshape(g, L * tb, IN_LANES)

    w_encin, slab_b, w_decin, slab_d, vec = _pack_params(params)

    def const(a):
        return pl.BlockSpec(a.shape, lambda i: (0, 0))

    out = pl.pallas_call(
        _net_kernel,
        out_shape=jax.ShapeDtypeStruct((b_pad, OUT_PAD), jnp.float32),
        grid=(g,),
        in_specs=[
            pl.BlockSpec((1, L * tb, IN_LANES), lambda i: (i, 0, 0)),
            const(w_encin),
            const(slab_b),
            const(w_decin),
            const(slab_d),
            const(vec),
        ],
        out_specs=pl.BlockSpec((tb, OUT_PAD), lambda i: (i, 0)),
        compiler_params=pltpu.CompilerParams(
            dimension_semantics=("parallel",),
            vmem_limit_bytes=48 * 1024 * 1024),
    )(oh, w_encin, slab_b, w_decin, slab_d, vec)
    return out[:B, :OUT_DIM]


# ---------------------------------------------------------------------------
# Pure-JAX reference (mirrors the PyTorch module, unfolded weights)
# ---------------------------------------------------------------------------
def _ref_mha(q, kv, wq, wk, wv, hwq, hwk, hwv, wo):
    Q = q @ wq.T
    K = kv @ wk.T
    V = kv @ wv.T
    outs = []
    for h in range(NUM_HEADS):
        sl = slice(h * HEAD_DIM, (h + 1) * HEAD_DIM)
        Qh = Q[:, sl] @ hwq[h].T
        Kh = K[:, sl] @ hwk[h].T
        Vh = V[:, sl] @ hwv[h].T
        s = (Qh @ Kh.T) / jnp.sqrt(jnp.float32(HEAD_DIM))
        outs.append(jax.nn.softmax(s, axis=-1) @ Vh)
    return jnp.concatenate(outs, axis=-1) @ wo.T


def _ref_layernorm(x, g, b, eps=1e-5):
    mu = jnp.mean(x, axis=-1, keepdims=True)
    var = jnp.mean((x - mu) ** 2, axis=-1, keepdims=True)
    return (x - mu) * jax.lax.rsqrt(var + eps) * g + b


def _ref_forward_one(tok, p):
    emb = p["embedding"][tok]                                    # [L, 64]
    x = jnp.concatenate([emb, p["pos_enc"]], axis=-1)            # [L, 65]
    x = x @ p["c1_w"].T + p["c1_b"]
    x = _ref_mha(x, x, p["enc_wq"], p["enc_wk"], p["enc_wv"],
                 p["enc_hwq"], p["enc_hwk"], p["enc_hwv"], p["enc_wo"])
    x = _ref_layernorm(x, p["enc_n1_g"], p["enc_n1_b"])
    x1 = jnp.maximum(x @ p["enc_c1_w"].T + p["enc_c1_b"], 0.0)
    x1 = jnp.maximum(x1 @ p["enc_c2_w"].T + p["enc_c2_b"], 0.0)
    x = _ref_layernorm(x + x1, p["enc_n2_g"], p["enc_n2_b"])
    y = _ref_mha(p["q_param"], x, p["dec_wq"], p["dec_wk"], p["dec_wv"],
                 p["dec_hwq"], p["dec_hwk"], p["dec_hwv"], p["dec_wo"])
    return (y @ p["fc1_w"].T + p["fc1_b"])[0]


def net_forward_reference(tokens, params):
    return jax.vmap(lambda t: _ref_forward_one(t, params))(tokens)


# ---------------------------------------------------------------------------
# Parameter initialization (PyTorch-equivalent structure)
# ---------------------------------------------------------------------------
def init_params(key):
    keys = iter(jax.random.split(key, 64))

    def nrm(shape, scale=0.1):
        return jax.random.normal(next(keys), shape, jnp.float32) * scale

    p = {}
    p["embedding"] = nrm((VOCAB_SIZE, NUM_HIDDEN))
    p["pos_enc"] = nrm((L, 1))
    # Net.c1 : Conv1d(65, 64, 1) -> weight [64, 65], bias [64]
    p["c1_w"] = nrm((NUM_HIDDEN, NUM_HIDDEN + 1))
    p["c1_b"] = nrm((1, NUM_HIDDEN))
    for pre in ("enc", "dec"):
        p[f"{pre}_wq"] = nrm((NUM_HIDDEN, NUM_HIDDEN))
        p[f"{pre}_wk"] = nrm((NUM_HIDDEN, NUM_HIDDEN))
        p[f"{pre}_wv"] = nrm((NUM_HIDDEN, NUM_HIDDEN))
        p[f"{pre}_hwq"] = nrm((NUM_HEADS, HEAD_DIM, HEAD_DIM))
        p[f"{pre}_hwk"] = nrm((NUM_HEADS, HEAD_DIM, HEAD_DIM))
        p[f"{pre}_hwv"] = nrm((NUM_HEADS, HEAD_DIM, HEAD_DIM))
        p[f"{pre}_wo"] = nrm((NUM_HIDDEN, NUM_HIDDEN))
    p["enc_n1_g"] = jnp.ones((1, NUM_HIDDEN), jnp.float32)
    p["enc_n1_b"] = jnp.zeros((1, NUM_HIDDEN), jnp.float32)
    p["enc_n2_g"] = jnp.ones((1, NUM_HIDDEN), jnp.float32)
    p["enc_n2_b"] = jnp.zeros((1, NUM_HIDDEN), jnp.float32)
    p["enc_c1_w"] = nrm((FFN_DIM, NUM_HIDDEN))
    p["enc_c1_b"] = nrm((1, FFN_DIM))
    p["enc_c2_w"] = nrm((NUM_HIDDEN, FFN_DIM))
    p["enc_c2_b"] = nrm((1, NUM_HIDDEN))
    p["q_param"] = nrm((1, NUM_HIDDEN))
    p["fc1_w"] = nrm((OUT_DIM, NUM_HIDDEN))
    p["fc1_b"] = nrm((1, OUT_DIM))
    return p


if __name__ == "__main__":
    key = jax.random.PRNGKey(0)
    k_tok, k_par = jax.random.split(key)

    B = 2
    tokens = jax.random.randint(k_tok, (B, L), 0, VOCAB_SIZE, dtype=jnp.int32)
    params = init_params(k_par)

    out = jax.block_until_ready(net_forward_pallas(tokens, params))
    assert out.shape == (B, OUT_DIM), out.shape

    ref = jax.block_until_ready(net_forward_reference(tokens, params))
    # Tolerance accounts for default (bf16-truncated) MXU precision and the
    # approx-reciprocal softmax denominator.
    assert jnp.allclose(out, ref, atol=2e-2, rtol=2e-2), (out, ref)

    print("KERNEL_OK")
</pallas_src>

<mosaic_0001>
module attributes {stable_mosaic.version = 11 : i64} {
  func.func @_net_kernel(%arg0: i32, %arg1: memref<1x56x16xf32, #tpu.memory_space<vmem>>, %arg2: memref<16x384xf32, #tpu.memory_space<vmem>>, %arg3: memref<256x64xf32, #tpu.memory_space<vmem>>, %arg4: memref<64x256xf32, #tpu.memory_space<vmem>>, %arg5: memref<128x128xf32, #tpu.memory_space<vmem>>, %arg6: memref<8x128xf32, #tpu.memory_space<vmem>>, %arg7: memref<8x128xf32, #tpu.memory_space<vmem>>) attributes {dimension_semantics = [#tpu.dimension_semantics<parallel>], iteration_bounds = array<i64: 1>, scalar_prefetch = 0 : i64, scratch_operands = 0 : i64, tpu.core_type = #tpu.core_type<tc>, window_params = [{transform_indices = @transform_0, window_bounds = array<i64: 1, 56, 16>}, {pipeline_mode = #tpu.pipeline_mode<synchronous>, transform_indices = @transform_1, window_bounds = array<i64: 16, 384>}, {pipeline_mode = #tpu.pipeline_mode<synchronous>, transform_indices = @transform_2, window_bounds = array<i64: 256, 64>}, {pipeline_mode = #tpu.pipeline_mode<synchronous>, transform_indices = @transform_3, window_bounds = array<i64: 64, 256>}, {pipeline_mode = #tpu.pipeline_mode<synchronous>, transform_indices = @transform_4, window_bounds = array<i64: 128, 128>}, {pipeline_mode = #tpu.pipeline_mode<synchronous>, transform_indices = @transform_5, window_bounds = array<i64: 8, 128>}, {transform_indices = @transform_6, window_bounds = array<i64: 8, 128>}]} {
    %c0 = arith.constant 0 : index
    %c0_0 = arith.constant 0 : index
    %c0_1 = arith.constant 0 : index
    %0 = vector.load %arg1[%c0, %c0_0, %c0_1] : memref<1x56x16xf32, #tpu.memory_space<vmem>>, vector<1x56x16xf32>
    %1 = vector.shape_cast %0 : vector<1x56x16xf32> to vector<56x16xf32>
    %c0_2 = arith.constant 0 : index
    %c0_3 = arith.constant 0 : index
    %2 = vector.load %arg3[%c0_2, %c0_3] : memref<256x64xf32, #tpu.memory_space<vmem>>, vector<64x64xf32>
    %c64 = arith.constant 64 : index
    %c0_4 = arith.constant 0 : index
    %3 = vector.load %arg3[%c64, %c0_4] : memref<256x64xf32, #tpu.memory_space<vmem>>, vector<128x64xf32>
    %c192 = arith.constant 192 : index
    %c0_5 = arith.constant 0 : index
    %4 = vector.load %arg3[%c192, %c0_5] : memref<256x64xf32, #tpu.memory_space<vmem>>, vector<64x64xf32>
    %c0_6 = arith.constant 0 : index
    %c0_7 = arith.constant 0 : index
    %5 = vector.load %arg5[%c0_6, %c0_7] : memref<128x128xf32, #tpu.memory_space<vmem>>, vector<64x128xf32>
    %c64_8 = arith.constant 64 : index
    %c0_9 = arith.constant 0 : index
    %6 = vector.load %arg5[%c64_8, %c0_9] : memref<128x128xf32, #tpu.memory_space<vmem>>, vector<64x128xf32>
    %c0_10 = arith.constant 0 : index
    %c0_11 = arith.constant 0 : index
    %7 = vector.load %arg6[%c0_10, %c0_11] : memref<8x128xf32, #tpu.memory_space<vmem>>, vector<1x64xf32>
    %c1 = arith.constant 1 : index
    %c0_12 = arith.constant 0 : index
    %8 = vector.load %arg6[%c1, %c0_12] : memref<8x128xf32, #tpu.memory_space<vmem>>, vector<1x64xf32>
    %c2 = arith.constant 2 : index
    %c0_13 = arith.constant 0 : index
    %9 = vector.load %arg6[%c2, %c0_13] : memref<8x128xf32, #tpu.memory_space<vmem>>, vector<1x64xf32>
    %c3 = arith.constant 3 : index
    %c0_14 = arith.constant 0 : index
    %10 = vector.load %arg6[%c3, %c0_14] : memref<8x128xf32, #tpu.memory_space<vmem>>, vector<1x64xf32>
    %c4 = arith.constant 4 : index
    %c0_15 = arith.constant 0 : index
    %11 = vector.load %arg6[%c4, %c0_15] : memref<8x128xf32, #tpu.memory_space<vmem>>, vector<1x128xf32>
    %c5 = arith.constant 5 : index
    %c0_16 = arith.constant 0 : index
    %12 = vector.load %arg6[%c5, %c0_16] : memref<8x128xf32, #tpu.memory_space<vmem>>, vector<1x64xf32>
    %c6 = arith.constant 6 : index
    %c0_17 = arith.constant 0 : index
    %13 = vector.load %arg6[%c6, %c0_17] : memref<8x128xf32, #tpu.memory_space<vmem>>, vector<1x64xf32>
    %c7 = arith.constant 7 : index
    %c0_18 = arith.constant 0 : index
    %14 = vector.load %arg6[%c7, %c0_18] : memref<8x128xf32, #tpu.memory_space<vmem>>, vector<1x128xf32>
    %c0_19 = arith.constant 0 : index
    %c0_20 = arith.constant 0 : index
    %15 = vector.load %arg2[%c0_19, %c0_20] : memref<16x384xf32, #tpu.memory_space<vmem>>, vector<16x384xf32>
    %cst = arith.constant dense<0.000000e+00> : vector<56x384xf32>
    %16 = tpu.matmul %1, %15, %cst {dimension_numbers = #tpu.dot_dimension_numbers<[1], [0], [0], [1], [0, 0, 1, 1], [], []>} : vector<56x16xf32>, vector<16x384xf32>, vector<56x384xf32> -> vector<56x384xf32>
    %17 = vector.extract_strided_slice %16 {offsets = [0, 0], sizes = [56, 64], strides = [1, 1]} : vector<56x384xf32> to vector<56x64xf32>
    %18 = vector.extract_strided_slice %16 {offsets = [0, 128], sizes = [56, 64], strides = [1, 1]} : vector<56x384xf32> to vector<56x64xf32>
    %19 = vector.extract_strided_slice %16 {offsets = [0, 256], sizes = [56, 64], strides = [1, 1]} : vector<56x384xf32> to vector<56x64xf32>
    %20 = vector.extract_strided_slice %17 {offsets = [0, 0], sizes = [8, 64], strides = [1, 1]} : vector<56x64xf32> to vector<8x64xf32>
    %21 = vector.extract_strided_slice %17 {offsets = [8, 0], sizes = [8, 64], strides = [1, 1]} : vector<56x64xf32> to vector<8x64xf32>
    %22 = vector.extract_strided_slice %17 {offsets = [16, 0], sizes = [8, 64], strides = [1, 1]} : vector<56x64xf32> to vector<8x64xf32>
    %23 = vector.extract_strided_slice %17 {offsets = [24, 0], sizes = [8, 64], strides = [1, 1]} : vector<56x64xf32> to vector<8x64xf32>
    %24 = vector.extract_strided_slice %17 {offsets = [32, 0], sizes = [8, 64], strides = [1, 1]} : vector<56x64xf32> to vector<8x64xf32>
    %25 = vector.extract_strided_slice %17 {offsets = [40, 0], sizes = [8, 64], strides = [1, 1]} : vector<56x64xf32> to vector<8x64xf32>
    %26 = vector.extract_strided_slice %17 {offsets = [48, 0], sizes = [8, 64], strides = [1, 1]} : vector<56x64xf32> to vector<8x64xf32>
    %27 = vector.extract_strided_slice %18 {offsets = [0, 0], sizes = [8, 64], strides = [1, 1]} : vector<56x64xf32> to vector<8x64xf32>
    %28 = vector.extract_strided_slice %18 {offsets = [8, 0], sizes = [8, 64], strides = [1, 1]} : vector<56x64xf32> to vector<8x64xf32>
    %29 = vector.extract_strided_slice %18 {offsets = [16, 0], sizes = [8, 64], strides = [1, 1]} : vector<56x64xf32> to vector<8x64xf32>
    %30 = vector.extract_strided_slice %18 {offsets = [24, 0], sizes = [8, 64], strides = [1, 1]} : vector<56x64xf32> to vector<8x64xf32>
    %31 = vector.extract_strided_slice %18 {offsets = [32, 0], sizes = [8, 64], strides = [1, 1]} : vector<56x64xf32> to vector<8x64xf32>
    %32 = vector.extract_strided_slice %18 {offsets = [40, 0], sizes = [8, 64], strides = [1, 1]} : vector<56x64xf32> to vector<8x64xf32>
    %33 = vector.extract_strided_slice %18 {offsets = [48, 0], sizes = [8, 64], strides = [1, 1]} : vector<56x64xf32> to vector<8x64xf32>
    %34 = vector.extract_strided_slice %19 {offsets = [0, 0], sizes = [8, 64], strides = [1, 1]} : vector<56x64xf32> to vector<8x64xf32>
    %35 = vector.extract_strided_slice %19 {offsets = [8, 0], sizes = [8, 64], strides = [1, 1]} : vector<56x64xf32> to vector<8x64xf32>
    %36 = vector.extract_strided_slice %19 {offsets = [16, 0], sizes = [8, 64], strides = [1, 1]} : vector<56x64xf32> to vector<8x64xf32>
    %37 = vector.extract_strided_slice %19 {offsets = [24, 0], sizes = [8, 64], strides = [1, 1]} : vector<56x64xf32> to vector<8x64xf32>
    %38 = vector.extract_strided_slice %19 {offsets = [32, 0], sizes = [8, 64], strides = [1, 1]} : vector<56x64xf32> to vector<8x64xf32>
    %39 = vector.extract_strided_slice %19 {offsets = [40, 0], sizes = [8, 64], strides = [1, 1]} : vector<56x64xf32> to vector<8x64xf32>
    %40 = vector.extract_strided_slice %19 {offsets = [48, 0], sizes = [8, 64], strides = [1, 1]} : vector<56x64xf32> to vector<8x64xf32>
    %41 = arith.mulf %20, %27 : vector<8x64xf32>
    %cst_21 = arith.constant dense<0.000000e+00> : vector<8x64xf32>
    %42 = tpu.matmul %41, %4, %cst_21 {dimension_numbers = #tpu.dot_dimension_numbers<[1], [0], [0], [1], [0, 0, 1, 1], [], []>} : vector<8x64xf32>, vector<64x64xf32>, vector<8x64xf32> -> vector<8x64xf32>
    %43 = arith.mulf %20, %28 : vector<8x64xf32>
    %cst_22 = arith.constant dense<0.000000e+00> : vector<8x64xf32>
    %44 = tpu.matmul %43, %4, %cst_22 {dimension_numbers = #tpu.dot_dimension_numbers<[1], [0], [0], [1], [0, 0, 1, 1], [], []>} : vector<8x64xf32>, vector<64x64xf32>, vector<8x64xf32> -> vector<8x64xf32>
    %45 = arith.mulf %20, %29 : vector<8x64xf32>
    %cst_23 = arith.constant dense<0.000000e+00> : vector<8x64xf32>
    %46 = tpu.matmul %45, %4, %cst_23 {dimension_numbers = #tpu.dot_dimension_numbers<[1], [0], [0], [1], [0, 0, 1, 1], [], []>} : vector<8x64xf32>, vector<64x64xf32>, vector<8x64xf32> -> vector<8x64xf32>
    %47 = arith.mulf %20, %30 : vector<8x64xf32>
    %cst_24 = arith.constant dense<0.000000e+00> : vector<8x64xf32>
    %48 = tpu.matmul %47, %4, %cst_24 {dimension_numbers = #tpu.dot_dimension_numbers<[1], [0], [0], [1], [0, 0, 1, 1], [], []>} : vector<8x64xf32>, vector<64x64xf32>, vector<8x64xf32> -> vector<8x64xf32>
    %49 = arith.mulf %20, %31 : vector<8x64xf32>
    %cst_25 = arith.constant dense<0.000000e+00> : vector<8x64xf32>
    %50 = tpu.matmul %49, %4, %cst_25 {dimension_numbers = #tpu.dot_dimension_numbers<[1], [0], [0], [1], [0, 0, 1, 1], [], []>} : vector<8x64xf32>, vector<64x64xf32>, vector<8x64xf32> -> vector<8x64xf32>
    %51 = arith.mulf %20, %32 : vector<8x64xf32>
    %cst_26 = arith.constant dense<0.000000e+00> : vector<8x64xf32>
    %52 = tpu.matmul %51, %4, %cst_26 {dimension_numbers = #tpu.dot_dimension_numbers<[1], [0], [0], [1], [0, 0, 1, 1], [], []>} : vector<8x64xf32>, vector<64x64xf32>, vector<8x64xf32> -> vector<8x64xf32>
    %53 = arith.mulf %20, %33 : vector<8x64xf32>
    %cst_27 = arith.constant dense<0.000000e+00> : vector<8x64xf32>
    %54 = tpu.matmul %53, %4, %cst_27 {dimension_numbers = #tpu.dot_dimension_numbers<[1], [0], [0], [1], [0, 0, 1, 1], [], []>} : vector<8x64xf32>, vector<64x64xf32>, vector<8x64xf32> -> vector<8x64xf32>
    %55 = arith.maximumf %42, %44 : vector<8x64xf32>
    %56 = arith.maximumf %55, %46 : vector<8x64xf32>
    %57 = arith.maximumf %56, %48 : vector<8x64xf32>
    %58 = arith.maximumf %57, %50 : vector<8x64xf32>
    %59 = arith.maximumf %58, %52 : vector<8x64xf32>
    %60 = arith.maximumf %59, %54 : vector<8x64xf32>
    %61 = arith.subf %42, %60 : vector<8x64xf32>
    %62 = math.exp %61 : vector<8x64xf32>
    %63 = arith.mulf %62, %34 : vector<8x64xf32>
    %64 = arith.subf %44, %60 : vector<8x64xf32>
    %65 = math.exp %64 : vector<8x64xf32>
    %66 = arith.addf %62, %65 : vector<8x64xf32>
    %67 = arith.mulf %65, %35 : vector<8x64xf32>
    %68 = arith.addf %63, %67 : vector<8x64xf32>
    %69 = arith.subf %46, %60 : vector<8x64xf32>
    %70 = math.exp %69 : vector<8x64xf32>
    %71 = arith.addf %66, %70 : vector<8x64xf32>
    %72 = arith.mulf %70, %36 : vector<8x64xf32>
    %73 = arith.addf %68, %72 : vector<8x64xf32>
    %74 = arith.subf %48, %60 : vector<8x64xf32>
    %75 = math.exp %74 : vector<8x64xf32>
    %76 = arith.addf %71, %75 : vector<8x64xf32>
    %77 = arith.mulf %75, %37 : vector<8x64xf32>
    %78 = arith.addf %73, %77 : vector<8x64xf32>
    %79 = arith.subf %50, %60 : vector<8x64xf32>
    %80 = math.exp %79 : vector<8x64xf32>
    %81 = arith.addf %76, %80 : vector<8x64xf32>
    %82 = arith.mulf %80, %38 : vector<8x64xf32>
    %83 = arith.addf %78, %82 : vector<8x64xf32>
    %84 = arith.subf %52, %60 : vector<8x64xf32>
    %85 = math.exp %84 : vector<8x64xf32>
    %86 = arith.addf %81, %85 : vector<8x64xf32>
    %87 = arith.mulf %85, %39 : vector<8x64xf32>
    %88 = arith.addf %83, %87 : vector<8x64xf32>
    %89 = arith.subf %54, %60 : vector<8x64xf32>
    %90 = math.exp %89 : vector<8x64xf32>
    %91 = arith.addf %86, %90 : vector<8x64xf32>
    %92 = arith.mulf %90, %40 : vector<8x64xf32>
    %93 = arith.addf %88, %92 : vector<8x64xf32>
    %94 = tpu.reciprocal %91 {approx = true} : vector<8x64xf32> -> vector<8x64xf32>
    %95 = arith.mulf %93, %94 : vector<8x64xf32>
    %96 = arith.mulf %21, %27 : vector<8x64xf32>
    %cst_28 = arith.constant dense<0.000000e+00> : vector<8x64xf32>
    %97 = tpu.matmul %96, %4, %cst_28 {dimension_numbers = #tpu.dot_dimension_numbers<[1], [0], [0], [1], [0, 0, 1, 1], [], []>} : vector<8x64xf32>, vector<64x64xf32>, vector<8x64xf32> -> vector<8x64xf32>
    %98 = arith.mulf %21, %28 : vector<8x64xf32>
    %cst_29 = arith.constant dense<0.000000e+00> : vector<8x64xf32>
    %99 = tpu.matmul %98, %4, %cst_29 {dimension_numbers = #tpu.dot_dimension_numbers<[1], [0], [0], [1], [0, 0, 1, 1], [], []>} : vector<8x64xf32>, vector<64x64xf32>, vector<8x64xf32> -> vector<8x64xf32>
    %100 = arith.mulf %21, %29 : vector<8x64xf32>
    %cst_30 = arith.constant dense<0.000000e+00> : vector<8x64xf32>
    %101 = tpu.matmul %100, %4, %cst_30 {dimension_numbers = #tpu.dot_dimension_numbers<[1], [0], [0], [1], [0, 0, 1, 1], [], []>} : vector<8x64xf32>, vector<64x64xf32>, vector<8x64xf32> -> vector<8x64xf32>
    %102 = arith.mulf %21, %30 : vector<8x64xf32>
    %cst_31 = arith.constant dense<0.000000e+00> : vector<8x64xf32>
    %103 = tpu.matmul %102, %4, %cst_31 {dimension_numbers = #tpu.dot_dimension_numbers<[1], [0], [0], [1], [0, 0, 1, 1], [], []>} : vector<8x64xf32>, vector<64x64xf32>, vector<8x64xf32> -> vector<8x64xf32>
    %104 = arith.mulf %21, %31 : vector<8x64xf32>
    %cst_32 = arith.constant dense<0.000000e+00> : vector<8x64xf32>
    %105 = tpu.matmul %104, %4, %cst_32 {dimension_numbers = #tpu.dot_dimension_numbers<[1], [0], [0], [1], [0, 0, 1, 1], [], []>} : vector<8x64xf32>, vector<64x64xf32>, vector<8x64xf32> -> vector<8x64xf32>
    %106 = arith.mulf %21, %32 : vector<8x64xf32>
    %cst_33 = arith.constant dense<0.000000e+00> : vector<8x64xf32>
    %107 = tpu.matmul %106, %4, %cst_33 {dimension_numbers = #tpu.dot_dimension_numbers<[1], [0], [0], [1], [0, 0, 1, 1], [], []>} : vector<8x64xf32>, vector<64x64xf32>, vector<8x64xf32> -> vector<8x64xf32>
    %108 = arith.mulf %21, %33 : vector<8x64xf32>
    %cst_34 = arith.constant dense<0.000000e+00> : vector<8x64xf32>
    %109 = tpu.matmul %108, %4, %cst_34 {dimension_numbers = #tpu.dot_dimension_numbers<[1], [0], [0], [1], [0, 0, 1, 1], [], []>} : vector<8x64xf32>, vector<64x64xf32>, vector<8x64xf32> -> vector<8x64xf32>
    %110 = arith.maximumf %97, %99 : vector<8x64xf32>
    %111 = arith.maximumf %110, %101 : vector<8x64xf32>
    %112 = arith.maximumf %111, %103 : vector<8x64xf32>
    %113 = arith.maximumf %112, %105 : vector<8x64xf32>
    %114 = arith.maximumf %113, %107 : vector<8x64xf32>
    %115 = arith.maximumf %114, %109 : vector<8x64xf32>
    %116 = arith.subf %97, %115 : vector<8x64xf32>
    %117 = math.exp %116 : vector<8x64xf32>
    %118 = arith.mulf %117, %34 : vector<8x64xf32>
    %119 = arith.subf %99, %115 : vector<8x64xf32>
    %120 = math.exp %119 : vector<8x64xf32>
    %121 = arith.addf %117, %120 : vector<8x64xf32>
    %122 = arith.mulf %120, %35 : vector<8x64xf32>
    %123 = arith.addf %118, %122 : vector<8x64xf32>
    %124 = arith.subf %101, %115 : vector<8x64xf32>
    %125 = math.exp %124 : vector<8x64xf32>
    %126 = arith.addf %121, %125 : vector<8x64xf32>
    %127 = arith.mulf %125, %36 : vector<8x64xf32>
    %128 = arith.addf %123, %127 : vector<8x64xf32>
    %129 = arith.subf %103, %115 : vector<8x64xf32>
    %130 = math.exp %129 : vector<8x64xf32>
    %131 = arith.addf %126, %130 : vector<8x64xf32>
    %132 = arith.mulf %130, %37 : vector<8x64xf32>
    %133 = arith.addf %128, %132 : vector<8x64xf32>
    %134 = arith.subf %105, %115 : vector<8x64xf32>
    %135 = math.exp %134 : vector<8x64xf32>
    %136 = arith.addf %131, %135 : vector<8x64xf32>
    %137 = arith.mulf %135, %38 : vector<8x64xf32>
    %138 = arith.addf %133, %137 : vector<8x64xf32>
    %139 = arith.subf %107, %115 : vector<8x64xf32>
    %140 = math.exp %139 : vector<8x64xf32>
    %141 = arith.addf %136, %140 : vector<8x64xf32>
    %142 = arith.mulf %140, %39 : vector<8x64xf32>
    %143 = arith.addf %138, %142 : vector<8x64xf32>
    %144 = arith.subf %109, %115 : vector<8x64xf32>
    %145 = math.exp %144 : vector<8x64xf32>
    %146 = arith.addf %141, %145 : vector<8x64xf32>
    %147 = arith.mulf %145, %40 : vector<8x64xf32>
    %148 = arith.addf %143, %147 : vector<8x64xf32>
    %149 = tpu.reciprocal %146 {approx = true} : vector<8x64xf32> -> vector<8x64xf32>
    %150 = arith.mulf %148, %149 : vector<8x64xf32>
    %151 = arith.mulf %22, %27 : vector<8x64xf32>
    %cst_35 = arith.constant dense<0.000000e+00> : vector<8x64xf32>
    %152 = tpu.matmul %151, %4, %cst_35 {dimension_numbers = #tpu.dot_dimension_numbers<[1], [0], [0], [1], [0, 0, 1, 1], [], []>} : vector<8x64xf32>, vector<64x64xf32>, vector<8x64xf32> -> vector<8x64xf32>
    %153 = arith.mulf %22, %28 : vector<8x64xf32>
    %cst_36 = arith.constant dense<0.000000e+00> : vector<8x64xf32>
    %154 = tpu.matmul %153, %4, %cst_36 {dimension_numbers = #tpu.dot_dimension_numbers<[1], [0], [0], [1], [0, 0, 1, 1], [], []>} : vector<8x64xf32>, vector<64x64xf32>, vector<8x64xf32> -> vector<8x64xf32>
    %155 = arith.mulf %22, %29 : vector<8x64xf32>
    %cst_37 = arith.constant dense<0.000000e+00> : vector<8x64xf32>
    %156 = tpu.matmul %155, %4, %cst_37 {dimension_numbers = #tpu.dot_dimension_numbers<[1], [0], [0], [1], [0, 0, 1, 1], [], []>} : vector<8x64xf32>, vector<64x64xf32>, vector<8x64xf32> -> vector<8x64xf32>
    %157 = arith.mulf %22, %30 : vector<8x64xf32>
    %cst_38 = arith.constant dense<0.000000e+00> : vector<8x64xf32>
    %158 = tpu.matmul %157, %4, %cst_38 {dimension_numbers = #tpu.dot_dimension_numbers<[1], [0], [0], [1], [0, 0, 1, 1], [], []>} : vector<8x64xf32>, vector<64x64xf32>, vector<8x64xf32> -> vector<8x64xf32>
    %159 = arith.mulf %22, %31 : vector<8x64xf32>
    %cst_39 = arith.constant dense<0.000000e+00> : vector<8x64xf32>
    %160 = tpu.matmul %159, %4, %cst_39 {dimension_numbers = #tpu.dot_dimension_numbers<[1], [0], [0], [1], [0, 0, 1, 1], [], []>} : vector<8x64xf32>, vector<64x64xf32>, vector<8x64xf32> -> vector<8x64xf32>
    %161 = arith.mulf %22, %32 : vector<8x64xf32>
    %cst_40 = arith.constant dense<0.000000e+00> : vector<8x64xf32>
    %162 = tpu.matmul %161, %4, %cst_40 {dimension_numbers = #tpu.dot_dimension_numbers<[1], [0], [0], [1], [0, 0, 1, 1], [], []>} : vector<8x64xf32>, vector<64x64xf32>, vector<8x64xf32> -> vector<8x64xf32>
    %163 = arith.mulf %22, %33 : vector<8x64xf32>
    %cst_41 = arith.constant dense<0.000000e+00> : vector<8x64xf32>
    %164 = tpu.matmul %163, %4, %cst_41 {dimension_numbers = #tpu.dot_dimension_numbers<[1], [0], [0], [1], [0, 0, 1, 1], [], []>} : vector<8x64xf32>, vector<64x64xf32>, vector<8x64xf32> -> vector<8x64xf32>
    %165 = arith.maximumf %152, %154 : vector<8x64xf32>
    %166 = arith.maximumf %165, %156 : vector<8x64xf32>
    %167 = arith.maximumf %166, %158 : vector<8x64xf32>
    %168 = arith.maximumf %167, %160 : vector<8x64xf32>
    %169 = arith.maximumf %168, %162 : vector<8x64xf32>
    %170 = arith.maximumf %169, %164 : vector<8x64xf32>
    %171 = arith.subf %152, %170 : vector<8x64xf32>
    %172 = math.exp %171 : vector<8x64xf32>
    %173 = arith.mulf %172, %34 : vector<8x64xf32>
    %174 = arith.subf %154, %170 : vector<8x64xf32>
    %175 = math.exp %174 : vector<8x64xf32>
    %176 = arith.addf %172, %175 : vector<8x64xf32>
    %177 = arith.mulf %175, %35 : vector<8x64xf32>
    %178 = arith.addf %173, %177 : vector<8x64xf32>
    %179 = arith.subf %156, %170 : vector<8x64xf32>
    %180 = math.exp %179 : vector<8x64xf32>
    %181 = arith.addf %176, %180 : vector<8x64xf32>
    %182 = arith.mulf %180, %36 : vector<8x64xf32>
    %183 = arith.addf %178, %182 : vector<8x64xf32>
    %184 = arith.subf %158, %170 : vector<8x64xf32>
    %185 = math.exp %184 : vector<8x64xf32>
    %186 = arith.addf %181, %185 : vector<8x64xf32>
    %187 = arith.mulf %185, %37 : vector<8x64xf32>
    %188 = arith.addf %183, %187 : vector<8x64xf32>
    %189 = arith.subf %160, %170 : vector<8x64xf32>
    %190 = math.exp %189 : vector<8x64xf32>
    %191 = arith.addf %186, %190 : vector<8x64xf32>
    %192 = arith.mulf %190, %38 : vector<8x64xf32>
    %193 = arith.addf %188, %192 : vector<8x64xf32>
    %194 = arith.subf %162, %170 : vector<8x64xf32>
    %195 = math.exp %194 : vector<8x64xf32>
    %196 = arith.addf %191, %195 : vector<8x64xf32>
    %197 = arith.mulf %195, %39 : vector<8x64xf32>
    %198 = arith.addf %193, %197 : vector<8x64xf32>
    %199 = arith.subf %164, %170 : vector<8x64xf32>
    %200 = math.exp %199 : vector<8x64xf32>
    %201 = arith.addf %196, %200 : vector<8x64xf32>
    %202 = arith.mulf %200, %40 : vector<8x64xf32>
    %203 = arith.addf %198, %202 : vector<8x64xf32>
    %204 = tpu.reciprocal %201 {approx = true} : vector<8x64xf32> -> vector<8x64xf32>
    %205 = arith.mulf %203, %204 : vector<8x64xf32>
    %206 = arith.mulf %23, %27 : vector<8x64xf32>
    %cst_42 = arith.constant dense<0.000000e+00> : vector<8x64xf32>
    %207 = tpu.matmul %206, %4, %cst_42 {dimension_numbers = #tpu.dot_dimension_numbers<[1], [0], [0], [1], [0, 0, 1, 1], [], []>} : vector<8x64xf32>, vector<64x64xf32>, vector<8x64xf32> -> vector<8x64xf32>
    %208 = arith.mulf %23, %28 : vector<8x64xf32>
    %cst_43 = arith.constant dense<0.000000e+00> : vector<8x64xf32>
    %209 = tpu.matmul %208, %4, %cst_43 {dimension_numbers = #tpu.dot_dimension_numbers<[1], [0], [0], [1], [0, 0, 1, 1], [], []>} : vector<8x64xf32>, vector<64x64xf32>, vector<8x64xf32> -> vector<8x64xf32>
    %210 = arith.mulf %23, %29 : vector<8x64xf32>
    %cst_44 = arith.constant dense<0.000000e+00> : vector<8x64xf32>
    %211 = tpu.matmul %210, %4, %cst_44 {dimension_numbers = #tpu.dot_dimension_numbers<[1], [0], [0], [1], [0, 0, 1, 1], [], []>} : vector<8x64xf32>, vector<64x64xf32>, vector<8x64xf32> -> vector<8x64xf32>
    %212 = arith.mulf %23, %30 : vector<8x64xf32>
    %cst_45 = arith.constant dense<0.000000e+00> : vector<8x64xf32>
    %213 = tpu.matmul %212, %4, %cst_45 {dimension_numbers = #tpu.dot_dimension_numbers<[1], [0], [0], [1], [0, 0, 1, 1], [], []>} : vector<8x64xf32>, vector<64x64xf32>, vector<8x64xf32> -> vector<8x64xf32>
    %214 = arith.mulf %23, %31 : vector<8x64xf32>
    %cst_46 = arith.constant dense<0.000000e+00> : vector<8x64xf32>
    %215 = tpu.matmul %214, %4, %cst_46 {dimension_numbers = #tpu.dot_dimension_numbers<[1], [0], [0], [1], [0, 0, 1, 1], [], []>} : vector<8x64xf32>, vector<64x64xf32>, vector<8x64xf32> -> vector<8x64xf32>
    %216 = arith.mulf %23, %32 : vector<8x64xf32>
    %cst_47 = arith.constant dense<0.000000e+00> : vector<8x64xf32>
    %217 = tpu.matmul %216, %4, %cst_47 {dimension_numbers = #tpu.dot_dimension_numbers<[1], [0], [0], [1], [0, 0, 1, 1], [], []>} : vector<8x64xf32>, vector<64x64xf32>, vector<8x64xf32> -> vector<8x64xf32>
    %218 = arith.mulf %23, %33 : vector<8x64xf32>
    %cst_48 = arith.constant dense<0.000000e+00> : vector<8x64xf32>
    %219 = tpu.matmul %218, %4, %cst_48 {dimension_numbers = #tpu.dot_dimension_numbers<[1], [0], [0], [1], [0, 0, 1, 1], [], []>} : vector<8x64xf32>, vector<64x64xf32>, vector<8x64xf32> -> vector<8x64xf32>
    %220 = arith.maximumf %207, %209 : vector<8x64xf32>
    %221 = arith.maximumf %220, %211 : vector<8x64xf32>
    %222 = arith.maximumf %221, %213 : vector<8x64xf32>
    %223 = arith.maximumf %222, %215 : vector<8x64xf32>
    %224 = arith.maximumf %223, %217 : vector<8x64xf32>
    %225 = arith.maximumf %224, %219 : vector<8x64xf32>
    %226 = arith.subf %207, %225 : vector<8x64xf32>
    %227 = math.exp %226 : vector<8x64xf32>
    %228 = arith.mulf %227, %34 : vector<8x64xf32>
    %229 = arith.subf %209, %225 : vector<8x64xf32>
    %230 = math.exp %229 : vector<8x64xf32>
    %231 = arith.addf %227, %230 : vector<8x64xf32>
    %232 = arith.mulf %230, %35 : vector<8x64xf32>
    %233 = arith.addf %228, %232 : vector<8x64xf32>
    %234 = arith.subf %211, %225 : vector<8x64xf32>
    %235 = math.exp %234 : vector<8x64xf32>
    %236 = arith.addf %231, %235 : vector<8x64xf32>
    %237 = arith.mulf %235, %36 : vector<8x64xf32>
    %238 = arith.addf %233, %237 : vector<8x64xf32>
    %239 = arith.subf %213, %225 : vector<8x64xf32>
    %240 = math.exp %239 : vector<8x64xf32>
    %241 = arith.addf %236, %240 : vector<8x64xf32>
    %242 = arith.mulf %240, %37 : vector<8x64xf32>
    %243 = arith.addf %238, %242 : vector<8x64xf32>
    %244 = arith.subf %215, %225 : vector<8x64xf32>
    %245 = math.exp %244 : vector<8x64xf32>
    %246 = arith.addf %241, %245 : vector<8x64xf32>
    %247 = arith.mulf %245, %38 : vector<8x64xf32>
    %248 = arith.addf %243, %247 : vector<8x64xf32>
    %249 = arith.subf %217, %225 : vector<8x64xf32>
    %250 = math.exp %249 : vector<8x64xf32>
    %251 = arith.addf %246, %250 : vector<8x64xf32>
    %252 = arith.mulf %250, %39 : vector<8x64xf32>
    %253 = arith.addf %248, %252 : vector<8x64xf32>
    %254 = arith.subf %219, %225 : vector<8x64xf32>
    %255 = math.exp %254 : vector<8x64xf32>
    %256 = arith.addf %251, %255 : vector<8x64xf32>
    %257 = arith.mulf %255, %40 : vector<8x64xf32>
    %258 = arith.addf %253, %257 : vector<8x64xf32>
    %259 = tpu.reciprocal %256 {approx = true} : vector<8x64xf32> -> vector<8x64xf32>
    %260 = arith.mulf %258, %259 : vector<8x64xf32>
    %261 = arith.mulf %24, %27 : vector<8x64xf32>
    %cst_49 = arith.constant dense<0.000000e+00> : vector<8x64xf32>
    %262 = tpu.matmul %261, %4, %cst_49 {dimension_numbers = #tpu.dot_dimension_numbers<[1], [0], [0], [1], [0, 0, 1, 1], [], []>} : vector<8x64xf32>, vector<64x64xf32>, vector<8x64xf32> -> vector<8x64xf32>
    %263 = arith.mulf %24, %28 : vector<8x64xf32>
    %cst_50 = arith.constant dense<0.000000e+00> : vector<8x64xf32>
    %264 = tpu.matmul %263, %4, %cst_50 {dimension_numbers = #tpu.dot_dimension_numbers<[1], [0], [0], [1], [0, 0, 1, 1], [], []>} : vector<8x64xf32>, vector<64x64xf32>, vector<8x64xf32> -> vector<8x64xf32>
    %265 = arith.mulf %24, %29 : vector<8x64xf32>
    %cst_51 = arith.constant dense<0.000000e+00> : vector<8x64xf32>
    %266 = tpu.matmul %265, %4, %cst_51 {dimension_numbers = #tpu.dot_dimension_numbers<[1], [0], [0], [1], [0, 0, 1, 1], [], []>} : vector<8x64xf32>, vector<64x64xf32>, vector<8x64xf32> -> vector<8x64xf32>
    %267 = arith.mulf %24, %30 : vector<8x64xf32>
    %cst_52 = arith.constant dense<0.000000e+00> : vector<8x64xf32>
    %268 = tpu.matmul %267, %4, %cst_52 {dimension_numbers = #tpu.dot_dimension_numbers<[1], [0], [0], [1], [0, 0, 1, 1], [], []>} : vector<8x64xf32>, vector<64x64xf32>, vector<8x64xf32> -> vector<8x64xf32>
    %269 = arith.mulf %24, %31 : vector<8x64xf32>
    %cst_53 = arith.constant dense<0.000000e+00> : vector<8x64xf32>
    %270 = tpu.matmul %269, %4, %cst_53 {dimension_numbers = #tpu.dot_dimension_numbers<[1], [0], [0], [1], [0, 0, 1, 1], [], []>} : vector<8x64xf32>, vector<64x64xf32>, vector<8x64xf32> -> vector<8x64xf32>
    %271 = arith.mulf %24, %32 : vector<8x64xf32>
    %cst_54 = arith.constant dense<0.000000e+00> : vector<8x64xf32>
    %272 = tpu.matmul %271, %4, %cst_54 {dimension_numbers = #tpu.dot_dimension_numbers<[1], [0], [0], [1], [0, 0, 1, 1], [], []>} : vector<8x64xf32>, vector<64x64xf32>, vector<8x64xf32> -> vector<8x64xf32>
    %273 = arith.mulf %24, %33 : vector<8x64xf32>
    %cst_55 = arith.constant dense<0.000000e+00> : vector<8x64xf32>
    %274 = tpu.matmul %273, %4, %cst_55 {dimension_numbers = #tpu.dot_dimension_numbers<[1], [0], [0], [1], [0, 0, 1, 1], [], []>} : vector<8x64xf32>, vector<64x64xf32>, vector<8x64xf32> -> vector<8x64xf32>
    %275 = arith.maximumf %262, %264 : vector<8x64xf32>
    %276 = arith.maximumf %275, %266 : vector<8x64xf32>
    %277 = arith.maximumf %276, %268 : vector<8x64xf32>
    %278 = arith.maximumf %277, %270 : vector<8x64xf32>
    %279 = arith.maximumf %278, %272 : vector<8x64xf32>
    %280 = arith.maximumf %279, %274 : vector<8x64xf32>
    %281 = arith.subf %262, %280 : vector<8x64xf32>
    %282 = math.exp %281 : vector<8x64xf32>
    %283 = arith.mulf %282, %34 : vector<8x64xf32>
    %284 = arith.subf %264, %280 : vector<8x64xf32>
    %285 = math.exp %284 : vector<8x64xf32>
    %286 = arith.addf %282, %285 : vector<8x64xf32>
    %287 = arith.mulf %285, %35 : vector<8x64xf32>
    %288 = arith.addf %283, %287 : vector<8x64xf32>
    %289 = arith.subf %266, %280 : vector<8x64xf32>
    %290 = math.exp %289 : vector<8x64xf32>
    %291 = arith.addf %286, %290 : vector<8x64xf32>
    %292 = arith.mulf %290, %36 : vector<8x64xf32>
    %293 = arith.addf %288, %292 : vector<8x64xf32>
    %294 = arith.subf %268, %280 : vector<8x64xf32>
    %295 = math.exp %294 : vector<8x64xf32>
    %296 = arith.addf %291, %295 : vector<8x64xf32>
    %297 = arith.mulf %295, %37 : vector<8x64xf32>
    %298 = arith.addf %293, %297 : vector<8x64xf32>
    %299 = arith.subf %270, %280 : vector<8x64xf32>
    %300 = math.exp %299 : vector<8x64xf32>
    %301 = arith.addf %296, %300 : vector<8x64xf32>
    %302 = arith.mulf %300, %38 : vector<8x64xf32>
    %303 = arith.addf %298, %302 : vector<8x64xf32>
    %304 = arith.subf %272, %280 : vector<8x64xf32>
    %305 = math.exp %304 : vector<8x64xf32>
    %306 = arith.addf %301, %305 : vector<8x64xf32>
    %307 = arith.mulf %305, %39 : vector<8x64xf32>
    %308 = arith.addf %303, %307 : vector<8x64xf32>
    %309 = arith.subf %274, %280 : vector<8x64xf32>
    %310 = math.exp %309 : vector<8x64xf32>
    %311 = arith.addf %306, %310 : vector<8x64xf32>
    %312 = arith.mulf %310, %40 : vector<8x64xf32>
    %313 = arith.addf %308, %312 : vector<8x64xf32>
    %314 = tpu.reciprocal %311 {approx = true} : vector<8x64xf32> -> vector<8x64xf32>
    %315 = arith.mulf %313, %314 : vector<8x64xf32>
    %316 = arith.mulf %25, %27 : vector<8x64xf32>
    %cst_56 = arith.constant dense<0.000000e+00> : vector<8x64xf32>
    %317 = tpu.matmul %316, %4, %cst_56 {dimension_numbers = #tpu.dot_dimension_numbers<[1], [0], [0], [1], [0, 0, 1, 1], [], []>} : vector<8x64xf32>, vector<64x64xf32>, vector<8x64xf32> -> vector<8x64xf32>
    %318 = arith.mulf %25, %28 : vector<8x64xf32>
    %cst_57 = arith.constant dense<0.000000e+00> : vector<8x64xf32>
    %319 = tpu.matmul %318, %4, %cst_57 {dimension_numbers = #tpu.dot_dimension_numbers<[1], [0], [0], [1], [0, 0, 1, 1], [], []>} : vector<8x64xf32>, vector<64x64xf32>, vector<8x64xf32> -> vector<8x64xf32>
    %320 = arith.mulf %25, %29 : vector<8x64xf32>
    %cst_58 = arith.constant dense<0.000000e+00> : vector<8x64xf32>
    %321 = tpu.matmul %320, %4, %cst_58 {dimension_numbers = #tpu.dot_dimension_numbers<[1], [0], [0], [1], [0, 0, 1, 1], [], []>} : vector<8x64xf32>, vector<64x64xf32>, vector<8x64xf32> -> vector<8x64xf32>
    %322 = arith.mulf %25, %30 : vector<8x64xf32>
    %cst_59 = arith.constant dense<0.000000e+00> : vector<8x64xf32>
    %323 = tpu.matmul %322, %4, %cst_59 {dimension_numbers = #tpu.dot_dimension_numbers<[1], [0], [0], [1], [0, 0, 1, 1], [], []>} : vector<8x64xf32>, vector<64x64xf32>, vector<8x64xf32> -> vector<8x64xf32>
    %324 = arith.mulf %25, %31 : vector<8x64xf32>
    %cst_60 = arith.constant dense<0.000000e+00> : vector<8x64xf32>
    %325 = tpu.matmul %324, %4, %cst_60 {dimension_numbers = #tpu.dot_dimension_numbers<[1], [0], [0], [1], [0, 0, 1, 1], [], []>} : vector<8x64xf32>, vector<64x64xf32>, vector<8x64xf32> -> vector<8x64xf32>
    %326 = arith.mulf %25, %32 : vector<8x64xf32>
    %cst_61 = arith.constant dense<0.000000e+00> : vector<8x64xf32>
    %327 = tpu.matmul %326, %4, %cst_61 {dimension_numbers = #tpu.dot_dimension_numbers<[1], [0], [0], [1], [0, 0, 1, 1], [], []>} : vector<8x64xf32>, vector<64x64xf32>, vector<8x64xf32> -> vector<8x64xf32>
    %328 = arith.mulf %25, %33 : vector<8x64xf32>
    %cst_62 = arith.constant dense<0.000000e+00> : vector<8x64xf32>
    %329 = tpu.matmul %328, %4, %cst_62 {dimension_numbers = #tpu.dot_dimension_numbers<[1], [0], [0], [1], [0, 0, 1, 1], [], []>} : vector<8x64xf32>, vector<64x64xf32>, vector<8x64xf32> -> vector<8x64xf32>
    %330 = arith.maximumf %317, %319 : vector<8x64xf32>
    %331 = arith.maximumf %330, %321 : vector<8x64xf32>
    %332 = arith.maximumf %331, %323 : vector<8x64xf32>
    %333 = arith.maximumf %332, %325 : vector<8x64xf32>
    %334 = arith.maximumf %333, %327 : vector<8x64xf32>
    %335 = arith.maximumf %334, %329 : vector<8x64xf32>
    %336 = arith.subf %317, %335 : vector<8x64xf32>
    %337 = math.exp %336 : vector<8x64xf32>
    %338 = arith.mulf %337, %34 : vector<8x64xf32>
    %339 = arith.subf %319, %335 : vector<8x64xf32>
    %340 = math.exp %339 : vector<8x64xf32>
    %341 = arith.addf %337, %340 : vector<8x64xf32>
    %342 = arith.mulf %340, %35 : vector<8x64xf32>
    %343 = arith.addf %338, %342 : vector<8x64xf32>
    %344 = arith.subf %321, %335 : vector<8x64xf32>
    %345 = math.exp %344 : vector<8x64xf32>
    %346 = arith.addf %341, %345 : vector<8x64xf32>
    %347 = arith.mulf %345, %36 : vector<8x64xf32>
    %348 = arith.addf %343, %347 : vector<8x64xf32>
    %349 = arith.subf %323, %335 : vector<8x64xf32>
    %350 = math.exp %349 : vector<8x64xf32>
    %351 = arith.addf %346, %350 : vector<8x64xf32>
    %352 = arith.mulf %350, %37 : vector<8x64xf32>
    %353 = arith.addf %348, %352 : vector<8x64xf32>
    %354 = arith.subf %325, %335 : vector<8x64xf32>
    %355 = math.exp %354 : vector<8x64xf32>
    %356 = arith.addf %351, %355 : vector<8x64xf32>
    %357 = arith.mulf %355, %38 : vector<8x64xf32>
    %358 = arith.addf %353, %357 : vector<8x64xf32>
    %359 = arith.subf %327, %335 : vector<8x64xf32>
    %360 = math.exp %359 : vector<8x64xf32>
    %361 = arith.addf %356, %360 : vector<8x64xf32>
    %362 = arith.mulf %360, %39 : vector<8x64xf32>
    %363 = arith.addf %358, %362 : vector<8x64xf32>
    %364 = arith.subf %329, %335 : vector<8x64xf32>
    %365 = math.exp %364 : vector<8x64xf32>
    %366 = arith.addf %361, %365 : vector<8x64xf32>
    %367 = arith.mulf %365, %40 : vector<8x64xf32>
    %368 = arith.addf %363, %367 : vector<8x64xf32>
    %369 = tpu.reciprocal %366 {approx = true} : vector<8x64xf32> -> vector<8x64xf32>
    %370 = arith.mulf %368, %369 : vector<8x64xf32>
    %371 = arith.mulf %26, %27 : vector<8x64xf32>
    %cst_63 = arith.constant dense<0.000000e+00> : vector<8x64xf32>
    %372 = tpu.matmul %371, %4, %cst_63 {dimension_numbers = #tpu.dot_dimension_numbers<[1], [0], [0], [1], [0, 0, 1, 1], [], []>} : vector<8x64xf32>, vector<64x64xf32>, vector<8x64xf32> -> vector<8x64xf32>
    %373 = arith.mulf %26, %28 : vector<8x64xf32>
    %cst_64 = arith.constant dense<0.000000e+00> : vector<8x64xf32>
    %374 = tpu.matmul %373, %4, %cst_64 {dimension_numbers = #tpu.dot_dimension_numbers<[1], [0], [0], [1], [0, 0, 1, 1], [], []>} : vector<8x64xf32>, vector<64x64xf32>, vector<8x64xf32> -> vector<8x64xf32>
    %375 = arith.mulf %26, %29 : vector<8x64xf32>
    %cst_65 = arith.constant dense<0.000000e+00> : vector<8x64xf32>
    %376 = tpu.matmul %375, %4, %cst_65 {dimension_numbers = #tpu.dot_dimension_numbers<[1], [0], [0], [1], [0, 0, 1, 1], [], []>} : vector<8x64xf32>, vector<64x64xf32>, vector<8x64xf32> -> vector<8x64xf32>
    %377 = arith.mulf %26, %30 : vector<8x64xf32>
    %cst_66 = arith.constant dense<0.000000e+00> : vector<8x64xf32>
    %378 = tpu.matmul %377, %4, %cst_66 {dimension_numbers = #tpu.dot_dimension_numbers<[1], [0], [0], [1], [0, 0, 1, 1], [], []>} : vector<8x64xf32>, vector<64x64xf32>, vector<8x64xf32> -> vector<8x64xf32>
    %379 = arith.mulf %26, %31 : vector<8x64xf32>
    %cst_67 = arith.constant dense<0.000000e+00> : vector<8x64xf32>
    %380 = tpu.matmul %379, %4, %cst_67 {dimension_numbers = #tpu.dot_dimension_numbers<[1], [0], [0], [1], [0, 0, 1, 1], [], []>} : vector<8x64xf32>, vector<64x64xf32>, vector<8x64xf32> -> vector<8x64xf32>
    %381 = arith.mulf %26, %32 : vector<8x64xf32>
    %cst_68 = arith.constant dense<0.000000e+00> : vector<8x64xf32>
    %382 = tpu.matmul %381, %4, %cst_68 {dimension_numbers = #tpu.dot_dimension_numbers<[1], [0], [0], [1], [0, 0, 1, 1], [], []>} : vector<8x64xf32>, vector<64x64xf32>, vector<8x64xf32> -> vector<8x64xf32>
    %383 = arith.mulf %26, %33 : vector<8x64xf32>
    %cst_69 = arith.constant dense<0.000000e+00> : vector<8x64xf32>
    %384 = tpu.matmul %383, %4, %cst_69 {dimension_numbers = #tpu.dot_dimension_numbers<[1], [0], [0], [1], [0, 0, 1, 1], [], []>} : vector<8x64xf32>, vector<64x64xf32>, vector<8x64xf32> -> vector<8x64xf32>
    %385 = arith.maximumf %372, %374 : vector<8x64xf32>
    %386 = arith.maximumf %385, %376 : vector<8x64xf32>
    %387 = arith.maximumf %386, %378 : vector<8x64xf32>
    %388 = arith.maximumf %387, %380 : vector<8x64xf32>
    %389 = arith.maximumf %388, %382 : vector<8x64xf32>
    %390 = arith.maximumf %389, %384 : vector<8x64xf32>
    %391 = arith.subf %372, %390 : vector<8x64xf32>
    %392 = math.exp %391 : vector<8x64xf32>
    %393 = arith.mulf %392, %34 : vector<8x64xf32>
    %394 = arith.subf %374, %390 : vector<8x64xf32>
    %395 = math.exp %394 : vector<8x64xf32>
    %396 = arith.addf %392, %395 : vector<8x64xf32>
    %397 = arith.mulf %395, %35 : vector<8x64xf32>
    %398 = arith.addf %393, %397 : vector<8x64xf32>
    %399 = arith.subf %376, %390 : vector<8x64xf32>
    %400 = math.exp %399 : vector<8x64xf32>
    %401 = arith.addf %396, %400 : vector<8x64xf32>
    %402 = arith.mulf %400, %36 : vector<8x64xf32>
    %403 = arith.addf %398, %402 : vector<8x64xf32>
    %404 = arith.subf %378, %390 : vector<8x64xf32>
    %405 = math.exp %404 : vector<8x64xf32>
    %406 = arith.addf %401, %405 : vector<8x64xf32>
    %407 = arith.mulf %405, %37 : vector<8x64xf32>
    %408 = arith.addf %403, %407 : vector<8x64xf32>
    %409 = arith.subf %380, %390 : vector<8x64xf32>
    %410 = math.exp %409 : vector<8x64xf32>
    %411 = arith.addf %406, %410 : vector<8x64xf32>
    %412 = arith.mulf %410, %38 : vector<8x64xf32>
    %413 = arith.addf %408, %412 : vector<8x64xf32>
    %414 = arith.subf %382, %390 : vector<8x64xf32>
    %415 = math.exp %414 : vector<8x64xf32>
    %416 = arith.addf %411, %415 : vector<8x64xf32>
    %417 = arith.mulf %415, %39 : vector<8x64xf32>
    %418 = arith.addf %413, %417 : vector<8x64xf32>
    %419 = arith.subf %384, %390 : vector<8x64xf32>
    %420 = math.exp %419 : vector<8x64xf32>
    %421 = arith.addf %416, %420 : vector<8x64xf32>
    %422 = arith.mulf %420, %40 : vector<8x64xf32>
    %423 = arith.addf %418, %422 : vector<8x64xf32>
    %424 = tpu.reciprocal %421 {approx = true} : vector<8x64xf32> -> vector<8x64xf32>
    %425 = arith.mulf %423, %424 : vector<8x64xf32>
    %426 = tpu.concatenate %95, %150, %205, %260, %315, %370, %425 in 0 : vector<8x64xf32>, vector<8x64xf32>, vector<8x64xf32>, vector<8x64xf32>, vector<8x64xf32>, vector<8x64xf32>, vector<8x64xf32> -> vector<56x64xf32>
    %cst_70 = arith.constant dense<0.000000e+00> : vector<56x64xf32>
    %427 = tpu.matmul %426, %2, %cst_70 {dimension_numbers = #tpu.dot_dimension_numbers<[1], [0], [0], [1], [0, 0, 1, 1], [], []>} : vector<56x64xf32>, vector<64x64xf32>, vector<56x64xf32> -> vector<56x64xf32>
    %cst_71 = arith.constant dense<0.000000e+00> : vector<56xf32>
    %428 = vector.multi_reduction <add>, %427, %cst_71 [1] : vector<56x64xf32> to vector<56xf32>
    %429 = vector.shape_cast %428 : vector<56xf32> to vector<56x1xf32>
    %cst_72 = arith.constant 6.400000e+01 : f32
    %430 = vector.broadcast %cst_72 : f32 to vector<56x1xf32>
    %431 = arith.divf %429, %430 : vector<56x1xf32>
    %432 = vector.broadcast %431 : vector<56x1xf32> to vector<56x64xf32>
    %433 = arith.subf %427, %432 : vector<56x64xf32>
    %434 = arith.mulf %433, %433 : vector<56x64xf32>
    %cst_73 = arith.constant dense<0.000000e+00> : vector<56xf32>
    %435 = vector.multi_reduction <add>, %434, %cst_73 [1] : vector<56x64xf32> to vector<56xf32>
    %436 = vector.shape_cast %435 : vector<56xf32> to vector<56x1xf32>
    %cst_74 = arith.constant 6.400000e+01 : f32
    %437 = vector.broadcast %cst_74 : f32 to vector<56x1xf32>
    %438 = arith.divf %436, %437 : vector<56x1xf32>
    %439 = vector.broadcast %431 : vector<56x1xf32> to vector<56x64xf32>
    %440 = arith.subf %427, %439 : vector<56x64xf32>
    %cst_75 = arith.constant 9.99999974E-6 : f32
    %441 = vector.broadcast %cst_75 : f32 to vector<56x1xf32>
    %442 = arith.addf %438, %441 : vector<56x1xf32>
    %443 = math.rsqrt %442 : vector<56x1xf32>
    %444 = vector.broadcast %443 : vector<56x1xf32> to vector<56x64xf32>
    %445 = arith.mulf %440, %444 : vector<56x64xf32>
    %446 = vector.broadcast %7 : vector<1x64xf32> to vector<56x64xf32>
    %447 = arith.mulf %445, %446 : vector<56x64xf32>
    %448 = vector.broadcast %8 : vector<1x64xf32> to vector<56x64xf32>
    %449 = arith.addf %447, %448 : vector<56x64xf32>
    %cst_76 = arith.constant dense<0.000000e+00> : vector<56x128xf32>
    %450 = tpu.matmul %449, %5, %cst_76 {dimension_numbers = #tpu.dot_dimension_numbers<[1], [0], [0], [1], [0, 0, 1, 1], [], []>} : vector<56x64xf32>, vector<64x128xf32>, vector<56x128xf32> -> vector<56x128xf32>
    %451 = vector.broadcast %11 : vector<1x128xf32> to vector<56x128xf32>
    %452 = arith.addf %450, %451 : vector<56x128xf32>
    %cst_77 = arith.constant 0.000000e+00 : f32
    %453 = vector.broadcast %cst_77 : f32 to vector<56x128xf32>
    %454 = arith.maximumf %452, %453 : vector<56x128xf32>
    %cst_78 = arith.constant dense<0.000000e+00> : vector<56x64xf32>
    %455 = tpu.matmul %454, %3, %cst_78 {dimension_numbers = #tpu.dot_dimension_numbers<[1], [0], [0], [1], [0, 0, 1, 1], [], []>} : vector<56x128xf32>, vector<128x64xf32>, vector<56x64xf32> -> vector<56x64xf32>
    %456 = vector.broadcast %12 : vector<1x64xf32> to vector<56x64xf32>
    %457 = arith.addf %455, %456 : vector<56x64xf32>
    %cst_79 = arith.constant 0.000000e+00 : f32
    %458 = vector.broadcast %cst_79 : f32 to vector<56x64xf32>
    %459 = arith.maximumf %457, %458 : vector<56x64xf32>
    %460 = arith.addf %449, %459 : vector<56x64xf32>
    %cst_80 = arith.constant dense<0.000000e+00> : vector<56xf32>
    %461 = vector.multi_reduction <add>, %460, %cst_80 [1] : vector<56x64xf32> to vector<56xf32>
    %462 = vector.shape_cast %461 : vector<56xf32> to vector<56x1xf32>
    %cst_81 = arith.constant 6.400000e+01 : f32
    %463 = vector.broadcast %cst_81 : f32 to vector<56x1xf32>
    %464 = arith.divf %462, %463 : vector<56x1xf32>
    %465 = vector.broadcast %464 : vector<56x1xf32> to vector<56x64xf32>
    %466 = arith.subf %460, %465 : vector<56x64xf32>
    %467 = arith.mulf %466, %466 : vector<56x64xf32>
    %cst_82 = arith.constant dense<0.000000e+00> : vector<56xf32>
    %468 = vector.multi_reduction <add>, %467, %cst_82 [1] : vector<56x64xf32> to vector<56xf32>
    %469 = vector.shape_cast %468 : vector<56xf32> to vector<56x1xf32>
    %cst_83 = arith.constant 6.400000e+01 : f32
    %470 = vector.broadcast %cst_83 : f32 to vector<56x1xf32>
    %471 = arith.divf %469, %470 : vector<56x1xf32>
    %472 = vector.broadcast %464 : vector<56x1xf32> to vector<56x64xf32>
    %473 = arith.subf %460, %472 : vector<56x64xf32>
    %cst_84 = arith.constant 9.99999974E-6 : f32
    %474 = vector.broadcast %cst_84 : f32 to vector<56x1xf32>
    %475 = arith.addf %471, %474 : vector<56x1xf32>
    %476 = math.rsqrt %475 : vector<56x1xf32>
    %477 = vector.broadcast %476 : vector<56x1xf32> to vector<56x64xf32>
    %478 = arith.mulf %473, %477 : vector<56x64xf32>
    %479 = vector.broadcast %9 : vector<1x64xf32> to vector<56x64xf32>
    %480 = arith.mulf %478, %479 : vector<56x64xf32>
    %481 = vector.broadcast %10 : vector<1x64xf32> to vector<56x64xf32>
    %482 = arith.addf %480, %481 : vector<56x64xf32>
    %c0_85 = arith.constant 0 : index
    %c0_86 = arith.constant 0 : index
    %483 = vector.load %arg4[%c0_85, %c0_86] : memref<64x256xf32, #tpu.memory_space<vmem>>, vector<64x256xf32>
    %cst_87 = arith.constant dense<0.000000e+00> : vector<56x256xf32>
    %484 = tpu.matmul %482, %483, %cst_87 {dimension_numbers = #tpu.dot_dimension_numbers<[1], [0], [0], [1], [0, 0, 1, 1], [], []>} : vector<56x64xf32>, vector<64x256xf32>, vector<56x256xf32> -> vector<56x256xf32>
    %485 = vector.extract_strided_slice %484 {offsets = [0, 0], sizes = [8, 64], strides = [1, 1]} : vector<56x256xf32> to vector<8x64xf32>
    %486 = vector.extract_strided_slice %484 {offsets = [8, 0], sizes = [8, 64], strides = [1, 1]} : vector<56x256xf32> to vector<8x64xf32>
    %487 = vector.extract_strided_slice %484 {offsets = [16, 0], sizes = [8, 64], strides = [1, 1]} : vector<56x256xf32> to vector<8x64xf32>
    %488 = vector.extract_strided_slice %484 {offsets = [24, 0], sizes = [8, 64], strides = [1, 1]} : vector<56x256xf32> to vector<8x64xf32>
    %489 = vector.extract_strided_slice %484 {offsets = [32, 0], sizes = [8, 64], strides = [1, 1]} : vector<56x256xf32> to vector<8x64xf32>
    %490 = vector.extract_strided_slice %484 {offsets = [40, 0], sizes = [8, 64], strides = [1, 1]} : vector<56x256xf32> to vector<8x64xf32>
    %491 = vector.extract_strided_slice %484 {offsets = [48, 0], sizes = [8, 64], strides = [1, 1]} : vector<56x256xf32> to vector<8x64xf32>
    %492 = vector.extract_strided_slice %484 {offsets = [0, 128], sizes = [8, 64], strides = [1, 1]} : vector<56x256xf32> to vector<8x64xf32>
    %493 = vector.extract_strided_slice %484 {offsets = [8, 128], sizes = [8, 64], strides = [1, 1]} : vector<56x256xf32> to vector<8x64xf32>
    %494 = vector.extract_strided_slice %484 {offsets = [16, 128], sizes = [8, 64], strides = [1, 1]} : vector<56x256xf32> to vector<8x64xf32>
    %495 = vector.extract_strided_slice %484 {offsets = [24, 128], sizes = [8, 64], strides = [1, 1]} : vector<56x256xf32> to vector<8x64xf32>
    %496 = vector.extract_strided_slice %484 {offsets = [32, 128], sizes = [8, 64], strides = [1, 1]} : vector<56x256xf32> to vector<8x64xf32>
    %497 = vector.extract_strided_slice %484 {offsets = [40, 128], sizes = [8, 64], strides = [1, 1]} : vector<56x256xf32> to vector<8x64xf32>
    %498 = vector.extract_strided_slice %484 {offsets = [48, 128], sizes = [8, 64], strides = [1, 1]} : vector<56x256xf32> to vector<8x64xf32>
    %499 = vector.broadcast %13 : vector<1x64xf32> to vector<8x64xf32>
    %500 = arith.mulf %499, %485 : vector<8x64xf32>
    %cst_88 = arith.constant dense<0.000000e+00> : vector<8x64xf32>
    %501 = tpu.matmul %500, %4, %cst_88 {dimension_numbers = #tpu.dot_dimension_numbers<[1], [0], [0], [1], [0, 0, 1, 1], [], []>} : vector<8x64xf32>, vector<64x64xf32>, vector<8x64xf32> -> vector<8x64xf32>
    %502 = vector.broadcast %13 : vector<1x64xf32> to vector<8x64xf32>
    %503 = arith.mulf %502, %486 : vector<8x64xf32>
    %cst_89 = arith.constant dense<0.000000e+00> : vector<8x64xf32>
    %504 = tpu.matmul %503, %4, %cst_89 {dimension_numbers = #tpu.dot_dimension_numbers<[1], [0], [0], [1], [0, 0, 1, 1], [], []>} : vector<8x64xf32>, vector<64x64xf32>, vector<8x64xf32> -> vector<8x64xf32>
    %505 = vector.broadcast %13 : vector<1x64xf32> to vector<8x64xf32>
    %506 = arith.mulf %505, %487 : vector<8x64xf32>
    %cst_90 = arith.constant dense<0.000000e+00> : vector<8x64xf32>
    %507 = tpu.matmul %506, %4, %cst_90 {dimension_numbers = #tpu.dot_dimension_numbers<[1], [0], [0], [1], [0, 0, 1, 1], [], []>} : vector<8x64xf32>, vector<64x64xf32>, vector<8x64xf32> -> vector<8x64xf32>
    %508 = vector.broadcast %13 : vector<1x64xf32> to vector<8x64xf32>
    %509 = arith.mulf %508, %488 : vector<8x64xf32>
    %cst_91 = arith.constant dense<0.000000e+00> : vector<8x64xf32>
    %510 = tpu.matmul %509, %4, %cst_91 {dimension_numbers = #tpu.dot_dimension_numbers<[1], [0], [0], [1], [0, 0, 1, 1], [], []>} : vector<8x64xf32>, vector<64x64xf32>, vector<8x64xf32> -> vector<8x64xf32>
    %511 = vector.broadcast %13 : vector<1x64xf32> to vector<8x64xf32>
    %512 = arith.mulf %511, %489 : vector<8x64xf32>
    %cst_92 = arith.constant dense<0.000000e+00> : vector<8x64xf32>
    %513 = tpu.matmul %512, %4, %cst_92 {dimension_numbers = #tpu.dot_dimension_numbers<[1], [0], [0], [1], [0, 0, 1, 1], [], []>} : vector<8x64xf32>, vector<64x64xf32>, vector<8x64xf32> -> vector<8x64xf32>
    %514 = vector.broadcast %13 : vector<1x64xf32> to vector<8x64xf32>
    %515 = arith.mulf %514, %490 : vector<8x64xf32>
    %cst_93 = arith.constant dense<0.000000e+00> : vector<8x64xf32>
    %516 = tpu.matmul %515, %4, %cst_93 {dimension_numbers = #tpu.dot_dimension_numbers<[1], [0], [0], [1], [0, 0, 1, 1], [], []>} : vector<8x64xf32>, vector<64x64xf32>, vector<8x64xf32> -> vector<8x64xf32>
    %517 = vector.broadcast %13 : vector<1x64xf32> to vector<8x64xf32>
    %518 = arith.mulf %517, %491 : vector<8x64xf32>
    %cst_94 = arith.constant dense<0.000000e+00> : vector<8x64xf32>
    %519 = tpu.matmul %518, %4, %cst_94 {dimension_numbers = #tpu.dot_dimension_numbers<[1], [0], [0], [1], [0, 0, 1, 1], [], []>} : vector<8x64xf32>, vector<64x64xf32>, vector<8x64xf32> -> vector<8x64xf32>
    %520 = arith.maximumf %501, %504 : vector<8x64xf32>
    %521 = arith.maximumf %520, %507 : vector<8x64xf32>
    %522 = arith.maximumf %521, %510 : vector<8x64xf32>
    %523 = arith.maximumf %522, %513 : vector<8x64xf32>
    %524 = arith.maximumf %523, %516 : vector<8x64xf32>
    %525 = arith.maximumf %524, %519 : vector<8x64xf32>
    %526 = arith.subf %501, %525 : vector<8x64xf32>
    %527 = math.exp %526 : vector<8x64xf32>
    %528 = arith.mulf %527, %492 : vector<8x64xf32>
    %529 = arith.subf %504, %525 : vector<8x64xf32>
    %530 = math.exp %529 : vector<8x64xf32>
    %531 = arith.addf %527, %530 : vector<8x64xf32>
    %532 = arith.mulf %530, %493 : vector<8x64xf32>
    %533 = arith.addf %528, %532 : vector<8x64xf32>
    %534 = arith.subf %507, %525 : vector<8x64xf32>
    %535 = math.exp %534 : vector<8x64xf32>
    %536 = arith.addf %531, %535 : vector<8x64xf32>
    %537 = arith.mulf %535, %494 : vector<8x64xf32>
    %538 = arith.addf %533, %537 : vector<8x64xf32>
    %539 = arith.subf %510, %525 : vector<8x64xf32>
    %540 = math.exp %539 : vector<8x64xf32>
    %541 = arith.addf %536, %540 : vector<8x64xf32>
    %542 = arith.mulf %540, %495 : vector<8x64xf32>
    %543 = arith.addf %538, %542 : vector<8x64xf32>
    %544 = arith.subf %513, %525 : vector<8x64xf32>
    %545 = math.exp %544 : vector<8x64xf32>
    %546 = arith.addf %541, %545 : vector<8x64xf32>
    %547 = arith.mulf %545, %496 : vector<8x64xf32>
    %548 = arith.addf %543, %547 : vector<8x64xf32>
    %549 = arith.subf %516, %525 : vector<8x64xf32>
    %550 = math.exp %549 : vector<8x64xf32>
    %551 = arith.addf %546, %550 : vector<8x64xf32>
    %552 = arith.mulf %550, %497 : vector<8x64xf32>
    %553 = arith.addf %548, %552 : vector<8x64xf32>
    %554 = arith.subf %519, %525 : vector<8x64xf32>
    %555 = math.exp %554 : vector<8x64xf32>
    %556 = arith.addf %551, %555 : vector<8x64xf32>
    %557 = arith.mulf %555, %498 : vector<8x64xf32>
    %558 = arith.addf %553, %557 : vector<8x64xf32>
    %559 = tpu.reciprocal %556 {approx = true} : vector<8x64xf32> -> vector<8x64xf32>
    %560 = arith.mulf %558, %559 : vector<8x64xf32>
    %cst_95 = arith.constant dense<0.000000e+00> : vector<8x128xf32>
    %561 = tpu.matmul %560, %6, %cst_95 {dimension_numbers = #tpu.dot_dimension_numbers<[1], [0], [0], [1], [0, 0, 1, 1], [], []>} : vector<8x64xf32>, vector<64x128xf32>, vector<8x128xf32> -> vector<8x128xf32>
    %562 = vector.broadcast %14 : vector<1x128xf32> to vector<8x128xf32>
    %563 = arith.addf %561, %562 : vector<8x128xf32>
    %c0_96 = arith.constant 0 : index
    %c0_97 = arith.constant 0 : index
    %564 = vector.load %arg7[%c0_96, %c0_97] : memref<8x128xf32, #tpu.memory_space<vmem>>, vector<8x128xf32>
    tpu.vector_store %arg7[%c0_96, %c0_97], %563 {strides = array<i32>} : memref<8x128xf32, #tpu.memory_space<vmem>>, vector<8x128xf32>,
    return
  }
  func.func @transform_0(%arg0: i32) -> (i32, i32, i32) {
    %c0_i32 = arith.constant 0 : i32
    %c0_i32_0 = arith.constant 0 : i32
    %c0_i32_1 = arith.constant 0 : i32
    return %arg0, %c0_i32, %c0_i32_0 : i32, i32, i32
  }
  func.func @transform_1(%arg0: i32) -> (i32, i32) {
    %c0_i32 = arith.constant 0 : i32
    %c0_i32_0 = arith.constant 0 : i32
    %c0_i32_1 = arith.constant 0 : i32
    return %c0_i32, %c0_i32_0 : i32, i32
  }
  func.func @transform_2(%arg0: i32) -> (i32, i32) {
    %c0_i32 = arith.constant 0 : i32
    %c0_i32_0 = arith.constant 0 : i32
    %c0_i32_1 = arith.constant 0 : i32
    return %c0_i32, %c0_i32_0 : i32, i32
  }
  func.func @transform_3(%arg0: i32) -> (i32, i32) {
    %c0_i32 = arith.constant 0 : i32
    %c0_i32_0 = arith.constant 0 : i32
    %c0_i32_1 = arith.constant 0 : i32
    return %c0_i32, %c0_i32_0 : i32, i32
  }
  func.func @transform_4(%arg0: i32) -> (i32, i32) {
    %c0_i32 = arith.constant 0 : i32
    %c0_i32_0 = arith.constant 0 : i32
    %c0_i32_1 = arith.constant 0 : i32
    return %c0_i32, %c0_i32_0 : i32, i32
  }
  func.func @transform_5(%arg0: i32) -> (i32, i32) {
    %c0_i32 = arith.constant 0 : i32
    %c0_i32_0 = arith.constant 0 : i32
    %c0_i32_1 = arith.constant 0 : i32
    return %c0_i32, %c0_i32_0 : i32, i32
  }
  func.func @transform_6(%arg0: i32) -> (i32, i32) {
    %c0_i32 = arith.constant 0 : i32
    %c0_i32_0 = arith.constant 0 : i32
    return %arg0, %c0_i32 : i32, i32
  }
}

</mosaic_0001>

<bundles_post_ra>
// kernel: tpu_custom_call.1
= control target key start
LH: loop header
LB: loop body
LE: loop exit
PB: predicated region body
PF: predicated region fallthrough
CT: control target
= control target key end

     0   :  { %vm93_vm0 = vcmask 130048   ;;  %v7808_v6 = vmov 0.0   ;;  %s10073_s0 = inlined_call_operand.vmem [shape: f32[1,56,16], index: 0, kind: input, shape index: {}]   ;;  %s10074_s1 = inlined_call_operand.vmem [shape: f32[16,384], index: 1, kind: input, shape index: {}]   ;;  %s10075_s2 = inlined_call_operand.vmem [shape: f32[256,64], index: 2, kind: input, shape index: {}]   ;;  %s10076_s3 = inlined_call_operand.vmem [shape: f32[64,256], index: 3, kind: input, shape index: {}]   ;;  %s10077_s4 = inlined_call_operand.vmem [shape: f32[128,128], index: 4, kind: input, shape index: {}]   ;;  %s10078_s5 = inlined_call_operand.vmem [shape: f32[8,128], index: 5, kind: input, shape index: {}]   ;;  %s10079_s6 = inlined_call_operand.hbm [shape: f32[8,128], index: 6, kind: output, shape index: {}]  }
   0x1   :  { %v91_v0 = vld [vmem:[%s10074_s1 + $0x20] sm:$0xff]  ;;  %v90_v1 = vld [vmem:[%s10074_s1 + $0x18] sm:$0xff]  ;;  %v88_v2 = vld [vmem:[%s10074_s1 + $0x8] sm:$0xff]  ;;  %179 = vmatprep.mubr.f32.mxu0 %v7808_v6  ;;  %215 = vmatprep.mubr.f32.mxu1 %v7808_v6 }
   0x2   :  { %143 = vmatprep.subr.mxu0 %v91_v0  ;;  %7599 = vmatprep.subr.mxu1 %v91_v0  ;;  %v87_v3 = vld [vmem:[%s10074_s1] sm:$0xff]  ;;  %v7864_v5 = vld [vmem:[%s10073_s0 + $0x30] sm:$0xff]  ;;  %v92_v7 = vld [vmem:[%s10074_s1 + $0x28] sm:$0xff] }
   0x3   :  { %144 = vmatpush1.msra.mxu0 %v90_v1  ;;  %7601 = vmatpush1.msra.mxu1 %v90_v1  ;;  %v24_v4 = vld [vmem:[%s10073_s0] sm:$0xff] }
   0x4   :  { %145 = vmatprep.subr.mxu0 %v88_v2  ;;  %7600 = vmatprep.subr.mxu1 %v88_v2 }
   0x5   :  { %146 = vmatpush1.msra.mxu0 %v87_v3  ;;  %7602 = vmatpush1.msra.mxu1 %v87_v3 }
   0x6   :  { %5689 = vmatmul.mubr.msk.f32.vlgmr.msra.gmra.mxu0 %vm93_vm0, %v24_v4  ;;  %5695 = vmatmul.mubr.msk.f32.vlgmr.msra.gmra.mxu1 %vm93_vm0, %v7864_v5 }
   0x7   :  { %11 = vsyncpa [#allocation3], 0  ;;  %185 = vmatprep.mubr.f32.mxu0 %v7808_v6  ;;  %v25_v8 = vld [vmem:[%s10073_s0 + $0x8] sm:$0xff]  ;;  %6364 = vmatprep.subr.mxu1 %v7808_v6  ;;  %v89_v9 = vld [vmem:[%s10074_s1 + $0x10] sm:$0xff]  ;;  %vm7809_vm1 = vmmov 0   ;;  %vm323_vm2 = vcmask 523264  }
   0x8   :  { %6365 = vmatpush3.msra.mxu1 %v92_v7  ;;  %6368 = vmatprep.mubr.msk.f32.mxu1 %vm7809_vm1, %v7808_v6  ;;  %v7889_v10 = vld [vmem:[%s10075_s2 + $0xf8] sm:$0xff]  ;;  %v26_v11 = vld [vmem:[%s10073_s0 + $0x10] sm:$0xff]  ;;  %v7911_v13 = vld [vmem:[%s10075_s2 + $0xe8] sm:$0xff]  ;;  %s7810_s27 = smov [#allocation2]  }
   0x9   :  { %6366 = vmatprep.subr.mxu1 %v7808_v6  ;;  %6389 = vmatprep.subr.mxu0 %v7808_v6  ;;  %v7903_v12 = vld [vmem:[%s10075_s2 + $0xf0] sm:$0xff]  ;;  %v27_v14 = vld [vmem:[%s10073_s0 + $0x18] sm:$0xff]  ;;  %v7924_v15 = vld [vmem:[%s10075_s2 + $0xe0] sm:$0xff]  ;;  %s5681_s28 = sshll.u32 %s7810_s27, 4  ;;  %s5682_s28 = int_to_ptr.vmem [resolvable:$true] %s5681_s28 }
   0xa   :  { %5690 = vmatmul.mubr.msk.f32.gmra.mxu0 %vm93_vm0, %v25_v8  ;;  %6367 = vmatpush3.msra.mxu1 %v89_v9  ;;  %v7934_v16 = vld [vmem:[%s10075_s2 + $0xd8] sm:$0xff]  ;;  %v28_v17 = vld [vmem:[%s10073_s0 + $0x20] sm:$0xff]  ;;  %v7949_v18 = vld [vmem:[%s10075_s2 + $0xd0] sm:$0xff]  ;;  %s7786_s29 = scalar_lea.vmem %s5682_s28, 128  ;;  %p7791_p1 = scmp.lt.s32.totalorder %s5682_s28, %s5682_s28 }
   0xb   :  { %191 = vmatprep.mubr.f32.mxu0 %v7808_v6  ;;  %6369 = vmatmul.mubr.msk.f32.vlgmr.msra.gmra.mxu1 %vm93_vm0, %v24_v4  ;;  %v29_v19 = vld [vmem:[%s10073_s0 + $0x28] sm:$0xff]  ;;  %v7998_v21 = vld [vmem:[%s10075_s2 + $0xc0] sm:$0xff]  ;;  %p7787_p0 = scmp.ne.s32.totalorder %s5682_s28, %s7786_s29  ;;  %p7792_p2 = scmp.lt.s32.totalorder %s7786_s29, %s7786_s29 }
   0xc   :  { %6390 = vmatpush3.msra.mxu0 %v7889_v10  ;;  %6371 = vmatprep.mubr.msk.f32.mxu1 %vm7809_vm1, %v7808_v6  ;;  %v7968_v20 = vld [vmem:[%s10075_s2 + $0xc8] sm:$0xff] }
   0xd   :  { %6391 = vmatprep.subr.mxu0 %v7808_v6  ;;  %6408 = vmatprep.subr.mxu1 %v7808_v6  ;;  %p7793_p3 = por %p7792_p2, %p7791_p1 }
   0xe   :  { %5691 = vmatmul.mubr.msk.f32.gmra.mxu0 %vm93_vm0, %v26_v11  ;;  %6409 = vmatpush3.msra.mxu1 %v7889_v10 }
   0xf   :  { %197 = vmatprep.mubr.f32.mxu0 %v7808_v6  ;;  %6392 = vmatpush3.msra.mxu0 %v7903_v12  ;;  %p7794_p4 = pnand %p7793_p3, %p7787_p0 }
  0x10   :  { %6372 = vmatmul.mubr.msk.f32.gmra.mxu1 %vm93_vm0, %v25_v8  ;;  %6393 = vmatprep.subr.mxu0 %v7808_v6 }
  0x11   :  { %6394 = vmatpush3.msra.mxu0 %v7911_v13  ;;  %6374 = vmatprep.mubr.msk.f32.mxu1 %vm7809_vm1, %v7808_v6 }
  0x12   :  { %5692 = vmatmul.mubr.msk.f32.gmra.mxu0 %vm93_vm0, %v27_v14  ;;  %6395 = vmatprep.subr.mxu0 %v7808_v6 }
  0x13   :  { %203 = vmatprep.mubr.f32.mxu0 %v7808_v6  ;;  %6396 = vmatpush3.msra.mxu0 %v7924_v15 }
  0x14   :  { %6375 = vmatmul.mubr.msk.f32.gmra.mxu1 %vm93_vm0, %v26_v11  ;;  %6397 = vmatprep.subr.mxu0 %v7808_v6 }
  0x15   :  { %6377 = vmatprep.mubr.msk.f32.mxu1 %vm7809_vm1, %v7808_v6  ;;  %6398 = vmatpush3.msra.mxu0 %v7934_v16 }
  0x16   :  { %5693 = vmatmul.mubr.msk.f32.gmra.mxu0 %vm93_vm0, %v28_v17  ;;  %6410 = vmatprep.subr.mxu1 %v7808_v6 }
  0x17   :  { %209 = vmatprep.mubr.f32.mxu0 %v7808_v6  ;;  %6399 = vmatprep.subr.mxu0 %v7808_v6 }
  0x18   :  { %6378 = vmatmul.mubr.msk.f32.gmra.mxu1 %vm93_vm0, %v27_v14  ;;  %6400 = vmatpush3.msra.mxu0 %v7949_v18 }
  0x19   :  { %6411 = vmatpush3.msra.mxu1 %v7903_v12  ;;  %6380 = vmatprep.mubr.msk.f32.mxu1 %vm7809_vm1, %v7808_v6 }
  0x1a   :  { %5694 = vmatmul.mubr.msk.f32.gmra.mxu0 %vm93_vm0, %v29_v19  ;;  %6412 = vmatprep.subr.mxu1 %v7808_v6 }
  0x1b   :  { %6413 = vmatpush3.msra.mxu1 %v7911_v13  ;;  %6401 = vmatprep.subr.mxu0 %v7808_v6 }
  0x1c   :  { %6381 = vmatmul.mubr.msk.f32.gmra.mxu1 %vm93_vm0, %v28_v17  ;;  %6414 = vmatprep.subr.mxu1 %v7808_v6 }
  0x1d   :  { %6402 = vmatpush3.msra.mxu0 %v7968_v20  ;;  %6415 = vmatpush3.msra.mxu1 %v7924_v15 }
  0x1e   :  { %6383 = vmatprep.mubr.msk.f32.mxu1 %vm7809_vm1, %v7808_v6  ;;  %6416 = vmatprep.subr.mxu1 %v7808_v6 }
  0x1f   :  { %6403 = vmatprep.subr.mxu0 %v7808_v6  ;;  %6417 = vmatpush3.msra.mxu1 %v7934_v16 }
  0x20   :  { %6384 = vmatmul.mubr.msk.f32.gmra.mxu1 %vm93_vm0, %v29_v19  ;;  %6418 = vmatprep.subr.mxu1 %v7808_v6 }
  0x21   :  { %6419 = vmatpush3.msra.mxu1 %v7949_v18  ;;  %6386 = vmatprep.mubr.msk.f32.mxu1 %vm7809_vm1, %v7808_v6 }
  0x22   :  { %6405 = vmatprep.mubr.msk.f32.mxu0 %vm7809_vm1, %v7808_v6  ;;  %6420 = vmatprep.subr.mxu1 %v7808_v6 }
  0x23   :  { %6421 = vmatpush3.msra.mxu1 %v7968_v20  ;;  %6404 = vmatpush3.msra.mxu0 %v7998_v21 }
  0x24   :  { %6387 = vmatmul.mubr.msk.f32.gmra.mxu1 %vm93_vm0, %v7864_v5  ;;  %6422 = vmatprep.subr.mxu1 %v7808_v6 }
  0x25   :  { %6424 = vmatprep.mubr.msk.f32.mxu1 %vm7809_vm1, %v7808_v6  ;;  %6423 = vmatpush3.msra.mxu1 %v7998_v21 }
  0x26   :  { %6427 = vmatprep.subr.mxu0 %v7808_v6  ;;  %6446 = vmatprep.subr.mxu1 %v7808_v6 }
  0xc6   :  { %v8004_v22 = vpop.f32.mrf.mxu0  ;;  %v8006_v23 = vpop.f32.mrf.mxu1 }
  0xc8   :  { %v8008_v24 = vpop.f32.mrf.mxu0  ;;  %v8010_v25 = vpop.f32.mrf.mxu1 }
  0xc9   :  { %v322_v26 = vmul.f32 %v8008_v24, %v8004_v22  ;;  %v8016_v27 = vmul.f32 %v8006_v23, %v8008_v24  ;;  %v8020_v28 = vmul.f32 %v8010_v25, %v8006_v23  ;;  %v767_v14 = vmul.f32 %v8010_v25, %v8004_v22 }
  0xca   :  { %v8022_v29 = vpop.f32.mrf.mxu0 }
  0xcb   :  { %6406 = vmatmul.mubr.msk.f32.vlgmr.msra.gmra.mxu0 %vm323_vm2, %v322_v26  ;;  %v889_v17 = vmul.f32 %v8022_v29, %v8008_v24  ;;  %v8292_v19 = vpop.f32.mrf.mxu1 }
  0xcc   :  { %6428 = vmatpush3.msra.mxu0 %v7889_v10  ;;  %v8026_v30 = vpop.f32.mrf.mxu0  ;;  %6443 = vmatprep.mubr.msk.f32.mxu0 %vm7809_vm1, %v7808_v6 }
  0xcd   :  { %v397_v31 = vmul.f32 %v8026_v30, %v8004_v22  ;;  %6429 = vmatprep.subr.mxu0 %v7808_v6  ;;  %v8035_v32 = vmul.f32 %v8026_v30, %v8022_v29  ;;  %v8039_v33 = vmul.f32 %v8006_v23, %v8026_v30 }
  0xce   :  { %6430 = vmatpush3.msra.mxu0 %v7903_v12  ;;  %v8042_v34 = vpop.f32.mrf.mxu0 }
  0xcf   :  { %6431 = vmatprep.subr.mxu0 %v7808_v6  ;;  %6425 = vmatmul.mubr.msk.f32.vlgmr.msra.gmra.mxu1 %vm323_vm2, %v397_v31  ;;  %v8048_v35 = vmul.f32 %v8042_v34, %v8008_v24  ;;  %v8052_v36 = vmul.f32 %v8042_v34, %v8026_v30  ;;  %v8056_v37 = vmul.f32 %v8010_v25, %v8042_v34 }
  0xd0   :  { %6432 = vmatpush3.msra.mxu0 %v7911_v13  ;;  %6447 = vmatpush3.msra.mxu1 %v7889_v10  ;;  %v8060_v38 = vpop.f32.mrf.mxu0 }
  0xd1   :  { %6433 = vmatprep.subr.mxu0 %v7808_v6  ;;  %6448 = vmatprep.subr.mxu1 %v7808_v6  ;;  %v8066_v39 = vmul.f32 %v8060_v38, %v8042_v34  ;;  %v8074_v41 = vmul.f32 %v8006_v23, %v8060_v38  ;;  %v471_v58 = vmul.f32 %v8060_v38, %v8004_v22 }
  0xd2   :  { %6434 = vmatpush3.msra.mxu0 %v7924_v15  ;;  %6449 = vmatpush3.msra.mxu1 %v7903_v12  ;;  %v8070_v40 = vpop.f32.mrf.mxu0 }
  0xd3   :  { %6435 = vmatprep.subr.mxu0 %v7808_v6  ;;  %6450 = vmatprep.subr.mxu1 %v7808_v6  ;;  %v8080_v42 = vmul.f32 %v8070_v40, %v8008_v24  ;;  %v8084_v43 = vmul.f32 %v8070_v40, %v8026_v30  ;;  %v8088_v44 = vmul.f32 %v8070_v40, %v8060_v38 }
  0xd4   :  { %6436 = vmatpush3.msra.mxu0 %v7934_v16  ;;  %6451 = vmatpush3.msra.mxu1 %v7911_v13  ;;  %v201_v45 = vpop.f32.mrf.mxu0  ;;  %v8094_v46 = vmul.f32 %v8010_v25, %v8070_v40 }
  0xd5   :  { %6437 = vmatprep.subr.mxu0 %v7808_v6  ;;  %6452 = vmatprep.subr.mxu1 %v7808_v6  ;;  %v8099_v47 = vmul.f32 %v201_v45, %v8022_v29  ;;  %v8102_v48 = vmul.f32 %v201_v45, %v8042_v34  ;;  %v8109_v50 = vmul.f32 %v201_v45, %v8070_v40 }
  0xd6   :  { %6438 = vmatpush3.msra.mxu0 %v7949_v18  ;;  %6453 = vmatpush3.msra.mxu1 %v7924_v15  ;;  %v8106_v49 = vpop.f32.mrf.mxu0  ;;  %v8112_v51 = vmul.f32 %v8006_v23, %v201_v45  ;;  %v545_v7 = vmul.f32 %v201_v45, %v8004_v22 }
  0xd7   :  { %6439 = vmatprep.subr.mxu0 %v7808_v6  ;;  %6454 = vmatprep.subr.mxu1 %v7808_v6  ;;  %v8118_v52 = vmul.f32 %v8106_v49, %v8008_v24  ;;  %v8122_v53 = vmul.f32 %v8106_v49, %v8026_v30  ;;  %v8126_v54 = vmul.f32 %v8106_v49, %v8060_v38 }
  0xd8   :  { %6440 = vmatpush3.msra.mxu0 %v7968_v20  ;;  %6455 = vmatpush3.msra.mxu1 %v7934_v16  ;;  %v8130_v55 = vpop.f32.mrf.mxu0  ;;  %v8133_v56 = vmul.f32 %v8106_v49, %v201_v45  ;;  %v8137_v57 = vmul.f32 %v8010_v25, %v8106_v49 }
  0xd9   :  { %6441 = vmatprep.subr.mxu0 %v7808_v6  ;;  %6456 = vmatprep.subr.mxu1 %v7808_v6  ;;  %v8145_v59 = vmul.f32 %v8130_v55, %v8042_v34  ;;  %v8153_v61 = vmul.f32 %v8130_v55, %v8070_v40  ;;  %v8157_v62 = vmul.f32 %v8130_v55, %v8106_v49 }
  0xda   :  { %6442 = vmatpush3.msra.mxu0 %v7998_v21  ;;  %6457 = vmatpush3.msra.mxu1 %v7949_v18  ;;  %v8149_v60 = vpop.f32.mrf.mxu0  ;;  %v8161_v63 = vmul.f32 %v8006_v23, %v8130_v55  ;;  %v619_v8 = vmul.f32 %v8130_v55, %v8004_v22 }
  0xdb   :  { %6444 = vmatmul.mubr.msk.f32.vlgmr.msra.gmra.mxu0 %vm323_vm2, %v471_v58  ;;  %6458 = vmatprep.subr.mxu1 %v7808_v6  ;;  %v8167_v0 = vmul.f32 %v8149_v60, %v8008_v24  ;;  %v8171_v1 = vmul.f32 %v8149_v60, %v8026_v30  ;;  %v8175_v2 = vmul.f32 %v8149_v60, %v8060_v38 }
  0xdc   :  { %6465 = vmatprep.subr.mxu0 %v7808_v6  ;;  %6459 = vmatpush3.msra.mxu1 %v7968_v20  ;;  %v8180_v3 = vmul.f32 %v8149_v60, %v201_v45  ;;  %v8184_v4 = vmul.f32 %v8149_v60, %v8130_v55  ;;  %v8188_v5 = vmul.f32 %v8010_v25, %v8149_v60  ;;  %v8227_v9 = vpop.f32.mrf.mxu0 }
  0xdd   :  { %6466 = vmatpush3.msra.mxu0 %v7889_v10  ;;  %6460 = vmatprep.subr.mxu1 %v7808_v6  ;;  %v693_v11 = vmul.f32 %v8227_v9, %v8004_v22  ;;  %v6370_v22 = vpop.f32.mrf.mxu1  ;;  %v1037_v45 = vmul.f32 %v8060_v38, %v8022_v29 }
  0xde   :  { %6467 = vmatprep.subr.mxu0 %v7808_v6  ;;  %6461 = vmatpush3.msra.mxu1 %v7998_v21  ;;  %v1185_v22 = vmul.f32 %v8130_v55, %v8022_v29  ;;  %v1333_v55 = vmul.f32 %v8010_v25, %v8022_v29  ;;  %v1825_v25 = vmul.f32 %v8227_v9, %v8042_v34  ;;  %v8654_v34 = vld [vmem:[%s10075_s2 + $0xe0] sm:$0xff] }
  0xdf   :  { %6462 = vmatprep.mubr.msk.f32.mxu1 %vm7809_vm1, %v7808_v6  ;;  %6468 = vmatpush3.msra.mxu0 %v7903_v12  ;;  %v8302_v24 = vpop.f32.mrf.mxu1 }
  0xe0   :  { %6463 = vmatmul.mubr.msk.f32.vlgmr.msra.gmra.mxu1 %vm323_vm2, %v545_v7  ;;  %6469 = vmatprep.subr.mxu0 %v7808_v6 }
  0xe1   :  { %6484 = vmatprep.subr.mxu1 %v7808_v6  ;;  %6470 = vmatpush3.msra.mxu0 %v7911_v13  ;;  %v6373_v26 = vpop.f32.mrf.mxu1 }
  0xe2   :  { %6485 = vmatpush3.msra.mxu1 %v7889_v10  ;;  %6471 = vmatprep.subr.mxu0 %v7808_v6 }
  0xe3   :  { %6486 = vmatprep.subr.mxu1 %v7808_v6  ;;  %6472 = vmatpush3.msra.mxu0 %v7924_v15  ;;  %v8315_v30 = vpop.f32.mrf.mxu1 }
  0xe4   :  { %6487 = vmatpush3.msra.mxu1 %v7903_v12  ;;  %6473 = vmatprep.subr.mxu0 %v7808_v6 }
  0xe5   :  { %6488 = vmatprep.subr.mxu1 %v7808_v6  ;;  %6474 = vmatpush3.msra.mxu0 %v7934_v16  ;;  %v6376_v31 = vpop.f32.mrf.mxu1 }
  0xe6   :  { %6489 = vmatpush3.msra.mxu1 %v7911_v13  ;;  %6475 = vmatprep.subr.mxu0 %v7808_v6  ;;  %v2391_v31 = vmul.f32 %v8227_v9, %v8070_v40 }
  0xe7   :  { %6490 = vmatprep.subr.mxu1 %v7808_v6  ;;  %6476 = vmatpush3.msra.mxu0 %v7949_v18 }
  0xe8   :  { %6491 = vmatpush3.msra.mxu1 %v7924_v15  ;;  %6477 = vmatprep.subr.mxu0 %v7808_v6 }
  0xe9   :  { %6492 = vmatprep.subr.mxu1 %v7808_v6  ;;  %6478 = vmatpush3.msra.mxu0 %v7968_v20 }
  0xea   :  { %6493 = vmatpush3.msra.mxu1 %v7934_v16  ;;  %6479 = vmatprep.subr.mxu0 %v7808_v6 }
  0xeb   :  { %6494 = vmatprep.subr.mxu1 %v7808_v6  ;;  %6480 = vmatpush3.msra.mxu0 %v7998_v21 }
  0xec   :  { %6481 = vmatprep.mubr.msk.f32.mxu0 %vm7809_vm1, %v7808_v6  ;;  %6495 = vmatpush3.msra.mxu1 %v7949_v18 }
  0xed   :  { %6482 = vmatmul.mubr.msk.f32.vlgmr.msra.gmra.mxu0 %vm323_vm2, %v619_v8  ;;  %6496 = vmatprep.subr.mxu1 %v7808_v6 }
  0xee   :  { %6503 = vmatprep.subr.mxu0 %v7808_v6  ;;  %6497 = vmatpush3.msra.mxu1 %v7968_v20 }
  0xef   :  { %6504 = vmatpush3.msra.mxu0 %v7889_v10  ;;  %6498 = vmatprep.subr.mxu1 %v7808_v6 }
  0xf0   :  { %6505 = vmatprep.subr.mxu0 %v7808_v6  ;;  %6499 = vmatpush3.msra.mxu1 %v7998_v21 }
  0xf1   :  { %6500 = vmatprep.mubr.msk.f32.mxu1 %vm7809_vm1, %v7808_v6  ;;  %6506 = vmatpush3.msra.mxu0 %v7903_v12 }
  0xf2   :  { %6501 = vmatmul.mubr.msk.f32.vlgmr.msra.gmra.mxu1 %vm323_vm2, %v693_v11  ;;  %6507 = vmatprep.subr.mxu0 %v7808_v6 }
  0xf3   :  { %6522 = vmatprep.subr.mxu1 %v7808_v6  ;;  %6508 = vmatpush3.msra.mxu0 %v7911_v13 }
  0xf4   :  { %6523 = vmatpush3.msra.mxu1 %v7889_v10  ;;  %6509 = vmatprep.subr.mxu0 %v7808_v6 }
  0xf5   :  { %6524 = vmatprep.subr.mxu1 %v7808_v6  ;;  %6510 = vmatpush3.msra.mxu0 %v7924_v15 }
  0xf6   :  { %6525 = vmatpush3.msra.mxu1 %v7903_v12  ;;  %6511 = vmatprep.subr.mxu0 %v7808_v6 }
  0xf7   :  { %6526 = vmatprep.subr.mxu1 %v7808_v6  ;;  %6512 = vmatpush3.msra.mxu0 %v7934_v16 }
  0xf8   :  { %6527 = vmatpush3.msra.mxu1 %v7911_v13  ;;  %6513 = vmatprep.subr.mxu0 %v7808_v6 }
  0xf9   :  { %6528 = vmatprep.subr.mxu1 %v7808_v6  ;;  %6514 = vmatpush3.msra.mxu0 %v7949_v18 }
  0xfa   :  { %6529 = vmatpush3.msra.mxu1 %v7924_v15  ;;  %6515 = vmatprep.subr.mxu0 %v7808_v6 }
  0xfb   :  { %6530 = vmatprep.subr.mxu1 %v7808_v6  ;;  %6516 = vmatpush3.msra.mxu0 %v7968_v20 }
  0xfc   :  { %6531 = vmatpush3.msra.mxu1 %v7934_v16  ;;  %6517 = vmatprep.subr.mxu0 %v7808_v6 }
  0xfd   :  { %6532 = vmatprep.subr.mxu1 %v7808_v6  ;;  %6518 = vmatpush3.msra.mxu0 %v7998_v21 }
  0xfe   :  { %6519 = vmatprep.mubr.msk.f32.mxu0 %vm7809_vm1, %v7808_v6  ;;  %6533 = vmatpush3.msra.mxu1 %v7949_v18 }
  0xff   :  { %6520 = vmatmul.mubr.msk.f32.vlgmr.msra.gmra.mxu0 %vm323_vm2, %v767_v14  ;;  %6534 = vmatprep.subr.mxu1 %v7808_v6 }
 0x100   :  { %6541 = vmatprep.subr.mxu0 %v7808_v6  ;;  %6535 = vmatpush3.msra.mxu1 %v7968_v20 }
 0x101   :  { %6542 = vmatpush3.msra.mxu0 %v7889_v10  ;;  %6536 = vmatprep.subr.mxu1 %v7808_v6 }
 0x102   :  { %6543 = vmatprep.subr.mxu0 %v7808_v6  ;;  %6537 = vmatpush3.msra.mxu1 %v7998_v21 }
 0x103   :  { %6538 = vmatprep.mubr.msk.f32.mxu1 %vm7809_vm1, %v7808_v6  ;;  %6544 = vmatpush3.msra.mxu0 %v7903_v12 }
 0x104   :  { %6539 = vmatmul.mubr.msk.f32.vlgmr.msra.gmra.mxu1 %vm323_vm2, %v889_v17  ;;  %6545 = vmatprep.subr.mxu0 %v7808_v6 }
 0x105   :  { %6560 = vmatprep.subr.mxu1 %v7808_v6  ;;  %6546 = vmatpush3.msra.mxu0 %v7911_v13 }
 0x106   :  { %6561 = vmatpush3.msra.mxu1 %v7889_v10  ;;  %6547 = vmatprep.subr.mxu0 %v7808_v6 }
 0x107   :  { %6562 = vmatprep.subr.mxu1 %v7808_v6  ;;  %6548 = vmatpush3.msra.mxu0 %v7924_v15 }
 0x108   :  { %6563 = vmatpush3.msra.mxu1 %v7903_v12  ;;  %6549 = vmatprep.subr.mxu0 %v7808_v6 }
 0x109   :  { %6564 = vmatprep.subr.mxu1 %v7808_v6  ;;  %6550 = vmatpush3.msra.mxu0 %v7934_v16 }
 0x10a   :  { %6565 = vmatpush3.msra.mxu1 %v7911_v13  ;;  %6551 = vmatprep.subr.mxu0 %v7808_v6 }
 0x10b   :  { %6566 = vmatprep.subr.mxu1 %v7808_v6  ;;  %6552 = vmatpush3.msra.mxu0 %v7949_v18 }
 0x10c   :  { %6567 = vmatpush3.msra.mxu1 %v7924_v15  ;;  %6553 = vmatprep.subr.mxu0 %v7808_v6 }
 0x10d   :  { %6568 = vmatprep.subr.mxu1 %v7808_v6  ;;  %6554 = vmatpush3.msra.mxu0 %v7968_v20 }
 0x10e   :  { %6569 = vmatpush3.msra.mxu1 %v7934_v16  ;;  %6555 = vmatprep.subr.mxu0 %v7808_v6 }
 0x10f   :  { %6570 = vmatprep.subr.mxu1 %v7808_v6  ;;  %6556 = vmatpush3.msra.mxu0 %v7998_v21 }
 0x110   :  { %6557 = vmatprep.mubr.msk.f32.mxu0 %vm7809_vm1, %v7808_v6  ;;  %6571 = vmatpush3.msra.mxu1 %v7949_v18 }
 0x111   :  { %6558 = vmatmul.mubr.msk.f32.vlgmr.msra.gmra.mxu0 %vm323_vm2, %v8035_v32  ;;  %6572 = vmatprep.subr.mxu1 %v7808_v6  ;;  %v8331_v32 = vpop.f32.mrf.mxu1 }
 0x112   :  { %6579 = vmatprep.subr.mxu0 %v7808_v6  ;;  %6573 = vmatpush3.msra.mxu1 %v7968_v20 }
 0x113   :  { %6580 = vmatpush3.msra.mxu0 %v7889_v10  ;;  %6574 = vmatprep.subr.mxu1 %v7808_v6  ;;  %v6379_v58 = vpop.f32.mrf.mxu1 }
 0x114   :  { %6581 = vmatprep.subr.mxu0 %v7808_v6  ;;  %6575 = vmatpush3.msra.mxu1 %v7998_v21 }
 0x115   :  { %6576 = vmatprep.mubr.msk.f32.mxu1 %vm7809_vm1, %v7808_v6  ;;  %6582 = vmatpush3.msra.mxu0 %v7903_v12  ;;  %v8341_v38 = vpop.f32.mrf.mxu1 }
 0x116   :  { %6577 = vmatmul.mubr.msk.f32.vlgmr.msra.gmra.mxu1 %vm323_vm2, %v1037_v45  ;;  %6583 = vmatprep.subr.mxu0 %v7808_v6 }
 0x117   :  { %6598 = vmatprep.subr.mxu1 %v7808_v6  ;;  %6584 = vmatpush3.msra.mxu0 %v7911_v13  ;;  %v6382_v7 = vpop.f32.mrf.mxu1 }
 0x118   :  { %6599 = vmatpush3.msra.mxu1 %v7889_v10  ;;  %6585 = vmatprep.subr.mxu0 %v7808_v6 }
 0x119   :  { %6600 = vmatprep.subr.mxu1 %v7808_v6  ;;  %6586 = vmatpush3.msra.mxu0 %v7924_v15  ;;  %v8351_v8 = vpop.f32.mrf.mxu1 }
 0x11a   :  { %6601 = vmatpush3.msra.mxu1 %v7903_v12  ;;  %6587 = vmatprep.subr.mxu0 %v7808_v6 }
 0x11b   :  { %6602 = vmatprep.subr.mxu1 %v7808_v6  ;;  %6588 = vmatpush3.msra.mxu0 %v7934_v16  ;;  %v6385_v11 = vpop.f32.mrf.mxu1 }
 0x11c   :  { %6603 = vmatpush3.msra.mxu1 %v7911_v13  ;;  %6589 = vmatprep.subr.mxu0 %v7808_v6 }
 0x11d   :  { %6604 = vmatprep.subr.mxu1 %v7808_v6  ;;  %6590 = vmatpush3.msra.mxu0 %v7949_v18  ;;  %v8364_v14 = vpop.f32.mrf.mxu1 }
 0x11e   :  { %6605 = vmatpush3.msra.mxu1 %v7924_v15  ;;  %6591 = vmatprep.subr.mxu0 %v7808_v6 }
 0x11f   :  { %6606 = vmatprep.subr.mxu1 %v7808_v6  ;;  %6592 = vmatpush3.msra.mxu0 %v7968_v20  ;;  %v6388_v17 = vpop.f32.mrf.mxu1 }
 0x120   :  { %6607 = vmatpush3.msra.mxu1 %v7934_v16  ;;  %6593 = vmatprep.subr.mxu0 %v7808_v6 }
 0x121   :  { %6608 = vmatprep.subr.mxu1 %v7808_v6  ;;  %6594 = vmatpush3.msra.mxu0 %v7998_v21 }
 0x122   :  { %6595 = vmatprep.mubr.msk.f32.mxu0 %vm7809_vm1, %v7808_v6  ;;  %6609 = vmatpush3.msra.mxu1 %v7949_v18 }
 0x123   :  { %6596 = vmatmul.mubr.msk.f32.vlgmr.msra.gmra.mxu0 %vm323_vm2, %v8099_v47  ;;  %6610 = vmatprep.subr.mxu1 %v7808_v6  ;;  %v1259_v47 = vmul.f32 %v8227_v9, %v8022_v29  ;;  %v8645_v29 = vld [vmem:[%s10075_s2 + $0xe8] sm:$0xff] }
 0x124   :  { %6617 = vmatprep.subr.mxu0 %v7808_v6  ;;  %6611 = vmatpush3.msra.mxu1 %v7968_v20 }
 0x125   :  { %6618 = vmatpush3.msra.mxu0 %v7889_v10  ;;  %6612 = vmatprep.subr.mxu1 %v7808_v6 }
 0x126   :  { %6619 = vmatprep.subr.mxu0 %v7808_v6  ;;  %6613 = vmatpush3.msra.mxu1 %v7998_v21 }
 0x127   :  { %6614 = vmatprep.mubr.msk.f32.mxu1 %vm7809_vm1, %v7808_v6  ;;  %6620 = vmatpush3.msra.mxu0 %v7903_v12 }
 0x128   :  { %6615 = vmatmul.mubr.msk.f32.vlgmr.msra.gmra.mxu1 %vm323_vm2, %v1185_v22  ;;  %6621 = vmatprep.subr.mxu0 %v7808_v6 }
 0x129   :  { %6636 = vmatprep.subr.mxu1 %v7808_v6  ;;  %6622 = vmatpush3.msra.mxu0 %v7911_v13 }
 0x12a   :  { %6637 = vmatpush3.msra.mxu1 %v7889_v10  ;;  %6623 = vmatprep.subr.mxu0 %v7808_v6 }
 0x12b   :  { %6638 = vmatprep.subr.mxu1 %v7808_v6  ;;  %6624 = vmatpush3.msra.mxu0 %v7924_v15 }
 0x12c   :  { %6639 = vmatpush3.msra.mxu1 %v7903_v12  ;;  %6625 = vmatprep.subr.mxu0 %v7808_v6 }
 0x12d   :  { %6640 = vmatprep.subr.mxu1 %v7808_v6  ;;  %6626 = vmatpush3.msra.mxu0 %v7934_v16 }
 0x12e   :  { %6641 = vmatpush3.msra.mxu1 %v7911_v13  ;;  %6627 = vmatprep.subr.mxu0 %v7808_v6 }
 0x12f   :  { %6642 = vmatprep.subr.mxu1 %v7808_v6  ;;  %6628 = vmatpush3.msra.mxu0 %v7949_v18 }
 0x130   :  { %6643 = vmatpush3.msra.mxu1 %v7924_v15  ;;  %6629 = vmatprep.subr.mxu0 %v7808_v6 }
 0x131   :  { %6644 = vmatprep.subr.mxu1 %v7808_v6  ;;  %6630 = vmatpush3.msra.mxu0 %v7968_v20 }
 0x132   :  { %6645 = vmatpush3.msra.mxu1 %v7934_v16  ;;  %6631 = vmatprep.subr.mxu0 %v7808_v6 }
 0x133   :  { %6646 = vmatprep.subr.mxu1 %v7808_v6  ;;  %6632 = vmatpush3.msra.mxu0 %v7998_v21 }
 0x134   :  { %6633 = vmatprep.mubr.msk.f32.mxu0 %vm7809_vm1, %v7808_v6  ;;  %6647 = vmatpush3.msra.mxu1 %v7949_v18 }
 0x135   :  { %6634 = vmatmul.mubr.msk.f32.vlgmr.msra.gmra.mxu0 %vm323_vm2, %v1259_v47  ;;  %6648 = vmatprep.subr.mxu1 %v7808_v6 }
 0x136   :  { %6655 = vmatprep.subr.mxu0 %v7808_v6  ;;  %6649 = vmatpush3.msra.mxu1 %v7968_v20 }
 0x137   :  { %6656 = vmatpush3.msra.mxu0 %v7889_v10  ;;  %6650 = vmatprep.subr.mxu1 %v7808_v6 }
 0x138   :  { %6657 = vmatprep.subr.mxu0 %v7808_v6  ;;  %6651 = vmatpush3.msra.mxu1 %v7998_v21 }
 0x139   :  { %6652 = vmatprep.mubr.msk.f32.mxu1 %vm7809_vm1, %v7808_v6  ;;  %6658 = vmatpush3.msra.mxu0 %v7903_v12 }
 0x13a   :  { %6653 = vmatmul.mubr.msk.f32.vlgmr.msra.gmra.mxu1 %vm323_vm2, %v1333_v55  ;;  %6659 = vmatprep.subr.mxu0 %v7808_v6 }
 0x13b   :  { %6674 = vmatprep.subr.mxu1 %v7808_v6  ;;  %6660 = vmatpush3.msra.mxu0 %v7911_v13 }
 0x13c   :  { %6675 = vmatpush3.msra.mxu1 %v7889_v10  ;;  %6661 = vmatprep.subr.mxu0 %v7808_v6 }
 0x13d   :  { %6676 = vmatprep.subr.mxu1 %v7808_v6  ;;  %6662 = vmatpush3.msra.mxu0 %v7924_v15 }
 0x13e   :  { %6677 = vmatpush3.msra.mxu1 %v7903_v12  ;;  %6663 = vmatprep.subr.mxu0 %v7808_v6 }
 0x13f   :  { %6678 = vmatprep.subr.mxu1 %v7808_v6  ;;  %6664 = vmatpush3.msra.mxu0 %v7934_v16 }
 0x140   :  { %6679 = vmatpush3.msra.mxu1 %v7911_v13  ;;  %6665 = vmatprep.subr.mxu0 %v7808_v6 }
 0x141   :  { %6680 = vmatprep.subr.mxu1 %v7808_v6  ;;  %6666 = vmatpush3.msra.mxu0 %v7949_v18 }
 0x142   :  { %6681 = vmatpush3.msra.mxu1 %v7924_v15  ;;  %6667 = vmatprep.subr.mxu0 %v7808_v6 }
 0x143   :  { %6682 = vmatprep.subr.mxu1 %v7808_v6  ;;  %6668 = vmatpush3.msra.mxu0 %v7968_v20 }
 0x144   :  { %6683 = vmatpush3.msra.mxu1 %v7934_v16  ;;  %6669 = vmatprep.subr.mxu0 %v7808_v6 }
 0x145   :  { %6684 = vmatprep.subr.mxu1 %v7808_v6  ;;  %6670 = vmatpush3.msra.mxu0 %v7998_v21 }
 0x146   :  { %6671 = vmatprep.mubr.msk.f32.mxu0 %vm7809_vm1, %v7808_v6  ;;  %6685 = vmatpush3.msra.mxu1 %v7949_v18 }
 0x147   :  { %6672 = vmatmul.mubr.msk.f32.vlgmr.msra.gmra.mxu0 %vm323_vm2, %v8048_v35  ;;  %6686 = vmatprep.subr.mxu1 %v7808_v6  ;;  %v8663_v35 = vld [vmem:[%s10075_s2 + $0xd8] sm:$0xff] }
 0x148   :  { %6693 = vmatprep.subr.mxu0 %v7808_v6  ;;  %6687 = vmatpush3.msra.mxu1 %v7968_v20 }
 0x149   :  { %6694 = vmatpush3.msra.mxu0 %v7889_v10  ;;  %6688 = vmatprep.subr.mxu1 %v7808_v6 }
 0x14a   :  { %6695 = vmatprep.subr.mxu0 %v7808_v6  ;;  %6689 = vmatpush3.msra.mxu1 %v7998_v21 }
 0x14b   :  { %6690 = vmatprep.mubr.msk.f32.mxu1 %vm7809_vm1, %v7808_v6  ;;  %6696 = vmatpush3.msra.mxu0 %v7903_v12 }
 0x14c   :  { %6691 = vmatmul.mubr.msk.f32.vlgmr.msra.gmra.mxu1 %vm323_vm2, %v8052_v36  ;;  %6697 = vmatprep.subr.mxu0 %v7808_v6  ;;  %v8672_v36 = vld [vmem:[%s10075_s2 + $0xd0] sm:$0xff] }
 0x14d   :  { %6712 = vmatprep.subr.mxu1 %v7808_v6  ;;  %6698 = vmatpush3.msra.mxu0 %v7911_v13 }
 0x14e   :  { %6713 = vmatpush3.msra.mxu1 %v7889_v10  ;;  %6699 = vmatprep.subr.mxu0 %v7808_v6 }
 0x14f   :  { %6714 = vmatprep.subr.mxu1 %v7808_v6  ;;  %6700 = vmatpush3.msra.mxu0 %v7924_v15 }
 0x150   :  { %6715 = vmatpush3.msra.mxu1 %v7903_v12  ;;  %6701 = vmatprep.subr.mxu0 %v7808_v6 }
 0x151   :  { %6716 = vmatprep.subr.mxu1 %v7808_v6  ;;  %6702 = vmatpush3.msra.mxu0 %v7934_v16 }
 0x152   :  { %6717 = vmatpush3.msra.mxu1 %v7911_v13  ;;  %6703 = vmatprep.subr.mxu0 %v7808_v6 }
 0x153   :  { %6718 = vmatprep.subr.mxu1 %v7808_v6  ;;  %6704 = vmatpush3.msra.mxu0 %v7949_v18 }
 0x154   :  { %6719 = vmatpush3.msra.mxu1 %v7924_v15  ;;  %6705 = vmatprep.subr.mxu0 %v7808_v6 }
 0x155   :  { %6720 = vmatprep.subr.mxu1 %v7808_v6  ;;  %6706 = vmatpush3.msra.mxu0 %v7968_v20 }
 0x156   :  { %6721 = vmatpush3.msra.mxu1 %v7934_v16  ;;  %6707 = vmatprep.subr.mxu0 %v7808_v6 }
 0x157   :  { %6722 = vmatprep.subr.mxu1 %v7808_v6  ;;  %6708 = vmatpush3.msra.mxu0 %v7998_v21 }
 0x158   :  { %6709 = vmatprep.mubr.msk.f32.mxu0 %vm7809_vm1, %v7808_v6  ;;  %6723 = vmatpush3.msra.mxu1 %v7949_v18 }
 0x159   :  { %6710 = vmatmul.mubr.msk.f32.vlgmr.msra.gmra.mxu0 %vm323_vm2, %v8066_v39  ;;  %6724 = vmatprep.subr.mxu1 %v7808_v6 }
 0x15a   :  { %6731 = vmatprep.subr.mxu0 %v7808_v6  ;;  %6725 = vmatpush3.msra.mxu1 %v7968_v20 }
 0x15b   :  { %6732 = vmatpush3.msra.mxu0 %v7889_v10  ;;  %6726 = vmatprep.subr.mxu1 %v7808_v6 }
 0x15c   :  { %6733 = vmatprep.subr.mxu0 %v7808_v6  ;;  %6727 = vmatpush3.msra.mxu1 %v7998_v21 }
 0x15d   :  { %6728 = vmatprep.mubr.msk.f32.mxu1 %vm7809_vm1, %v7808_v6  ;;  %6734 = vmatpush3.msra.mxu0 %v7903_v12 }
 0x15e   :  { %6729 = vmatmul.mubr.msk.f32.vlgmr.msra.gmra.mxu1 %vm323_vm2, %v8102_v48  ;;  %6735 = vmatprep.subr.mxu0 %v7808_v6 }
 0x15f   :  { %6750 = vmatprep.subr.mxu1 %v7808_v6  ;;  %6736 = vmatpush3.msra.mxu0 %v7911_v13 }
 0x160   :  { %6751 = vmatpush3.msra.mxu1 %v7889_v10  ;;  %6737 = vmatprep.subr.mxu0 %v7808_v6 }
 0x161   :  { %6752 = vmatprep.subr.mxu1 %v7808_v6  ;;  %6738 = vmatpush3.msra.mxu0 %v7924_v15 }
 0x162   :  { %6753 = vmatpush3.msra.mxu1 %v7903_v12  ;;  %6739 = vmatprep.subr.mxu0 %v7808_v6 }
 0x163   :  { %6754 = vmatprep.subr.mxu1 %v7808_v6  ;;  %6740 = vmatpush3.msra.mxu0 %v7934_v16 }
 0x164   :  { %6755 = vmatpush3.msra.mxu1 %v7911_v13  ;;  %6741 = vmatprep.subr.mxu0 %v7808_v6 }
 0x165   :  { %6756 = vmatprep.subr.mxu1 %v7808_v6  ;;  %6742 = vmatpush3.msra.mxu0 %v7949_v18 }
 0x166   :  { %6757 = vmatpush3.msra.mxu1 %v7924_v15  ;;  %6743 = vmatprep.subr.mxu0 %v7808_v6 }
 0x167   :  { %6758 = vmatprep.subr.mxu1 %v7808_v6  ;;  %6744 = vmatpush3.msra.mxu0 %v7968_v20 }
 0x168   :  { %6759 = vmatpush3.msra.mxu1 %v7934_v16  ;;  %6745 = vmatprep.subr.mxu0 %v7808_v6 }
 0x169   :  { %6760 = vmatprep.subr.mxu1 %v7808_v6  ;;  %6746 = vmatpush3.msra.mxu0 %v7998_v21 }
 0x16a   :  { %6747 = vmatprep.mubr.msk.f32.mxu0 %vm7809_vm1, %v7808_v6  ;;  %6761 = vmatpush3.msra.mxu1 %v7949_v18 }
 0x16b   :  { %6748 = vmatmul.mubr.msk.f32.vlgmr.msra.gmra.mxu0 %vm323_vm2, %v8145_v59  ;;  %6762 = vmatprep.subr.mxu1 %v7808_v6 }
 0x16c   :  { %6769 = vmatprep.subr.mxu0 %v7808_v6  ;;  %6763 = vmatpush3.msra.mxu1 %v7968_v20 }
 0x16d   :  { %6770 = vmatpush3.msra.mxu0 %v7889_v10  ;;  %6764 = vmatprep.subr.mxu1 %v7808_v6 }
 0x16e   :  { %6771 = vmatprep.subr.mxu0 %v7808_v6  ;;  %6765 = vmatpush3.msra.mxu1 %v7998_v21 }
 0x16f   :  { %6766 = vmatprep.mubr.msk.f32.mxu1 %vm7809_vm1, %v7808_v6  ;;  %6772 = vmatpush3.msra.mxu0 %v7903_v12 }
 0x170   :  { %6767 = vmatmul.mubr.msk.f32.vlgmr.msra.gmra.mxu1 %vm323_vm2, %v1825_v25  ;;  %6773 = vmatprep.subr.mxu0 %v7808_v6 }
 0x171   :  { %6788 = vmatprep.subr.mxu1 %v7808_v6  ;;  %6774 = vmatpush3.msra.mxu0 %v7911_v13 }
 0x172   :  { %6789 = vmatpush3.msra.mxu1 %v7889_v10  ;;  %6775 = vmatprep.subr.mxu0 %v7808_v6 }
 0x173   :  { %6790 = vmatprep.subr.mxu1 %v7808_v6  ;;  %6776 = vmatpush3.msra.mxu0 %v7924_v15 }
 0x174   :  { %6791 = vmatpush3.msra.mxu1 %v7903_v12  ;;  %6777 = vmatprep.subr.mxu0 %v7808_v6 }
 0x175   :  { %6792 = vmatprep.subr.mxu1 %v7808_v6  ;;  %6778 = vmatpush3.msra.mxu0 %v7934_v16 }
 0x176   :  { %6793 = vmatpush3.msra.mxu1 %v7911_v13  ;;  %6779 = vmatprep.subr.mxu0 %v7808_v6 }
 0x177   :  { %6794 = vmatprep.subr.mxu1 %v7808_v6  ;;  %6780 = vmatpush3.msra.mxu0 %v7949_v18 }
 0x178   :  { %6795 = vmatpush3.msra.mxu1 %v7924_v15  ;;  %6781 = vmatprep.subr.mxu0 %v7808_v6 }
 0x179   :  { %6796 = vmatprep.subr.mxu1 %v7808_v6  ;;  %6782 = vmatpush3.msra.mxu0 %v7968_v20 }
 0x17a   :  { %6797 = vmatpush3.msra.mxu1 %v7934_v16  ;;  %6783 = vmatprep.subr.mxu0 %v7808_v6 }
 0x17b   :  { %6798 = vmatprep.subr.mxu1 %v7808_v6  ;;  %6784 = vmatpush3.msra.mxu0 %v7998_v21 }
 0x17c   :  { %6785 = vmatprep.mubr.msk.f32.mxu0 %vm7809_vm1, %v7808_v6  ;;  %6799 = vmatpush3.msra.mxu1 %v7949_v18 }
 0x17d   :  { %6786 = vmatmul.mubr.msk.f32.vlgmr.msra.gmra.mxu0 %vm323_vm2, %v8056_v37  ;;  %6800 = vmatprep.subr.mxu1 %v7808_v6 }
 0x17e   :  { %6807 = vmatprep.subr.mxu0 %v7808_v6  ;;  %6801 = vmatpush3.msra.mxu1 %v7968_v20 }
 0x17f   :  { %6808 = vmatpush3.msra.mxu0 %v7889_v10  ;;  %6802 = vmatprep.subr.mxu1 %v7808_v6 }
 0x180   :  { %6809 = vmatprep.subr.mxu0 %v7808_v6  ;;  %6803 = vmatpush3.msra.mxu1 %v7998_v21 }
 0x181   :  { %6804 = vmatprep.mubr.msk.f32.mxu1 %vm7809_vm1, %v7808_v6  ;;  %6810 = vmatpush3.msra.mxu0 %v7903_v12 }
 0x182   :  { %6805 = vmatmul.mubr.msk.f32.vlgmr.msra.gmra.mxu1 %vm323_vm2, %v8080_v42  ;;  %6811 = vmatprep.subr.mxu0 %v7808_v6  ;;  %v8684_v42 = vld [vmem:[%s10075_s2 + $0xc8] sm:$0xff] }
 0x183   :  { %6826 = vmatprep.subr.mxu1 %v7808_v6  ;;  %6812 = vmatpush3.msra.mxu0 %v7911_v13 }
 0x184   :  { %6827 = vmatpush3.msra.mxu1 %v7889_v10  ;;  %6813 = vmatprep.subr.mxu0 %v7808_v6 }
 0x185   :  { %6828 = vmatprep.subr.mxu1 %v7808_v6  ;;  %6814 = vmatpush3.msra.mxu0 %v7924_v15 }
 0x186   :  { %6829 = vmatpush3.msra.mxu1 %v7903_v12  ;;  %6815 = vmatprep.subr.mxu0 %v7808_v6 }
 0x187   :  { %6830 = vmatprep.subr.mxu1 %v7808_v6  ;;  %6816 = vmatpush3.msra.mxu0 %v7934_v16 }
 0x188   :  { %6831 = vmatpush3.msra.mxu1 %v7911_v13  ;;  %6817 = vmatprep.subr.mxu0 %v7808_v6 }
 0x189   :  { %6832 = vmatprep.subr.mxu1 %v7808_v6  ;;  %6818 = vmatpush3.msra.mxu0 %v7949_v18 }
 0x18a   :  { %6833 = vmatpush3.msra.mxu1 %v7924_v15  ;;  %6819 = vmatprep.subr.mxu0 %v7808_v6 }
 0x18b   :  { %6834 = vmatprep.subr.mxu1 %v7808_v6  ;;  %6820 = vmatpush3.msra.mxu0 %v7968_v20  ;;  %v8603_v10 = vpop.f32.mrf.mxu0 }
 0x18c   :  { %6835 = vmatpush3.msra.mxu1 %v7934_v16  ;;  %6821 = vmatprep.subr.mxu0 %v7808_v6  ;;  %v8624_v16 = vld [vmem:[%s10075_s2 + $0xf8] sm:$0xff] }
 0x18d   :  { %6836 = vmatprep.subr.mxu1 %v7808_v6  ;;  %6822 = vmatpush3.msra.mxu0 %v7998_v21  ;;  %v6407_v12 = vpop.f32.mrf.mxu0 }
 0x18e   :  { %6823 = vmatprep.mubr.msk.f32.mxu0 %vm7809_vm1, %v7808_v6  ;;  %6837 = vmatpush3.msra.mxu1 %v7949_v18 }
 0x18f   :  { %6824 = vmatmul.mubr.msk.f32.vlgmr.msra.gmra.mxu0 %vm323_vm2, %v8084_v43  ;;  %6838 = vmatprep.subr.mxu1 %v7808_v6  ;;  %v8615_v13 = vpop.f32.mrf.mxu1 }
 0x190   :  { %6845 = vmatprep.subr.mxu0 %v7808_v6  ;;  %6839 = vmatpush3.msra.mxu1 %v7968_v20  ;;  %v841_v15 = vmax.f32 %v8603_v10, %v8615_v13  ;;  %v8635_v20 = vld [vmem:[%s10075_s2 + $0xf0] sm:$0xff] }
 0x191   :  { %6846 = vmatpush3.msra.mxu0 %v8624_v16  ;;  %6840 = vmatprep.subr.mxu1 %v7808_v6  ;;  %v6426_v18 = vpop.f32.mrf.mxu1 }
 0x192   :  { %6847 = vmatprep.subr.mxu0 %v7808_v6  ;;  %6841 = vmatpush3.msra.mxu1 %v7998_v21 }
 0x193   :  { %6842 = vmatprep.mubr.msk.f32.mxu1 %vm7809_vm1, %v7808_v6  ;;  %6848 = vmatpush3.msra.mxu0 %v8635_v20 }
 0x194   :  { %6843 = vmatmul.mubr.msk.f32.vlgmr.msra.gmra.mxu1 %vm323_vm2, %v8088_v44  ;;  %6849 = vmatprep.subr.mxu0 %v7808_v6 }
 0x195   :  { %6864 = vmatprep.subr.mxu1 %v7808_v6  ;;  %6850 = vmatpush3.msra.mxu0 %v8645_v29 }
 0x196   :  { %6865 = vmatpush3.msra.mxu1 %v8624_v16  ;;  %6851 = vmatprep.subr.mxu0 %v7808_v6 }
 0x197   :  { %6866 = vmatprep.subr.mxu1 %v7808_v6  ;;  %6852 = vmatpush3.msra.mxu0 %v8654_v34 }
 0x198   :  { %6867 = vmatpush3.msra.mxu1 %v8635_v20  ;;  %6853 = vmatprep.subr.mxu0 %v7808_v6 }
 0x199   :  { %6868 = vmatprep.subr.mxu1 %v7808_v6  ;;  %6854 = vmatpush3.msra.mxu0 %v8663_v35 }
 0x19a   :  { %6869 = vmatpush3.msra.mxu1 %v8645_v29  ;;  %6855 = vmatprep.subr.mxu0 %v7808_v6 }
 0x19b   :  { %6870 = vmatprep.subr.mxu1 %v7808_v6  ;;  %6856 = vmatpush3.msra.mxu0 %v8672_v36  ;;  %v8675_v37 = vpop.f32.mrf.mxu0 }
 0x19c   :  { %6871 = vmatpush3.msra.mxu1 %v8654_v34  ;;  %6857 = vmatprep.subr.mxu0 %v7808_v6  ;;  %v842_v39 = vmax.f32 %v841_v15, %v8675_v37 }
 0x19d   :  { %6872 = vmatprep.subr.mxu1 %v7808_v6  ;;  %6858 = vmatpush3.msra.mxu0 %v8684_v42  ;;  %v6445_v43 = vpop.f32.mrf.mxu0 }
 0x19e   :  { %6873 = vmatpush3.msra.mxu1 %v8663_v35  ;;  %6859 = vmatprep.subr.mxu0 %v7808_v6 }
 0x19f   :  { %6874 = vmatprep.subr.mxu1 %v7808_v6  ;;  %6860 = vmatpush3.msra.mxu0 %v7998_v21  ;;  %v8708_v21 = vld [vmem:[%s10075_s2 + $0xc0] sm:$0xff] }
 0x1a0   :  { %6861 = vmatprep.mubr.msk.f32.mxu0 %vm7809_vm1, %v7808_v6  ;;  %6875 = vmatpush3.msra.mxu1 %v8672_v36  ;;  %v8694_v44 = vpop.f32.mrf.mxu1 }
 0x1a1   :  { %6862 = vmatmul.mubr.msk.f32.vlgmr.msra.gmra.mxu0 %vm323_vm2, %v8109_v50  ;;  %6876 = vmatprep.subr.mxu1 %v7808_v6  ;;  %v843_v48 = vmax.f32 %v842_v39, %v8694_v44 }
 0x1a2   :  { %6883 = vmatprep.subr.mxu0 %v7808_v6  ;;  %6877 = vmatpush3.msra.mxu1 %v8684_v42  ;;  %v6464_v59 = vpop.f32.mrf.mxu1 }
 0x1a3   :  { %6884 = vmatpush3.msra.mxu0 %v8624_v16  ;;  %6878 = vmatprep.subr.mxu1 %v7808_v6 }
 0x1a4   :  { %6885 = vmatprep.subr.mxu0 %v7808_v6  ;;  %6879 = vmatpush3.msra.mxu1 %v8708_v21 }
 0x1a5   :  { %6880 = vmatprep.mubr.msk.f32.mxu1 %vm7809_vm1, %v7808_v6  ;;  %6886 = vmatpush3.msra.mxu0 %v8635_v20 }
 0x1a6   :  { %6881 = vmatmul.mubr.msk.f32.vlgmr.msra.gmra.mxu1 %vm323_vm2, %v8153_v61  ;;  %6887 = vmatprep.subr.mxu0 %v7808_v6 }
 0x1a7   :  { %6902 = vmatprep.subr.mxu1 %v7808_v6  ;;  %6888 = vmatpush3.msra.mxu0 %v8645_v29 }
 0x1a8   :  { %6903 = vmatpush3.msra.mxu1 %v8624_v16  ;;  %6889 = vmatprep.subr.mxu0 %v7808_v6 }
 0x1a9   :  { %6904 = vmatprep.subr.mxu1 %v7808_v6  ;;  %6890 = vmatpush3.msra.mxu0 %v8654_v34 }
 0x1aa   :  { %6905 = vmatpush3.msra.mxu1 %v8635_v20  ;;  %6891 = vmatprep.subr.mxu0 %v7808_v6 }
 0x1ab   :  { %6906 = vmatprep.subr.mxu1 %v7808_v6  ;;  %6892 = vmatpush3.msra.mxu0 %v8663_v35 }
 0x1ac   :  { %6907 = vmatpush3.msra.mxu1 %v8645_v29  ;;  %6893 = vmatprep.subr.mxu0 %v7808_v6 }
 0x1ad   :  { %6908 = vmatprep.subr.mxu1 %v7808_v6  ;;  %6894 = vmatpush3.msra.mxu0 %v8672_v36  ;;  %v8731_v50 = vpop.f32.mrf.mxu0 }
 0x1ae   :  { %6909 = vmatpush3.msra.mxu1 %v8654_v34  ;;  %6895 = vmatprep.subr.mxu0 %v7808_v6  ;;  %v844_v61 = vmax.f32 %v843_v48, %v8731_v50 }
 0x1af   :  { %6910 = vmatprep.subr.mxu1 %v7808_v6  ;;  %6896 = vmatpush3.msra.mxu0 %v8684_v42  ;;  %v6483_v26 = vpop.f32.mrf.mxu0 }
 0x1b0   :  { %6911 = vmatpush3.msra.mxu1 %v8663_v35  ;;  %6897 = vmatprep.subr.mxu0 %v7808_v6 }
 0x1b1   :  { %6912 = vmatprep.subr.mxu1 %v7808_v6  ;;  %6898 = vmatpush3.msra.mxu0 %v8708_v21 }
 0x1b2   :  { %6899 = vmatprep.mubr.msk.f32.mxu0 %vm7809_vm1, %v7808_v6  ;;  %6913 = vmatpush3.msra.mxu1 %v8672_v36  ;;  %v8747_v45 = vpop.f32.mrf.mxu1 }
 0x1b3   :  { %6900 = vmatmul.mubr.msk.f32.vlgmr.msra.gmra.mxu0 %vm323_vm2, %v2391_v31  ;;  %6914 = vmatprep.subr.mxu1 %v7808_v6  ;;  %v845_v58 = vmax.f32 %v844_v61, %v8747_v45 }
 0x1b4   :  { %6921 = vmatprep.subr.mxu0 %v7808_v6  ;;  %6915 = vmatpush3.msra.mxu1 %v8684_v42  ;;  %v6502_v7 = vpop.f32.mrf.mxu1 }
 0x1b5   :  { %6922 = vmatpush3.msra.mxu0 %v8624_v16  ;;  %6916 = vmatprep.subr.mxu1 %v7808_v6 }
 0x1b6   :  { %6923 = vmatprep.subr.mxu0 %v7808_v6  ;;  %6917 = vmatpush3.msra.mxu1 %v8708_v21 }
 0x1b7   :  { %6918 = vmatprep.mubr.msk.f32.mxu1 %vm7809_vm1, %v7808_v6  ;;  %6924 = vmatpush3.msra.mxu0 %v8635_v20 }
 0x1b8   :  { %6919 = vmatmul.mubr.msk.f32.vlgmr.msra.gmra.mxu1 %vm323_vm2, %v8094_v46  ;;  %6925 = vmatprep.subr.mxu0 %v7808_v6 }
 0x1b9   :  { %6940 = vmatprep.subr.mxu1 %v7808_v6  ;;  %6926 = vmatpush3.msra.mxu0 %v8645_v29 }
 0x1ba   :  { %6941 = vmatpush3.msra.mxu1 %v8624_v16  ;;  %6927 = vmatprep.subr.mxu0 %v7808_v6 }
 0x1bb   :  { %6942 = vmatprep.subr.mxu1 %v7808_v6  ;;  %6928 = vmatpush3.msra.mxu0 %v8654_v34 }
 0x1bc   :  { %6943 = vmatpush3.msra.mxu1 %v8635_v20  ;;  %6929 = vmatprep.subr.mxu0 %v7808_v6 }
 0x1bd   :  { %6944 = vmatprep.subr.mxu1 %v7808_v6  ;;  %6930 = vmatpush3.msra.mxu0 %v8663_v35 }
 0x1be   :  { %6945 = vmatpush3.msra.mxu1 %v8645_v29  ;;  %6931 = vmatprep.subr.mxu0 %v7808_v6 }
 0x1bf   :  { %6946 = vmatprep.subr.mxu1 %v7808_v6  ;;  %6932 = vmatpush3.msra.mxu0 %v8672_v36  ;;  %v837_v40 = vpop.f32.mrf.mxu0 }
 0x1c0   :  { %6947 = vmatpush3.msra.mxu1 %v8654_v34  ;;  %6933 = vmatprep.subr.mxu0 %v7808_v6  ;;  %v846_v46 = vmax.f32 %v845_v58, %v837_v40 }
 0x1c1   :  { %6948 = vmatprep.subr.mxu1 %v7808_v6  ;;  %6934 = vmatpush3.msra.mxu0 %v8684_v42  ;;  %v6521_v11 = vpop.f32.mrf.mxu0 }
 0x1c2   :  { %6949 = vmatpush3.msra.mxu1 %v8663_v35  ;;  %6935 = vmatprep.subr.mxu0 %v7808_v6  ;;  %v847_v17 = vsub.f32 %v8603_v10, %v846_v46  ;;  %v851_v22 = vsub.f32 %v8615_v13, %v846_v46  ;;  %v857_v47 = vsub.f32 %v8675_v37, %v846_v46 }
 0x1c3   :  { %6950 = vmatprep.subr.mxu1 %v7808_v6  ;;  %6936 = vmatpush3.msra.mxu0 %v8708_v21  ;;  %v863_v55 = vsub.f32 %v8694_v44, %v846_v46  ;;  %v869_v25 = vsub.f32 %v8731_v50, %v846_v46  ;;  %v875_v12 = vsub.f32 %v8747_v45, %v846_v46 }
 0x1c4   :  { %6937 = vmatprep.mubr.msk.f32.mxu0 %vm7809_vm1, %v7808_v6  ;;  %6951 = vmatpush3.msra.mxu1 %v8672_v36  ;;  %v848_v10 = vmul.f32 1.442695, %v847_v17  ;;  %v852_v15 = vmul.f32 1.442695, %v851_v22  ;;  %v858_v13 = vmul.f32 1.442695, %v857_v47  ;;  %v881_v18 = vsub.f32 %v837_v40, %v846_v46  ;;  %v8795_v37 = vpop.f32.mrf.mxu1 }
 0x1c5   :  { %6938 = vmatmul.mubr.msk.f32.vlgmr.msra.gmra.mxu0 %vm323_vm2, %v8118_v52  ;;  %6952 = vmatprep.subr.mxu1 %v7808_v6  ;;  %v864_v39 = vmul.f32 1.442695, %v863_v55  ;;  %v870_v44 = vmul.f32 1.442695, %v869_v25  ;;  %v876_v52 = vmul.f32 1.442695, %v875_v12 }
 0x1c6   :  { %6959 = vmatprep.subr.mxu0 %v7808_v6  ;;  %6953 = vmatpush3.msra.mxu1 %v8684_v42  ;;  %7606 = vpow2.f32 %v848_v10  ;;  %v6540_v43 = vpop.f32.mrf.mxu1  ;;  %v882_v48 = vmul.f32 1.442695, %v881_v18 }
 0x1c7   :  { %6960 = vmatpush3.msra.mxu0 %v8624_v16  ;;  %6954 = vmatprep.subr.mxu1 %v7808_v6  ;;  %7608 = vpow2.f32 %v852_v15 }
 0x1c8   :  { %6961 = vmatprep.subr.mxu0 %v7808_v6  ;;  %6955 = vmatpush3.msra.mxu1 %v8708_v21  ;;  %7610 = vpow2.f32 %v858_v13 }
 0x1c9   :  { %6956 = vmatprep.mubr.msk.f32.mxu1 %vm7809_vm1, %v7808_v6  ;;  %6962 = vmatpush3.msra.mxu0 %v8635_v20  ;;  %7612 = vpow2.f32 %v864_v39 }
 0x1ca   :  { %6957 = vmatmul.mubr.msk.f32.vlgmr.msra.gmra.mxu1 %vm323_vm2, %v8122_v53  ;;  %6963 = vmatprep.subr.mxu0 %v7808_v6  ;;  %7614 = vpow2.f32 %v870_v44 }
 0x1cb   :  { %6978 = vmatprep.subr.mxu1 %v7808_v6  ;;  %6964 = vmatpush3.msra.mxu0 %v8645_v29  ;;  %7616 = vpow2.f32 %v876_v52 }
 0x1cc   :  { %6979 = vmatpush3.msra.mxu1 %v8624_v16  ;;  %6965 = vmatprep.subr.mxu0 %v7808_v6  ;;  %7618 = vpow2.f32 %v882_v48 }
 0x1cd   :  { %6980 = vmatprep.subr.mxu1 %v7808_v6  ;;  %6966 = vmatpush3.msra.mxu0 %v8654_v34 }
 0x1ce   :  { %6981 = vmatpush3.msra.mxu1 %v8635_v20  ;;  %6967 = vmatprep.subr.mxu0 %v7808_v6 }
 0x1cf   :  { %6982 = vmatprep.subr.mxu1 %v7808_v6  ;;  %6968 = vmatpush3.msra.mxu0 %v8663_v35 }
 0x1d0   :  { %6983 = vmatpush3.msra.mxu1 %v8645_v29  ;;  %6969 = vmatprep.subr.mxu0 %v7808_v6 }
 0x1d1   :  { %6984 = vmatprep.subr.mxu1 %v7808_v6  ;;  %6970 = vmatpush3.msra.mxu0 %v8672_v36  ;;  %v8826_v53 = vpop.f32.mrf.mxu0 }
 0x1d2   :  { %6985 = vmatpush3.msra.mxu1 %v8654_v34  ;;  %6971 = vmatprep.subr.mxu0 %v7808_v6  ;;  %v1407_v59 = vmax.f32 %v8795_v37, %v8826_v53 }
 0x1d3   :  { %v7607_v50 = vpop.eup %7606  ;;  %6986 = vmatprep.subr.mxu1 %v7808_v6  ;;  %6972 = vmatpush3.msra.mxu0 %v8684_v42  ;;  %v6559_v61 = vpop.f32.mrf.mxu0 }
 0x1d4   :  { %v7609_v26 = vpop.eup %7608  ;;  %6987 = vmatpush3.msra.mxu1 %v8663_v35  ;;  %6973 = vmatprep.subr.mxu0 %v7808_v6  ;;  %v850_v31 = vmul.f32 %v7607_v50, %v8292_v19 }
 0x1d5   :  { %v7611_v45 = vpop.eup %7610  ;;  %6988 = vmatprep.subr.mxu1 %v7808_v6  ;;  %6974 = vmatpush3.msra.mxu0 %v8708_v21  ;;  %v854_v58 = vadd.f32 %v7609_v26, %v7607_v50  ;;  %v855_v7 = vmul.f32 %v7609_v26, %v8302_v24 }
 0x1d6   :  { %v7613_v40 = vpop.eup %7612  ;;  %6975 = vmatprep.mubr.msk.f32.mxu0 %vm7809_vm1, %v7808_v6  ;;  %6989 = vmatpush3.msra.mxu1 %v8672_v36  ;;  %v8843_v46 = vpop.f32.mrf.mxu1  ;;  %v861_v11 = vmul.f32 %v7611_v45, %v8315_v30 }
 0x1d7   :  { %v860_v17 = vadd.f32 %v7611_v45, %v854_v58  ;;  %6976 = vmatmul.mubr.msk.f32.vlgmr.msra.gmra.mxu0 %vm323_vm2, %v8126_v54  ;;  %6990 = vmatprep.subr.mxu1 %v7808_v6  ;;  %v1408_v22 = vmax.f32 %v1407_v59, %v8843_v46  ;;  %v856_v47 = vadd.f32 %v855_v7, %v850_v31  ;;  %v7615_v55 = vpop.eup %7614 }
 0x1d8   :  { %6997 = vmatprep.subr.mxu0 %v7808_v6  ;;  %6991 = vmatpush3.msra.mxu1 %v8684_v42  ;;  %v6578_v25 = vpop.f32.mrf.mxu1  ;;  %v867_v15 = vmul.f32 %v7613_v40, %v8331_v32  ;;  %v7617_v54 = vpop.eup %7616  ;;  %v873_v39 = vmul.f32 %v7615_v55, %v8341_v38 }
 0x1d9   :  { %v866_v12 = vadd.f32 %v7613_v40, %v860_v17  ;;  %6998 = vmatpush3.msra.mxu0 %v8624_v16  ;;  %6992 = vmatprep.subr.mxu1 %v7808_v6  ;;  %v862_v10 = vadd.f32 %v861_v11, %v856_v47  ;;  %v7619_v43 = vpop.eup %7618  ;;  %v879_v48 = vmul.f32 %v7617_v54, %v8351_v8 }
 0x1da   :  { %6999 = vmatprep.subr.mxu0 %v7808_v6  ;;  %6993 = vmatpush3.msra.mxu1 %v8708_v21  ;;  %v885_v50 = vmul.f32 %v7619_v43, %v8364_v14 }
 0x1db   :  { %v872_v13 = vadd.f32 %v7615_v55, %v866_v12  ;;  %6994 = vmatprep.mubr.msk.f32.mxu1 %vm7809_vm1, %v7808_v6  ;;  %7000 = vmatpush3.msra.mxu0 %v8635_v20  ;;  %v868_v18 = vadd.f32 %v867_v15, %v862_v10 }
 0x1dc   :  { %6995 = vmatmul.mubr.msk.f32.vlgmr.msra.gmra.mxu1 %vm323_vm2, %v8133_v56  ;;  %7001 = vmatprep.subr.mxu0 %v7808_v6 }
 0x1dd   :  { %v878_v44 = vadd.f32 %v7617_v54, %v872_v13  ;;  %7016 = vmatprep.subr.mxu1 %v7808_v6  ;;  %7002 = vmatpush3.msra.mxu0 %v8645_v29  ;;  %v874_v52 = vadd.f32 %v873_v39, %v868_v18 }
 0x1de   :  { %7017 = vmatpush3.msra.mxu1 %v8624_v16  ;;  %7003 = vmatprep.subr.mxu0 %v7808_v6 }
 0x1df   :  { %v884_v59 = vadd.f32 %v7619_v43, %v878_v44  ;;  %7018 = vmatprep.subr.mxu1 %v7808_v6  ;;  %7004 = vmatpush3.msra.mxu0 %v8654_v34  ;;  %v880_v56 = vadd.f32 %v879_v48, %v874_v52 }
 0x1e0   :  { %7019 = vmatpush3.msra.mxu1 %v8635_v20  ;;  %7005 = vmatprep.subr.mxu0 %v7808_v6 }
 0x1e1   :  { %7620 = vrcp.f32 %v884_v59  ;;  %7020 = vmatprep.subr.mxu1 %v7808_v6  ;;  %7006 = vmatpush3.msra.mxu0 %v8663_v35  ;;  %v886_v61 = vadd.f32 %v885_v50, %v880_v56 }
 0x1e2   :  { %7021 = vmatpush3.msra.mxu1 %v8645_v29  ;;  %7007 = vmatprep.subr.mxu0 %v7808_v6 }
 0x1e3   :  { %7022 = vmatprep.subr.mxu1 %v7808_v6  ;;  %7008 = vmatpush3.msra.mxu0 %v8672_v36  ;;  %v8880_v26 = vpop.f32.mrf.mxu0 }
 0x1e4   :  { %7023 = vmatpush3.msra.mxu1 %v8654_v34  ;;  %7009 = vmatprep.subr.mxu0 %v7808_v6  ;;  %v1409_v31 = vmax.f32 %v1408_v22, %v8880_v26 }
 0x1e5   :  { %7024 = vmatprep.subr.mxu1 %v7808_v6  ;;  %7010 = vmatpush3.msra.mxu0 %v8684_v42  ;;  %v6597_v45 = vpop.f32.mrf.mxu0 }
 0x1e6   :  { %7025 = vmatpush3.msra.mxu1 %v8663_v35  ;;  %7011 = vmatprep.subr.mxu0 %v7808_v6 }
 0x1e7   :  { %7026 = vmatprep.subr.mxu1 %v7808_v6  ;;  %7012 = vmatpush3.msra.mxu0 %v8708_v21 }
 0x1e8   :  { %7013 = vmatprep.mubr.msk.f32.mxu0 %vm7809_vm1, %v7808_v6  ;;  %7027 = vmatpush3.msra.mxu1 %v8672_v36  ;;  %v8894_v58 = vpop.f32.mrf.mxu1 }
 0x1e9   :  { %7014 = vmatmul.mubr.msk.f32.vlgmr.msra.gmra.mxu0 %vm323_vm2, %v8157_v62  ;;  %7028 = vmatprep.subr.mxu1 %v7808_v6  ;;  %v1410_v7 = vmax.f32 %v1409_v31, %v8894_v58  ;;  %v2957_v62 = vmul.f32 %v8227_v9, %v8106_v49 }
 0x1ea   :  { %7035 = vmatprep.subr.mxu0 %v7808_v6  ;;  %7029 = vmatpush3.msra.mxu1 %v8684_v42  ;;  %v6616_v40 = vpop.f32.mrf.mxu1 }
 0x1eb   :  { %7036 = vmatpush3.msra.mxu0 %v8624_v16  ;;  %7030 = vmatprep.subr.mxu1 %v7808_v6 }
 0x1ec   :  { %7037 = vmatprep.subr.mxu0 %v7808_v6  ;;  %7031 = vmatpush3.msra.mxu1 %v8708_v21 }
 0x1ed   :  { %7032 = vmatprep.mubr.msk.f32.mxu1 %vm7809_vm1, %v7808_v6  ;;  %7038 = vmatpush3.msra.mxu0 %v8635_v20 }
 0x1ee   :  { %v7621_v11 = vpop.eup %7620  ;;  %7033 = vmatmul.mubr.msk.f32.vlgmr.msra.gmra.mxu1 %vm323_vm2, %v2957_v62  ;;  %7039 = vmatprep.subr.mxu0 %v7808_v6 }
 0x1ef   :  { %7054 = vmatprep.subr.mxu1 %v7808_v6  ;;  %7040 = vmatpush3.msra.mxu0 %v8645_v29  ;;  %v8915_v17 = vmul.f32 %v7621_v11, %v886_v61 }
 0x1f0   :  { %7055 = vmatpush3.msra.mxu1 %v8624_v16  ;;  %7041 = vmatprep.subr.mxu0 %v7808_v6 }
 0x1f1   :  { %7056 = vmatprep.subr.mxu1 %v7808_v6  ;;  %7042 = vmatpush3.msra.mxu0 %v8654_v34 }
 0x1f2   :  { %7057 = vmatpush3.msra.mxu1 %v8635_v20  ;;  %7043 = vmatprep.subr.mxu0 %v7808_v6 }
 0x1f3   :  { %7058 = vmatprep.subr.mxu1 %v7808_v6  ;;  %7044 = vmatpush3.msra.mxu0 %v8663_v35 }
 0x1f4   :  { %7059 = vmatpush3.msra.mxu1 %v8645_v29  ;;  %7045 = vmatprep.subr.mxu0 %v7808_v6 }
 0x1f5   :  { %7060 = vmatprep.subr.mxu1 %v7808_v6  ;;  %7046 = vmatpush3.msra.mxu0 %v8672_v36  ;;  %v1329_v49 = vpop.f32.mrf.mxu0 }
 0x1f6   :  { %7061 = vmatpush3.msra.mxu1 %v8654_v34  ;;  %7047 = vmatprep.subr.mxu0 %v7808_v6  ;;  %v1411_v22 = vmax.f32 %v1410_v7, %v1329_v49 }
 0x1f7   :  { %7062 = vmatprep.subr.mxu1 %v7808_v6  ;;  %7048 = vmatpush3.msra.mxu0 %v8684_v42  ;;  %v6635_v47 = vpop.f32.mrf.mxu0 }
 0x1f8   :  { %7063 = vmatpush3.msra.mxu1 %v8663_v35  ;;  %7049 = vmatprep.subr.mxu0 %v7808_v6 }
 0x1f9   :  { %7064 = vmatprep.subr.mxu1 %v7808_v6  ;;  %7050 = vmatpush3.msra.mxu0 %v8708_v21 }
 0x1fa   :  { %7051 = vmatprep.mubr.msk.f32.mxu0 %vm7809_vm1, %v7808_v6  ;;  %7065 = vmatpush3.msra.mxu1 %v8672_v36  ;;  %v1403_v55 = vpop.f32.mrf.mxu1 }
 0x1fb   :  { %7052 = vmatmul.mubr.msk.f32.vlgmr.msra.gmra.mxu0 %vm323_vm2, %v8137_v57  ;;  %7066 = vmatprep.subr.mxu1 %v7808_v6  ;;  %v1412_v25 = vmax.f32 %v1411_v22, %v1403_v55 }
 0x1fc   :  { %7073 = vmatprep.subr.mxu0 %v7808_v6  ;;  %7067 = vmatpush3.msra.mxu1 %v8684_v42  ;;  %v6654_v12 = vpop.f32.mrf.mxu1 }
 0x1fd   :  { %7074 = vmatpush3.msra.mxu0 %v8624_v16  ;;  %7068 = vmatprep.subr.mxu1 %v7808_v6  ;;  %v1413_v10 = vsub.f32 %v8795_v37, %v1412_v25  ;;  %v1417_v15 = vsub.f32 %v8826_v53, %v1412_v25  ;;  %v1423_v54 = vsub.f32 %v8843_v46, %v1412_v25 }
 0x1fe   :  { %7075 = vmatprep.subr.mxu0 %v7808_v6  ;;  %7069 = vmatpush3.msra.mxu1 %v8708_v21  ;;  %v1429_v57 = vsub.f32 %v8880_v26, %v1412_v25  ;;  %v1435_v13 = vsub.f32 %v8894_v58, %v1412_v25  ;;  %v1441_v18 = vsub.f32 %v1329_v49, %v1412_v25 }
 0x1ff   :  { %7070 = vmatprep.mubr.msk.f32.mxu1 %vm7809_vm1, %v7808_v6  ;;  %7076 = vmatpush3.msra.mxu0 %v8635_v20  ;;  %v1414_v39 = vmul.f32 1.442695, %v1413_v10  ;;  %v1418_v37 = vmul.f32 1.442695, %v1417_v15  ;;  %v1424_v43 = vmul.f32 1.442695, %v1423_v54  ;;  %v1447_v53 = vsub.f32 %v1403_v55, %v1412_v25 }
 0x200   :  { %7071 = vmatmul.mubr.msk.f32.vlgmr.msra.gmra.mxu1 %vm323_vm2, %v8167_v0  ;;  %7077 = vmatprep.subr.mxu0 %v7808_v6  ;;  %v1430_v46 = vmul.f32 1.442695, %v1429_v57  ;;  %v1436_v44 = vmul.f32 1.442695, %v1435_v13  ;;  %v1442_v0 = vmul.f32 1.442695, %v1441_v18 }
 0x201   :  { %7092 = vmatprep.subr.mxu1 %v7808_v6  ;;  %7078 = vmatpush3.msra.mxu0 %v8645_v29  ;;  %7622 = vpow2.f32 %v1414_v39  ;;  %v1448_v52 = vmul.f32 1.442695, %v1447_v53 }
 0x202   :  { %7093 = vmatpush3.msra.mxu1 %v8624_v16  ;;  %7079 = vmatprep.subr.mxu0 %v7808_v6  ;;  %7624 = vpow2.f32 %v1418_v37 }
 0x203   :  { %7094 = vmatprep.subr.mxu1 %v7808_v6  ;;  %7080 = vmatpush3.msra.mxu0 %v8654_v34  ;;  %7626 = vpow2.f32 %v1424_v43 }
 0x204   :  { %7095 = vmatpush3.msra.mxu1 %v8635_v20  ;;  %7081 = vmatprep.subr.mxu0 %v7808_v6  ;;  %7628 = vpow2.f32 %v1430_v46 }
 0x205   :  { %7096 = vmatprep.subr.mxu1 %v7808_v6  ;;  %7082 = vmatpush3.msra.mxu0 %v8663_v35  ;;  %7630 = vpow2.f32 %v1436_v44 }
 0x206   :  { %7097 = vmatpush3.msra.mxu1 %v8645_v29  ;;  %7083 = vmatprep.subr.mxu0 %v7808_v6  ;;  %7632 = vpow2.f32 %v1442_v0 }
 0x207   :  { %7098 = vmatprep.subr.mxu1 %v7808_v6  ;;  %7084 = vmatpush3.msra.mxu0 %v8672_v36  ;;  %v8974_v48 = vpop.f32.mrf.mxu0  ;;  %7634 = vpow2.f32 %v1448_v52 }
 0x208   :  { %7099 = vmatpush3.msra.mxu1 %v8654_v34  ;;  %7085 = vmatprep.subr.mxu0 %v7808_v6 }
 0x209   :  { %7100 = vmatprep.subr.mxu1 %v7808_v6  ;;  %7086 = vmatpush3.msra.mxu0 %v8684_v42  ;;  %v6673_v59 = vpop.f32.mrf.mxu0 }
 0x20a   :  { %7101 = vmatpush3.msra.mxu1 %v8663_v35  ;;  %7087 = vmatprep.subr.mxu0 %v7808_v6 }
 0x20b   :  { %7102 = vmatprep.subr.mxu1 %v7808_v6  ;;  %7088 = vmatpush3.msra.mxu0 %v8708_v21 }
 0x20c   :  { %7089 = vmatprep.mubr.msk.f32.mxu0 %vm7809_vm1, %v7808_v6  ;;  %7103 = vmatpush3.msra.mxu1 %v8672_v36  ;;  %v8987_v56 = vpop.f32.mrf.mxu1 }
 0x20d   :  { %7090 = vmatmul.mubr.msk.f32.vlgmr.msra.gmra.mxu0 %vm323_vm2, %v8171_v1  ;;  %7104 = vmatprep.subr.mxu1 %v7808_v6 }
 0x20e   :  { %v7623_v50 = vpop.eup %7622  ;;  %7111 = vmatprep.subr.mxu0 %v7808_v6  ;;  %7105 = vmatpush3.msra.mxu1 %v8684_v42  ;;  %v6692_v61 = vpop.f32.mrf.mxu1 }
 0x20f   :  { %v7625_v26 = vpop.eup %7624  ;;  %7112 = vmatpush3.msra.mxu0 %v8624_v16  ;;  %7106 = vmatprep.subr.mxu1 %v7808_v6  ;;  %v1416_v31 = vmul.f32 %v7623_v50, %v8292_v19 }
 0x210   :  { %v7627_v45 = vpop.eup %7626  ;;  %7113 = vmatprep.subr.mxu0 %v7808_v6  ;;  %7107 = vmatpush3.msra.mxu1 %v8708_v21  ;;  %v1420_v1 = vadd.f32 %v7625_v26, %v7623_v50  ;;  %v1421_v58 = vmul.f32 %v7625_v26, %v8302_v24  ;;  %v3523_v50 = vmul.f32 %v8227_v9, %v8149_v60 }
 0x211   :  { %v7629_v7 = vpop.eup %7628  ;;  %7108 = vmatprep.mubr.msk.f32.mxu1 %vm7809_vm1, %v7808_v6  ;;  %7114 = vmatpush3.msra.mxu0 %v8635_v20  ;;  %v1427_v11 = vmul.f32 %v7627_v45, %v8315_v30  ;;  %v1973_v60 = vmax.f32 %v8974_v48, %v8987_v56 }
 0x212   :  { %v1426_v40 = vadd.f32 %v7627_v45, %v1420_v1  ;;  %7109 = vmatmul.mubr.msk.f32.vlgmr.msra.gmra.mxu1 %vm323_vm2, %v8175_v2  ;;  %7115 = vmatprep.subr.mxu0 %v7808_v6  ;;  %v1422_v62 = vadd.f32 %v1421_v58, %v1416_v31  ;;  %v7631_v49 = vpop.eup %7630  ;;  %v1433_v55 = vmul.f32 %v7629_v7, %v8331_v32 }
 0x213   :  { %7130 = vmatprep.subr.mxu1 %v7808_v6  ;;  %7116 = vmatpush3.msra.mxu0 %v8645_v29  ;;  %v7633_v25 = vpop.eup %7632  ;;  %v1439_v10 = vmul.f32 %v7631_v49, %v8341_v38 }
 0x214   :  { %v1432_v22 = vadd.f32 %v7629_v7, %v1426_v40  ;;  %7131 = vmatpush3.msra.mxu1 %v8624_v16  ;;  %7117 = vmatprep.subr.mxu0 %v7808_v6  ;;  %v1428_v47 = vadd.f32 %v1427_v11, %v1422_v62  ;;  %v7635_v15 = vpop.eup %7634  ;;  %v1445_v13 = vmul.f32 %v7633_v25, %v8351_v8 }
 0x215   :  { %7132 = vmatprep.subr.mxu1 %v7808_v6  ;;  %7118 = vmatpush3.msra.mxu0 %v8654_v34  ;;  %v1451_v43 = vmul.f32 %v7635_v15, %v8364_v14 }
 0x216   :  { %v1438_v2 = vadd.f32 %v7631_v49, %v1432_v22  ;;  %7133 = vmatpush3.msra.mxu1 %v8635_v20  ;;  %7119 = vmatprep.subr.mxu0 %v7808_v6  ;;  %v1434_v12 = vadd.f32 %v1433_v55, %v1428_v47 }
 0x217   :  { %7134 = vmatprep.subr.mxu1 %v7808_v6  ;;  %7120 = vmatpush3.msra.mxu0 %v8663_v35 }
 0x218   :  { %v1444_v54 = vadd.f32 %v7633_v25, %v1438_v2  ;;  %7135 = vmatpush3.msra.mxu1 %v8645_v29  ;;  %7121 = vmatprep.subr.mxu0 %v7808_v6  ;;  %v1440_v57 = vadd.f32 %v1439_v10, %v1434_v12  ;;  %v9188_v12 = vld [vmem:[%s10075_s2 + $0xd8] sm:$0xff]  ;;  %v9197_v10 = vld [vmem:[%s10075_s2 + $0xd0] sm:$0xff] }
 0x219   :  { %7136 = vmatprep.subr.mxu1 %v7808_v6  ;;  %7122 = vmatpush3.msra.mxu0 %v8672_v36  ;;  %v9024_v18 = vpop.f32.mrf.mxu0 }
 0x21a   :  { %v1450_v39 = vadd.f32 %v7635_v15, %v1444_v54  ;;  %7137 = vmatpush3.msra.mxu1 %v8654_v34  ;;  %7123 = vmatprep.subr.mxu0 %v7808_v6  ;;  %v1446_v37 = vadd.f32 %v1445_v13, %v1440_v57  ;;  %v1974_v31 = vmax.f32 %v1973_v60, %v9024_v18  ;;  %v9208_v57 = vld [vmem:[%s10075_s2 + $0xc8] sm:$0xff] }
 0x21b   :  { %7138 = vmatprep.subr.mxu1 %v7808_v6  ;;  %7124 = vmatpush3.msra.mxu0 %v8684_v42  ;;  %v6711_v53 = vpop.f32.mrf.mxu0 }
 0x21c   :  { %7636 = vrcp.f32 %v1450_v39  ;;  %7139 = vmatpush3.msra.mxu1 %v8663_v35  ;;  %7125 = vmatprep.subr.mxu0 %v7808_v6  ;;  %v1452_v46 = vadd.f32 %v1451_v43, %v1446_v37  ;;  %v9218_v43 = vld [vmem:[%s10075_s2 + $0xc0] sm:$0xff] }
 0x21d   :  { %7140 = vmatprep.subr.mxu1 %v7808_v6  ;;  %7126 = vmatpush3.msra.mxu0 %v8708_v21 }
 0x21e   :  { %7127 = vmatprep.mubr.msk.f32.mxu0 %vm7809_vm1, %v7808_v6  ;;  %7141 = vmatpush3.msra.mxu1 %v8672_v36  ;;  %v9038_v44 = vpop.f32.mrf.mxu1 }
 0x21f   :  { %7128 = vmatmul.mubr.msk.f32.vlgmr.msra.gmra.mxu0 %vm323_vm2, %v8180_v3  ;;  %7142 = vmatprep.subr.mxu1 %v7808_v6  ;;  %v1975_v45 = vmax.f32 %v1974_v31, %v9038_v44 }
 0x220   :  { %7149 = vmatprep.subr.mxu0 %v7808_v6  ;;  %7143 = vmatpush3.msra.mxu1 %v8684_v42  ;;  %v6730_v0 = vpop.f32.mrf.mxu1 }
 0x221   :  { %7150 = vmatpush3.msra.mxu0 %v8624_v16  ;;  %7144 = vmatprep.subr.mxu1 %v7808_v6 }
 0x222   :  { %7151 = vmatprep.subr.mxu0 %v7808_v6  ;;  %7145 = vmatpush3.msra.mxu1 %v8708_v21 }
 0x223   :  { %7146 = vmatprep.mubr.msk.f32.mxu1 %vm7809_vm1, %v7808_v6  ;;  %7152 = vmatpush3.msra.mxu0 %v8635_v20 }
 0x224   :  { %7147 = vmatmul.mubr.msk.f32.vlgmr.msra.gmra.mxu1 %vm323_vm2, %v8184_v4  ;;  %7153 = vmatprep.subr.mxu0 %v7808_v6 }
 0x225   :  { %7168 = vmatprep.subr.mxu1 %v7808_v6  ;;  %7154 = vmatpush3.msra.mxu0 %v8645_v29 }
 0x226   :  { %7169 = vmatpush3.msra.mxu1 %v8624_v16  ;;  %7155 = vmatprep.subr.mxu0 %v7808_v6 }
 0x227   :  { %7170 = vmatprep.subr.mxu1 %v7808_v6  ;;  %7156 = vmatpush3.msra.mxu0 %v8654_v34 }
 0x228   :  { %7171 = vmatpush3.msra.mxu1 %v8635_v20  ;;  %7157 = vmatprep.subr.mxu0 %v7808_v6 }
 0x229   :  { %v7637_v3 = vpop.eup %7636  ;;  %7172 = vmatprep.subr.mxu1 %v7808_v6  ;;  %7158 = vmatpush3.msra.mxu0 %v8663_v35 }
 0x22a   :  { %7173 = vmatpush3.msra.mxu1 %v8645_v29  ;;  %7159 = vmatprep.subr.mxu0 %v7808_v6  ;;  %v9067_v4 = vmul.f32 %v7637_v3, %v1452_v46 }
 0x22b   :  { %7174 = vmatprep.subr.mxu1 %v7808_v6  ;;  %7160 = vmatpush3.msra.mxu0 %v8672_v36  ;;  %v9071_v52 = vpop.f32.mrf.mxu0 }
 0x22c   :  { %7175 = vmatpush3.msra.mxu1 %v8654_v34  ;;  %7161 = vmatprep.subr.mxu0 %v7808_v6 }
 0x22d   :  { %7176 = vmatprep.subr.mxu1 %v7808_v6  ;;  %7162 = vmatpush3.msra.mxu0 %v8684_v42  ;;  %v6749_v59 = vpop.f32.mrf.mxu0 }
 0x22e   :  { %7177 = vmatpush3.msra.mxu1 %v8663_v35  ;;  %7163 = vmatprep.subr.mxu0 %v7808_v6 }
 0x22f   :  { %7178 = vmatprep.subr.mxu1 %v7808_v6  ;;  %7164 = vmatpush3.msra.mxu0 %v8708_v21 }
 0x230   :  { %7165 = vmatprep.mubr.msk.f32.mxu0 %vm7809_vm1, %v7808_v6  ;;  %7179 = vmatpush3.msra.mxu1 %v8672_v36  ;;  %v9086_v61 = vpop.f32.mrf.mxu1 }
 0x231   :  { %7166 = vmatmul.mubr.msk.f32.vlgmr.msra.gmra.mxu0 %vm323_vm2, %v3523_v50  ;;  %7180 = vmatprep.subr.mxu1 %v7808_v6 }
 0x232   :  { %7187 = vmatprep.subr.mxu0 %v7808_v6  ;;  %7181 = vmatpush3.msra.mxu1 %v8684_v42  ;;  %v6768_v26 = vpop.f32.mrf.mxu1 }
 0x233   :  { %7188 = vmatpush3.msra.mxu0 %v8624_v16  ;;  %7182 = vmatprep.subr.mxu1 %v7808_v6 }
 0x234   :  { %7189 = vmatprep.subr.mxu0 %v7808_v6  ;;  %7183 = vmatpush3.msra.mxu1 %v8708_v21 }
 0x235   :  { %7184 = vmatprep.mubr.msk.f32.mxu1 %vm7809_vm1, %v7808_v6  ;;  %7190 = vmatpush3.msra.mxu0 %v8635_v20 }
 0x236   :  { %7185 = vmatmul.mubr.msk.f32.vlgmr.msra.gmra.mxu1 %vm323_vm2, %v8188_v5  ;;  %7191 = vmatprep.subr.mxu0 %v7808_v6  ;;  %v1976_v5 = vmax.f32 %v1975_v45, %v9071_v52 }
 0x237   :  { %7206 = vmatprep.subr.mxu1 %v7808_v6  ;;  %7192 = vmatpush3.msra.mxu0 %v8645_v29 }
 0x238   :  { %7207 = vmatpush3.msra.mxu1 %v8624_v16  ;;  %7193 = vmatprep.subr.mxu0 %v7808_v6  ;;  %v1977_v16 = vmax.f32 %v1976_v5, %v9086_v61 }
 0x239   :  { %7208 = vmatprep.subr.mxu1 %v7808_v6  ;;  %7194 = vmatpush3.msra.mxu0 %v8654_v34 }
 0x23a   :  { %7209 = vmatpush3.msra.mxu1 %v8635_v20  ;;  %7195 = vmatprep.subr.mxu0 %v7808_v6 }
 0x23b   :  { %7210 = vmatprep.subr.mxu1 %v7808_v6  ;;  %7196 = vmatpush3.msra.mxu0 %v8663_v35 }
 0x23c   :  { %7211 = vmatpush3.msra.mxu1 %v8645_v29  ;;  %7197 = vmatprep.subr.mxu0 %v7808_v6 }
 0x23d   :  { %7212 = vmatprep.subr.mxu1 %v7808_v6  ;;  %7198 = vmatpush3.msra.mxu0 %v8672_v36  ;;  %v1969_v1 = vpop.f32.mrf.mxu0 }
 0x23e   :  { %7213 = vmatpush3.msra.mxu1 %v8654_v34  ;;  %7199 = vmatprep.subr.mxu0 %v7808_v6  ;;  %v1978_v20 = vmax.f32 %v1977_v16, %v1969_v1 }
 0x23f   :  { %7214 = vmatprep.subr.mxu1 %v7808_v6  ;;  %7200 = vmatpush3.msra.mxu0 %v8684_v42  ;;  %v6787_v58 = vpop.f32.mrf.mxu0 }
 0x240   :  { %7215 = vmatpush3.msra.mxu1 %v8663_v35  ;;  %7201 = vmatprep.subr.mxu0 %v7808_v6  ;;  %v1979_v29 = vsub.f32 %v8974_v48, %v1978_v20  ;;  %v1983_v7 = vsub.f32 %v8987_v56, %v1978_v20  ;;  %v1989_v40 = vsub.f32 %v9024_v18, %v1978_v20 }
 0x241   :  { %7216 = vmatprep.subr.mxu1 %v7808_v6  ;;  %7202 = vmatpush3.msra.mxu0 %v8708_v21  ;;  %v1995_v34 = vsub.f32 %v9038_v44, %v1978_v20  ;;  %v2001_v62 = vsub.f32 %v9071_v52, %v1978_v20  ;;  %v2007_v22 = vsub.f32 %v9086_v61, %v1978_v20 }
 0x242   :  { %7203 = vmatprep.mubr.msk.f32.mxu0 %vm7809_vm1, %v7808_v6  ;;  %7217 = vmatpush3.msra.mxu1 %v8672_v36  ;;  %v1980_v35 = vmul.f32 1.442695, %v1979_v29  ;;  %v1984_v11 = vmul.f32 1.442695, %v1983_v7  ;;  %v1990_v48 = vmul.f32 1.442695, %v1989_v40  ;;  %v9138_v49 = vpop.f32.mrf.mxu1  ;;  %v2013_v55 = vsub.f32 %v1969_v1, %v1978_v20 }
 0x243   :  { %7204 = vmatmul.mubr.msk.f32.vlgmr.msra.gmra.mxu0 %vm323_vm2, %v8016_v27  ;;  %7218 = vmatprep.subr.mxu1 %v7808_v6  ;;  %v1996_v56 = vmul.f32 1.442695, %v1995_v34  ;;  %v9149_v36 = vld [vmem:[%s10075_s2 + $0xf8] sm:$0xff]  ;;  %v2002_v27 = vmul.f32 1.442695, %v2001_v62 }
 0x244   :  { %7225 = vmatprep.subr.mxu0 %v7808_v6  ;;  %7219 = vmatpush3.msra.mxu1 %v8684_v42  ;;  %7638 = vpow2.f32 %v1980_v35  ;;  %v6806_v47 = vpop.f32.mrf.mxu1  ;;  %v9160_v42 = vld [vmem:[%s10075_s2 + $0xf0] sm:$0xff]  ;;  %v2008_v25 = vmul.f32 1.442695, %v2007_v22  ;;  %v2014_v2 = vmul.f32 1.442695, %v2013_v55  ;;  %v35_v55 = vld [vmem:[%s10075_s2 + $0x20] sm:$0xff] }
 0x245   :  { %7226 = vmatpush3.msra.mxu0 %v9149_v36  ;;  %7220 = vmatprep.subr.mxu1 %v7808_v6  ;;  %7640 = vpow2.f32 %v1984_v11 }
 0x246   :  { %7227 = vmatprep.subr.mxu0 %v7808_v6  ;;  %7221 = vmatpush3.msra.mxu1 %v8708_v21  ;;  %7642 = vpow2.f32 %v1990_v48  ;;  %v9170_v21 = vld [vmem:[%s10075_s2 + $0xe8] sm:$0xff] }
 0x247   :  { %7222 = vmatprep.mubr.msk.f32.mxu1 %vm7809_vm1, %v7808_v6  ;;  %7228 = vmatpush3.msra.mxu0 %v9160_v42  ;;  %7644 = vpow2.f32 %v1996_v56  ;;  %v4089_v56 = vmul.f32 %v8006_v23, %v8227_v9  ;;  %v37_v23 = vld [vmem:[%s10075_s2 + $0x30] sm:$0xff] }
 0x248   :  { %7223 = vmatmul.mubr.msk.f32.vlgmr.msra.gmra.mxu1 %vm323_vm2, %v8039_v33  ;;  %7229 = vmatprep.subr.mxu0 %v7808_v6  ;;  %7646 = vpow2.f32 %v2002_v27  ;;  %v9179_v33 = vld [vmem:[%s10075_s2 + $0xe0] sm:$0xff] }
 0x249   :  { %7244 = vmatprep.subr.mxu1 %v7808_v6  ;;  %7230 = vmatpush3.msra.mxu0 %v9170_v21  ;;  %7648 = vpow2.f32 %v2008_v25 }
 0x24a   :  { %7245 = vmatpush3.msra.mxu1 %v9149_v36  ;;  %7231 = vmatprep.subr.mxu0 %v7808_v6  ;;  %7650 = vpow2.f32 %v2014_v2  ;;  %v33_v2 = vld [vmem:[%s10075_s2 + $0x10] sm:$0xff] }
 0x24b   :  { %7246 = vmatprep.subr.mxu1 %v7808_v6  ;;  %7232 = vmatpush3.msra.mxu0 %v9179_v33 }
 0x24c   :  { %7247 = vmatpush3.msra.mxu1 %v9160_v42  ;;  %7233 = vmatprep.subr.mxu0 %v7808_v6 }
 0x24d   :  { %7248 = vmatprep.subr.mxu1 %v7808_v6  ;;  %7234 = vmatpush3.msra.mxu0 %v9188_v12 }
 0x24e   :  { %7249 = vmatpush3.msra.mxu1 %v9170_v21  ;;  %7235 = vmatprep.subr.mxu0 %v7808_v6 }
 0x24f   :  { %7250 = vmatprep.subr.mxu1 %v7808_v6  ;;  %7236 = vmatpush3.msra.mxu0 %v9197_v10  ;;  %v9200_v15 = vpop.f32.mrf.mxu0 }
 0x250   :  { %7251 = vmatpush3.msra.mxu1 %v9179_v33  ;;  %7237 = vmatprep.subr.mxu0 %v7808_v6  ;;  %v2539_v47 = vmax.f32 %v9138_v49, %v9200_v15 }
 0x251   :  { %v7639_v54 = vpop.eup %7638  ;;  %7252 = vmatprep.subr.mxu1 %v7808_v6  ;;  %7238 = vmatpush3.msra.mxu0 %v9208_v57  ;;  %v6825_v13 = vpop.f32.mrf.mxu0 }
 0x252   :  { %v7641_v18 = vpop.eup %7640  ;;  %7253 = vmatpush3.msra.mxu1 %v9188_v12  ;;  %7239 = vmatprep.subr.mxu0 %v7808_v6  ;;  %v1982_v39 = vmul.f32 %v7639_v54, %v8292_v19  ;;  %v31_v13 = vld [vmem:[%s10075_s2] sm:$0xff] }
 0x253   :  { %v7643_v37 = vpop.eup %7642  ;;  %7254 = vmatprep.subr.mxu1 %v7808_v6  ;;  %7240 = vmatpush3.msra.mxu0 %v9218_v43  ;;  %v1986_v53 = vadd.f32 %v7641_v18, %v7639_v54  ;;  %v1987_v46 = vmul.f32 %v7641_v18, %v8302_v24 }
 0x254   :  { %v7645_v44 = vpop.eup %7644  ;;  %7241 = vmatprep.mubr.msk.f32.mxu0 %vm7809_vm1, %v7808_v6  ;;  %7255 = vmatpush3.msra.mxu1 %v9197_v10  ;;  %v9225_v0 = vpop.f32.mrf.mxu1  ;;  %v1993_v59 = vmul.f32 %v7643_v37, %v8315_v30 }
 0x255   :  { %v1992_v3 = vadd.f32 %v7643_v37, %v1986_v53  ;;  %7242 = vmatmul.mubr.msk.f32.vlgmr.msra.gmra.mxu0 %vm323_vm2, %v8074_v41  ;;  %7256 = vmatprep.subr.mxu1 %v7808_v6  ;;  %v1988_v52 = vadd.f32 %v1987_v46, %v1982_v39  ;;  %v7647_v50 = vpop.eup %7646  ;;  %v1999_v31 = vmul.f32 %v7645_v44, %v8331_v32 }
 0x256   :  { %7263 = vmatprep.subr.mxu0 %v7808_v6  ;;  %7257 = vmatpush3.msra.mxu1 %v9208_v57  ;;  %v6844_v61 = vpop.f32.mrf.mxu1  ;;  %v7649_v41 = vpop.eup %7648  ;;  %v2005_v16 = vmul.f32 %v7647_v50, %v8341_v38  ;;  %v2540_v27 = vmax.f32 %v2539_v47, %v9225_v0 }
 0x257   :  { %v1998_v26 = vadd.f32 %v7645_v44, %v1992_v3  ;;  %7264 = vmatpush3.msra.mxu0 %v9149_v36  ;;  %7258 = vmatprep.subr.mxu1 %v7808_v6  ;;  %v1994_v60 = vadd.f32 %v1993_v59, %v1988_v52  ;;  %v7651_v1 = vpop.eup %7650  ;;  %v2011_v29 = vmul.f32 %v7649_v41, %v8351_v8 }
 0x258   :  { %7265 = vmatprep.subr.mxu0 %v7808_v6  ;;  %7259 = vmatpush3.msra.mxu1 %v9218_v43  ;;  %v2017_v40 = vmul.f32 %v7651_v1, %v8364_v14 }
 0x259   :  { %v2004_v45 = vadd.f32 %v7647_v50, %v1998_v26  ;;  %7260 = vmatprep.mubr.msk.f32.mxu1 %vm7809_vm1, %v7808_v6  ;;  %7266 = vmatpush3.msra.mxu0 %v9160_v42  ;;  %v2000_v5 = vadd.f32 %v1999_v31, %v1994_v60 }
 0x25a   :  { %7261 = vmatmul.mubr.msk.f32.vlgmr.msra.gmra.mxu1 %vm323_vm2, %v8112_v51  ;;  %7267 = vmatprep.subr.mxu0 %v7808_v6 }
 0x25b   :  { %v2010_v20 = vadd.f32 %v7649_v41, %v2004_v45  ;;  %7282 = vmatprep.subr.mxu1 %v7808_v6  ;;  %7268 = vmatpush3.msra.mxu0 %v9170_v21  ;;  %v2006_v58 = vadd.f32 %v2005_v16, %v2000_v5 }
 0x25c   :  { %7283 = vmatpush3.msra.mxu1 %v9149_v36  ;;  %7269 = vmatprep.subr.mxu0 %v7808_v6 }
 0x25d   :  { %v2016_v7 = vadd.f32 %v7651_v1, %v2010_v20  ;;  %7284 = vmatprep.subr.mxu1 %v7808_v6  ;;  %7270 = vmatpush3.msra.mxu0 %v9179_v33  ;;  %v2012_v51 = vadd.f32 %v2011_v29, %v2006_v58 }
 0x25e   :  { %7285 = vmatpush3.msra.mxu1 %v9160_v42  ;;  %7271 = vmatprep.subr.mxu0 %v7808_v6 }
 0x25f   :  { %7652 = vrcp.f32 %v2016_v7  ;;  %7286 = vmatprep.subr.mxu1 %v7808_v6  ;;  %7272 = vmatpush3.msra.mxu0 %v9188_v12  ;;  %v2018_v34 = vadd.f32 %v2017_v40, %v2012_v51 }
 0x260   :  { %7287 = vmatpush3.msra.mxu1 %v9170_v21  ;;  %7273 = vmatprep.subr.mxu0 %v7808_v6 }
 0x261   :  { %7288 = vmatprep.subr.mxu1 %v7808_v6  ;;  %7274 = vmatpush3.msra.mxu0 %v9197_v10  ;;  %v9261_v62 = vpop.f32.mrf.mxu0 }
 0x262   :  { %7289 = vmatpush3.msra.mxu1 %v9179_v33  ;;  %7275 = vmatprep.subr.mxu0 %v7808_v6  ;;  %v2541_v25 = vmax.f32 %v2540_v27, %v9261_v62 }
 0x263   :  { %7290 = vmatprep.subr.mxu1 %v7808_v6  ;;  %7276 = vmatpush3.msra.mxu0 %v9208_v57  ;;  %v6863_v35 = vpop.f32.mrf.mxu0 }
 0x264   :  { %7291 = vmatpush3.msra.mxu1 %v9188_v12  ;;  %7277 = vmatprep.subr.mxu0 %v7808_v6 }
 0x265   :  { %7292 = vmatprep.subr.mxu1 %v7808_v6  ;;  %7278 = vmatpush3.msra.mxu0 %v9218_v43 }
 0x266   :  { %7279 = vmatprep.mubr.msk.f32.mxu0 %vm7809_vm1, %v7808_v6  ;;  %7293 = vmatpush3.msra.mxu1 %v9197_v10  ;;  %v9274_v11 = vpop.f32.mrf.mxu1 }
 0x267   :  { %7280 = vmatmul.mubr.msk.f32.vlgmr.msra.gmra.mxu0 %vm323_vm2, %v8161_v63  ;;  %7294 = vmatprep.subr.mxu1 %v7808_v6  ;;  %v38_v63 = vld [vmem:[%s10075_s2 + $0x38] sm:$0xff] }
 0x268   :  { %7301 = vmatprep.subr.mxu0 %v7808_v6  ;;  %7295 = vmatpush3.msra.mxu1 %v9208_v57  ;;  %v6882_v48 = vpop.f32.mrf.mxu1 }
 0x269   :  { %7302 = vmatpush3.msra.mxu0 %v9149_v36  ;;  %7296 = vmatprep.subr.mxu1 %v7808_v6  ;;  %v36_v36 = vld [vmem:[%s10075_s2 + $0x28] sm:$0xff] }
 0x26a   :  { %7303 = vmatprep.subr.mxu0 %v7808_v6  ;;  %7297 = vmatpush3.msra.mxu1 %v9218_v43 }
 0x26b   :  { %7298 = vmatprep.mubr.msk.f32.mxu1 %vm7809_vm1, %v7808_v6  ;;  %7304 = vmatpush3.msra.mxu0 %v9160_v42  ;;  %v34_v42 = vld [vmem:[%s10075_s2 + $0x18] sm:$0xff] }
 0x26c   :  { %v7653_v22 = vpop.eup %7652  ;;  %7299 = vmatmul.mubr.msk.f32.vlgmr.msra.gmra.mxu1 %vm323_vm2, %v4089_v56  ;;  %7305 = vmatprep.subr.mxu0 %v7808_v6 }
 0x26d   :  { %7320 = vmatprep.subr.mxu1 %v7808_v6  ;;  %7306 = vmatpush3.msra.mxu0 %v9170_v21  ;;  %v9300_v9 = vmul.f32 %v7653_v22, %v2018_v34 }
 0x26e   :  { %7321 = vmatpush3.msra.mxu1 %v38_v63  ;;  %7307 = vmatprep.subr.mxu0 %v7808_v6 }
 0x26f   :  { %7322 = vmatprep.subr.mxu1 %v7808_v6  ;;  %7308 = vmatpush3.msra.mxu0 %v9179_v33  ;;  %v2542_v33 = vmax.f32 %v2541_v25, %v9274_v11 }
 0x270   :  { %7323 = vmatpush3.msra.mxu1 %v37_v23  ;;  %7309 = vmatprep.subr.mxu0 %v7808_v6 }
 0x271   :  { %7324 = vmatprep.subr.mxu1 %v7808_v6  ;;  %7310 = vmatpush3.msra.mxu0 %v9188_v12 }
 0x272   :  { %7325 = vmatpush3.msra.mxu1 %v36_v36  ;;  %7311 = vmatprep.subr.mxu0 %v7808_v6 }
 0x273   :  { %7326 = vmatprep.subr.mxu1 %v7808_v6  ;;  %7312 = vmatpush3.msra.mxu0 %v9197_v10  ;;  %v2461_v21 = vpop.f32.mrf.mxu0  ;;  %v32_v10 = vld [vmem:[%s10075_s2 + $0x8] sm:$0xff] }
 0x274   :  { %7327 = vmatpush3.msra.mxu1 %v35_v55  ;;  %7313 = vmatprep.subr.mxu0 %v7808_v6  ;;  %v2543_v54 = vmax.f32 %v2542_v33, %v2461_v21 }
 0x275   :  { %7328 = vmatprep.subr.mxu1 %v7808_v6  ;;  %7314 = vmatpush3.msra.mxu0 %v9208_v57  ;;  %v6901_v12 = vpop.f32.mrf.mxu0 }
 0x276   :  { %7329 = vmatpush3.msra.mxu1 %v34_v42  ;;  %7315 = vmatprep.subr.mxu0 %v7808_v6 }
 0x277   :  { %7330 = vmatprep.subr.mxu1 %v7808_v6  ;;  %7316 = vmatpush3.msra.mxu0 %v9218_v43 }
 0x278   :  { %7317 = vmatprep.mubr.msk.f32.mxu0 %vm7809_vm1, %v7808_v6  ;;  %7331 = vmatpush3.msra.mxu1 %v33_v2  ;;  %v2535_v57 = vpop.f32.mrf.mxu1 }
 0x279   :  { %7318 = vmatmul.mubr.msk.f32.vlgmr.msra.gmra.mxu0 %vm323_vm2, %v8020_v28  ;;  %7332 = vmatprep.subr.mxu1 %v7808_v6  ;;  %v2544_v18 = vmax.f32 %v2543_v54, %v2535_v57 }
 0x27a   :  { %7333 = vmatpush3.msra.mxu1 %v32_v10  ;;  %7336 = vmatprep.mubr.msk.f32.mxu1 %vm7809_vm1, %v7808_v6  ;;  %v6920_v39 = vpop.f32.mrf.mxu1 }
 0x27b   :  { %7334 = vmatprep.subr.mxu1 %v7808_v6  ;;  %v2545_v37 = vsub.f32 %v9138_v49, %v2544_v18  ;;  %v2549_v43 = vsub.f32 %v9200_v15, %v2544_v18  ;;  %v2555_v28 = vsub.f32 %v9225_v0, %v2544_v18  ;;  %v2561_v53 = vsub.f32 %v9261_v62, %v2544_v18 }
 0x27c   :  { %7335 = vmatpush3.msra.mxu1 %v31_v13  ;;  %7357 = vmatprep.subr.mxu0 %v7808_v6  ;;  %v2567_v15 = vsub.f32 %v9274_v11, %v2544_v18  ;;  %v2573_v3 = vsub.f32 %v2461_v21, %v2544_v18  ;;  %v2579_v52 = vsub.f32 %v2535_v57, %v2544_v18 }
 0x27d   :  { %7337 = vmatmul.mubr.msk.f32.vlgmr.msra.gmra.mxu1 %vm323_vm2, %v8915_v17  ;;  %v2546_v46 = vmul.f32 1.442695, %v2545_v37  ;;  %v2550_v44 = vmul.f32 1.442695, %v2549_v43  ;;  %7373 = vmatprep.mubr.msk.f32.mxu0 %vm7809_vm1, %v7808_v6  ;;  %v2556_v49 = vmul.f32 1.442695, %v2555_v28 }
 0x27e   :  { %7339 = vmatprep.mubr.msk.f32.mxu1 %vm7809_vm1, %v7808_v6  ;;  %7394 = vmatprep.subr.mxu1 %v7808_v6  ;;  %v2562_v0 = vmul.f32 1.442695, %v2561_v53  ;;  %v2568_v17 = vmul.f32 1.442695, %v2567_v15  ;;  %v2574_v59 = vmul.f32 1.442695, %v2573_v3 }
 0x27f   :  { %7654 = vpow2.f32 %v2546_v46  ;;  %v2580_v61 = vmul.f32 1.442695, %v2579_v52 }
 0x280   :  { %7656 = vpow2.f32 %v2550_v44 }
 0x281   :  { %7340 = vmatmul.mubr.msk.f32.gmra.mxu1 %vm323_vm2, %v9067_v4  ;;  %7658 = vpow2.f32 %v2556_v49 }
 0x282   :  { %7342 = vmatprep.mubr.msk.f32.mxu1 %vm7809_vm1, %v7808_v6  ;;  %7660 = vpow2.f32 %v2562_v0 }
 0x283   :  { %7662 = vpow2.f32 %v2568_v17 }
 0x284   :  { %7664 = vpow2.f32 %v2574_v59 }
 0x285   :  { %7343 = vmatmul.mubr.msk.f32.gmra.mxu1 %vm323_vm2, %v9300_v9  ;;  %v2657_v50 = vpop.f32.mrf.mxu0  ;;  %7666 = vpow2.f32 %v2580_v61 }
 0x286   :  { %7345 = vmatprep.mubr.msk.f32.mxu1 %vm7809_vm1, %v7808_v6 }
 0x287   :  { %v6939_v26 = vpop.f32.mrf.mxu0 }
 0x28a   :  { %v2731_v4 = vpop.f32.mrf.mxu1 }
 0x28b   :  { %v3105_v18 = vmax.f32 %v2657_v50, %v2731_v4 }
 0x28c   :  { %v7655_v60 = vpop.eup %7654  ;;  %v6958_v31 = vpop.f32.mrf.mxu1 }
 0x28d   :  { %v7657_v41 = vpop.eup %7656  ;;  %v2548_v5 = vmul.f32 %v7655_v60, %v8292_v19 }
 0x28e   :  { %v2552_v45 = vadd.f32 %v7657_v41, %v7655_v60  ;;  %v2553_v16 = vmul.f32 %v7657_v41, %v8302_v24  ;;  %v7659_v1 = vpop.eup %7658 }
 0x28f   :  { %v7661_v58 = vpop.eup %7660  ;;  %v2559_v34 = vmul.f32 %v7659_v1, %v8315_v30 }
 0x290   :  { %v2558_v20 = vadd.f32 %v7659_v1, %v2552_v45  ;;  %v2554_v7 = vadd.f32 %v2553_v16, %v2548_v5  ;;  %v7663_v51 = vpop.eup %7662  ;;  %v2565_v22 = vmul.f32 %v7661_v58, %v8331_v32 }
 0x291   :  { %v7665_v62 = vpop.eup %7664  ;;  %v2571_v36 = vmul.f32 %v7663_v51, %v8341_v38 }
 0x292   :  { %v2564_v29 = vadd.f32 %v7661_v58, %v2558_v20  ;;  %v2560_v11 = vadd.f32 %v2559_v34, %v2554_v7  ;;  %v7667_v48 = vpop.eup %7666  ;;  %v2577_v42 = vmul.f32 %v7665_v62, %v8351_v8 }
 0x293   :  { %v2583_v21 = vmul.f32 %v7667_v48, %v8364_v14 }
 0x294   :  { %v2570_v40 = vadd.f32 %v7663_v51, %v2564_v29  ;;  %v2566_v9 = vadd.f32 %v2565_v22, %v2560_v11 }
 0x296   :  { %v2576_v35 = vadd.f32 %v7665_v62, %v2570_v40  ;;  %v2572_v55 = vadd.f32 %v2571_v36, %v2566_v9 }
 0x297   :  { %v2805_v56 = vpop.f32.mrf.mxu0 }
 0x298   :  { %v2582_v63 = vadd.f32 %v7667_v48, %v2576_v35  ;;  %v2578_v25 = vadd.f32 %v2577_v42, %v2572_v55  ;;  %v3106_v39 = vmax.f32 %v3105_v18, %v2805_v56 }
 0x299   :  { %v6977_v23 = vpop.f32.mrf.mxu0 }
 0x29a   :  { %7668 = vrcp.f32 %v2582_v63  ;;  %v2584_v2 = vadd.f32 %v2583_v21, %v2578_v25 }
 0x29c   :  { %v2879_v47 = vpop.f32.mrf.mxu1 }
 0x29d   :  { %v3107_v37 = vmax.f32 %v3106_v39, %v2879_v47 }
 0x29e   :  { %v6996_v27 = vpop.f32.mrf.mxu1 }
 0x2a7   :  { %v7669_v33 = vpop.eup %7668 }
 0x2a8   :  { %v2586_v12 = vmul.f32 %v7669_v33, %v2584_v2 }
 0x2a9   :  { %v2953_v10 = vpop.f32.mrf.mxu0 }
 0x2aa   :  { %7346 = vmatmul.mubr.msk.f32.gmra.mxu1 %vm323_vm2, %v2586_v12  ;;  %v3108_v43 = vmax.f32 %v3107_v37, %v2953_v10 }
 0x2ab   :  { %v7015_v54 = vpop.f32.mrf.mxu0  ;;  %7348 = vmatprep.mubr.msk.f32.mxu1 %vm7809_vm1, %v7808_v6 }
 0x2ae   :  { %v3027_v57 = vpop.f32.mrf.mxu1 }
 0x2af   :  { %v3109_v28 = vmax.f32 %v3108_v43, %v3027_v57 }
 0x2b0   :  { %v7034_v13 = vpop.f32.mrf.mxu1 }
 0x2bb   :  { %v3101_v53 = vpop.f32.mrf.mxu0 }
 0x2bc   :  { %v3110_v46 = vmax.f32 %v3109_v28, %v3101_v53 }
 0x2bd   :  { %v7053_v44 = vpop.f32.mrf.mxu0 }
 0x2be   :  { %v3111_v49 = vsub.f32 %v2657_v50, %v3110_v46  ;;  %v3115_v15 = vsub.f32 %v2731_v4, %v3110_v46  ;;  %v3121_v0 = vsub.f32 %v2805_v56, %v3110_v46  ;;  %v3127_v3 = vsub.f32 %v2879_v47, %v3110_v46 }
 0x2bf   :  { %v3133_v26 = vsub.f32 %v2953_v10, %v3110_v46  ;;  %v3139_v41 = vsub.f32 %v3027_v57, %v3110_v46  ;;  %v3145_v5 = vsub.f32 %v3101_v53, %v3110_v46 }
 0x2c0   :  { %v3112_v17 = vmul.f32 1.442695, %v3111_v49  ;;  %v3116_v52 = vmul.f32 1.442695, %v3115_v15  ;;  %v9379_v59 = vpop.f32.mrf.mxu1  ;;  %v3122_v61 = vmul.f32 1.442695, %v3121_v0 }
 0x2c1   :  { %v3128_v31 = vmul.f32 1.442695, %v3127_v3  ;;  %v3134_v45 = vmul.f32 1.442695, %v3133_v26  ;;  %v3140_v16 = vmul.f32 1.442695, %v3139_v41 }
 0x2c2   :  { %7670 = vpow2.f32 %v3112_v17  ;;  %v7072_v60 = vpop.f32.mrf.mxu1  ;;  %v3146_v50 = vmul.f32 1.442695, %v3145_v5 }
 0x2c3   :  { %7672 = vpow2.f32 %v3116_v52 }
 0x2c4   :  { %7674 = vpow2.f32 %v3122_v61 }
 0x2c5   :  { %7676 = vpow2.f32 %v3128_v31 }
 0x2c6   :  { %7678 = vpow2.f32 %v3134_v45 }
 0x2c7   :  { %7680 = vpow2.f32 %v3140_v16 }
 0x2c8   :  { %7682 = vpow2.f32 %v3146_v50 }
 0x2cd   :  { %v3297_v4 = vpop.f32.mrf.mxu0 }
 0x2ce   :  { %v3671_v28 = vmax.f32 %v9379_v59, %v3297_v4 }
 0x2cf   :  { %v7671_v1 = vpop.eup %7670  ;;  %v7091_v20 = vpop.f32.mrf.mxu0 }
 0x2d0   :  { %v7673_v58 = vpop.eup %7672  ;;  %v3114_v7 = vmul.f32 %v7671_v1, %v8292_v19 }
 0x2d1   :  { %v3118_v29 = vadd.f32 %v7673_v58, %v7671_v1  ;;  %v3119_v51 = vmul.f32 %v7673_v58, %v8302_v24  ;;  %v7675_v40 = vpop.eup %7674 }
 0x2d2   :  { %v3371_v34 = vpop.f32.mrf.mxu1  ;;  %v7677_v35 = vpop.eup %7676  ;;  %v3125_v23 = vmul.f32 %v7675_v40, %v8315_v30 }
 0x2d3   :  { %v3124_v62 = vadd.f32 %v7675_v40, %v3118_v29  ;;  %v3120_v56 = vadd.f32 %v3119_v51, %v3114_v7  ;;  %v7679_v63 = vpop.eup %7678  ;;  %v3131_v42 = vmul.f32 %v7677_v35, %v8331_v32  ;;  %v3672_v53 = vmax.f32 %v3671_v28, %v3371_v34 }
 0x2d4   :  { %v7110_v11 = vpop.f32.mrf.mxu1  ;;  %v7681_v9 = vpop.eup %7680  ;;  %v3137_v2 = vmul.f32 %v7679_v63, %v8341_v38 }
 0x2d5   :  { %v3130_v48 = vadd.f32 %v7677_v35, %v3124_v62  ;;  %v3126_v36 = vadd.f32 %v3125_v23, %v3120_v56  ;;  %v7683_v27 = vpop.eup %7682  ;;  %v3143_v10 = vmul.f32 %v7681_v9, %v8351_v8 }
 0x2d6   :  { %v3149_v18 = vmul.f32 %v7683_v27, %v8364_v14 }
 0x2d7   :  { %v3136_v22 = vadd.f32 %v7679_v63, %v3130_v48  ;;  %v3132_v25 = vadd.f32 %v3131_v42, %v3126_v36 }
 0x2d9   :  { %v3142_v47 = vadd.f32 %v7681_v9, %v3136_v22  ;;  %v3138_v12 = vadd.f32 %v3137_v2, %v3132_v25 }
 0x2db   :  { %v3148_v55 = vadd.f32 %v7683_v27, %v3142_v47  ;;  %v3144_v57 = vadd.f32 %v3143_v10, %v3138_v12 }
 0x2dd   :  { %7684 = vrcp.f32 %v3148_v55  ;;  %v3150_v39 = vadd.f32 %v3149_v18, %v3144_v57 }
 0x2df   :  { %v3445_v21 = vpop.f32.mrf.mxu0 }
 0x2e0   :  { %v3673_v46 = vmax.f32 %v3672_v53, %v3445_v21 }
 0x2e1   :  { %v7129_v33 = vpop.f32.mrf.mxu0 }
 0x2e4   :  { %v3519_v54 = vpop.f32.mrf.mxu1 }
 0x2e5   :  { %v3674_v49 = vmax.f32 %v3673_v46, %v3519_v54 }
 0x2e6   :  { %v7148_v13 = vpop.f32.mrf.mxu1 }
 0x2ea   :  { %v7685_v37 = vpop.eup %7684 }
 0x2eb   :  { %v3152_v43 = vmul.f32 %v7685_v37, %v3150_v39 }
 0x2ed   :  { %7349 = vmatmul.mubr.msk.f32.gmra.mxu1 %vm323_vm2, %v3152_v43 }
 0x2ee   :  { %7351 = vmatprep.mubr.msk.f32.mxu1 %vm7809_vm1, %v7808_v6 }
 0x2f1   :  { %v3593_v44 = vpop.f32.mrf.mxu0 }
 0x2f2   :  { %v3675_v0 = vmax.f32 %v3674_v49, %v3593_v44 }
 0x2f3   :  { %v7167_v15 = vpop.f32.mrf.mxu0 }
 0x2f6   :  { %v3667_v3 = vpop.f32.mrf.mxu1 }
 0x2f7   :  { %v3676_v17 = vmax.f32 %v3675_v0, %v3667_v3 }
 0x2f8   :  { %v7186_v52 = vpop.f32.mrf.mxu1 }
 0x2f9   :  { %v3677_v61 = vsub.f32 %v9379_v59, %v3676_v17  ;;  %v3681_v26 = vsub.f32 %v3297_v4, %v3676_v17  ;;  %v3687_v60 = vsub.f32 %v3371_v34, %v3676_v17  ;;  %v3693_v31 = vsub.f32 %v3445_v21, %v3676_v17 }
 0x2fa   :  { %v3699_v16 = vsub.f32 %v3519_v54, %v3676_v17  ;;  %v3705_v1 = vsub.f32 %v3593_v44, %v3676_v17  ;;  %v3711_v58 = vsub.f32 %v3667_v3, %v3676_v17 }
 0x2fb   :  { %v3678_v41 = vmul.f32 1.442695, %v3677_v61  ;;  %v3682_v45 = vmul.f32 1.442695, %v3681_v26  ;;  %v3688_v5 = vmul.f32 1.442695, %v3687_v60 }
 0x2fc   :  { %v3694_v50 = vmul.f32 1.442695, %v3693_v31  ;;  %v3700_v20 = vmul.f32 1.442695, %v3699_v16  ;;  %v3706_v29 = vmul.f32 1.442695, %v3705_v1 }
 0x2fd   :  { %7686 = vpow2.f32 %v3678_v41  ;;  %v3712_v51 = vmul.f32 1.442695, %v3711_v58 }
 0x2fe   :  { %7688 = vpow2.f32 %v3682_v45 }
 0x2ff   :  { %7690 = vpow2.f32 %v3688_v5 }
 0x300   :  { %7692 = vpow2.f32 %v3694_v50 }
 0x301   :  { %7694 = vpow2.f32 %v3700_v20 }
 0x302   :  { %7696 = vpow2.f32 %v3706_v29 }
 0x303   :  { %v3789_v7 = vpop.f32.mrf.mxu0  ;;  %7698 = vpow2.f32 %v3712_v51 }
 0x305   :  { %v7205_v59 = vpop.f32.mrf.mxu0 }
 0x308   :  { %v3863_v4 = vpop.f32.mrf.mxu1 }
 0x309   :  { %v4237_v17 = vmax.f32 %v3789_v7, %v3863_v4 }
 0x30a   :  { %v7687_v40 = vpop.eup %7686  ;;  %v7224_v34 = vpop.f32.mrf.mxu1 }
 0x30b   :  { %v7689_v62 = vpop.eup %7688  ;;  %v3680_v11 = vmul.f32 %v7687_v40, %v8292_v19 }
 0x30c   :  { %v3684_v35 = vadd.f32 %v7689_v62, %v7687_v40  ;;  %v3685_v48 = vmul.f32 %v7689_v62, %v8302_v24  ;;  %v7691_v56 = vpop.eup %7690 }
 0x30d   :  { %v7693_v22 = vpop.eup %7692  ;;  %v3691_v27 = vmul.f32 %v7691_v56, %v8315_v30 }
 0x30e   :  { %v3690_v63 = vadd.f32 %v7691_v56, %v3684_v35  ;;  %v3686_v9 = vadd.f32 %v3685_v48, %v3680_v11  ;;  %v7695_v47 = vpop.eup %7694  ;;  %v3697_v12 = vmul.f32 %v7693_v22, %v8331_v32 }
 0x30f   :  { %v7697_v55 = vpop.eup %7696  ;;  %v3703_v13 = vmul.f32 %v7695_v47, %v8341_v38 }
 0x310   :  { %v3696_v23 = vadd.f32 %v7693_v22, %v3690_v63  ;;  %v3692_v25 = vadd.f32 %v3691_v27, %v3686_v9  ;;  %v7699_v21 = vpop.eup %7698  ;;  %v3709_v37 = vmul.f32 %v7697_v55, %v8351_v8 }
 0x311   :  { %v3715_v28 = vmul.f32 %v7699_v21, %v8364_v14 }
 0x312   :  { %v3702_v36 = vadd.f32 %v7695_v47, %v3696_v23  ;;  %v3698_v54 = vadd.f32 %v3697_v12, %v3692_v25 }
 0x314   :  { %v3708_v42 = vadd.f32 %v7697_v55, %v3702_v36  ;;  %v3704_v39 = vadd.f32 %v3703_v13, %v3698_v54 }
 0x315   :  { %v3937_v2 = vpop.f32.mrf.mxu0 }
 0x316   :  { %v3714_v33 = vadd.f32 %v7699_v21, %v3708_v42  ;;  %v3710_v43 = vadd.f32 %v3709_v37, %v3704_v39  ;;  %v4238_v52 = vmax.f32 %v4237_v17, %v3937_v2 }
 0x317   :  { %v7243_v10 = vpop.f32.mrf.mxu0 }
 0x318   :  { %7700 = vrcp.f32 %v3714_v33  ;;  %v3716_v53 = vadd.f32 %v3715_v28, %v3710_v43 }
 0x31a   :  { %v4011_v57 = vpop.f32.mrf.mxu1 }
 0x31b   :  { %v4239_v61 = vmax.f32 %v4238_v52, %v4011_v57 }
 0x31c   :  { %v7262_v18 = vpop.f32.mrf.mxu1 }
 0x325   :  { %v7701_v46 = vpop.eup %7700 }
 0x326   :  { %v3718_v44 = vmul.f32 %v7701_v46, %v3716_v53 }
 0x327   :  { %v4085_v49 = vpop.f32.mrf.mxu0 }
 0x328   :  { %7352 = vmatmul.mubr.msk.f32.gmra.mxu1 %vm323_vm2, %v3718_v44  ;;  %v4240_v26 = vmax.f32 %v4239_v61, %v4085_v49 }
 0x329   :  { %v7281_v15 = vpop.f32.mrf.mxu0  ;;  %7354 = vmatprep.mubr.msk.f32.mxu1 %vm7809_vm1, %v7808_v6 }
 0x32c   :  { %v4159_v0 = vpop.f32.mrf.mxu1 }
 0x32d   :  { %v4241_v60 = vmax.f32 %v4240_v26, %v4159_v0 }
 0x32e   :  { %v7300_v3 = vpop.f32.mrf.mxu1 }
 0x339   :  { %v4233_v31 = vpop.f32.mrf.mxu0 }
 0x33a   :  { %v4242_v41 = vmax.f32 %v4241_v60, %v4233_v31 }
 0x33b   :  { %v7319_v45 = vpop.f32.mrf.mxu0 }
 0x33c   :  { %v4243_v5 = vsub.f32 %v3789_v7, %v4242_v41  ;;  %v4247_v16 = vsub.f32 %v3863_v4, %v4242_v41  ;;  %v4253_v50 = vsub.f32 %v3937_v2, %v4242_v41  ;;  %v4259_v1 = vsub.f32 %v4011_v57, %v4242_v41 }
 0x33d   :  { %v9403_v20 = vpop.f32.mrf.mxu1  ;;  %v4265_v59 = vsub.f32 %v4085_v49, %v4242_v41  ;;  %v4271_v35 = vsub.f32 %v4159_v0, %v4242_v41  ;;  %v4277_v48 = vsub.f32 %v4233_v31, %v4242_v41 }
 0x33e   :  { %v4244_v58 = vmul.f32 1.442695, %v4243_v5  ;;  %v4248_v29 = vmul.f32 1.442695, %v4247_v16  ;;  %v4254_v51 = vmul.f32 1.442695, %v4253_v50 }
 0x33f   :  { %v7338_v40 = vpop.f32.mrf.mxu1  ;;  %v4406_v34 = vsel %vm323_vm2, %v9403_v20, 0.0  ;;  %v4260_v62 = vmul.f32 1.442695, %v4259_v1  ;;  %v4266_v4 = vmul.f32 1.442695, %v4265_v59  ;;  %v69_v59 = vld [vmem:[%s10077_s4 + $0x30] sm:$0xff] }
 0x340   :  { %7702 = vpow2.f32 %v4244_v58  ;;  %4407 = vadd.xlane.f32.xlu0 %v4406_v34  ;;  %v4272_v63 = vmul.f32 1.442695, %v4271_v35  ;;  %v4278_v9 = vmul.f32 1.442695, %v4277_v48  ;;  %v68_v40 = vld [vmem:[%s10077_s4 + $0x28] sm:$0xff]  ;;  %v67_v34 = vld [vmem:[%s10077_s4 + $0x20] sm:$0xff] }
 0x341   :  { %7704 = vpow2.f32 %v4248_v29  ;;  %v9407_v11 = vpop.f32.mrf.mxu1  ;;  %v65_v35 = vld [vmem:[%s10077_s4 + $0x10] sm:$0xff] }
 0x342   :  { %v4409_v7 = vsel %vm323_vm2, %v9407_v11, 0.0  ;;  %7706 = vpow2.f32 %v4254_v51  ;;  %v70_v51 = vld [vmem:[%s10077_s4 + $0x38] sm:$0xff] }
 0x343   :  { %v7341_v56 = vpop.f32.mrf.mxu1  ;;  %7708 = vpow2.f32 %v4260_v62  ;;  %7358 = vmatpush3.msra.mxu0 %v70_v51  ;;  %v66_v62 = vld [vmem:[%s10077_s4 + $0x18] sm:$0xff] }
 0x344   :  { %4410 = vadd.xlane.f32.xlu0 %v4409_v7  ;;  %7710 = vpow2.f32 %v4266_v4  ;;  %7359 = vmatprep.subr.mxu0 %v7808_v6  ;;  %v64_v7 = vld [vmem:[%s10077_s4 + $0x8] sm:$0xff]  ;;  %v63_v4 = vld [vmem:[%s10077_s4] sm:$0xff] }
 0x345   :  { %v4382_v22 = vpop.f32.mrf.mxu1  ;;  %7712 = vpow2.f32 %v4272_v63  ;;  %7360 = vmatpush3.msra.mxu0 %v69_v59 }
 0x346   :  { %v4412_v23 = vsel %vm323_vm2, %v4382_v22, 0.0  ;;  %7714 = vpow2.f32 %v4278_v9  ;;  %7361 = vmatprep.subr.mxu0 %v7808_v6 }
 0x347   :  { %4413 = vadd.xlane.f32.xlu1 %v4412_v23  ;;  %v7344_v47 = vpop.f32.mrf.mxu1  ;;  %7362 = vmatpush3.msra.mxu0 %v68_v40 }
 0x348   :  { %7363 = vmatprep.subr.mxu0 %v7808_v6 }
 0x349   :  { %7364 = vmatpush3.msra.mxu0 %v67_v34  ;;  %v48_v34 = vld [vmem:[%s10075_s2 + $0x88] sm:$0xff] }
 0x34a   :  { %7365 = vmatprep.subr.mxu0 %v7808_v6 }
 0x34b   :  { %7366 = vmatpush3.msra.mxu0 %v66_v62  ;;  %v47_v62 = vld [vmem:[%s10075_s2 + $0x80] sm:$0xff] }
 0x34c   :  { %7367 = vmatprep.subr.mxu0 %v7808_v6 }
 0x34d   :  { %v7703_v36 = vpop.eup %7702  ;;  %7368 = vmatpush3.msra.mxu0 %v65_v35 }
 0x34e   :  { %v7705_v27 = vpop.eup %7704  ;;  %v4246_v42 = vmul.f32 %v7703_v36, %v8292_v19  ;;  %7369 = vmatprep.subr.mxu0 %v7808_v6 }
 0x34f   :  { %v4250_v55 = vadd.f32 %v7705_v27, %v7703_v36  ;;  %v4251_v25 = vmul.f32 %v7705_v27, %v8302_v24  ;;  %v7707_v21 = vpop.eup %7706  ;;  %7370 = vmatpush3.msra.mxu0 %v64_v7 }
 0x350   :  { %v7709_v33 = vpop.eup %7708  ;;  %v4257_v13 = vmul.f32 %v7707_v21, %v8315_v30  ;;  %7371 = vmatprep.subr.mxu0 %v7808_v6 }
 0x351   :  { %v4256_v2 = vadd.f32 %v7707_v21, %v4250_v55  ;;  %v4252_v10 = vadd.f32 %v4251_v25, %v4246_v42  ;;  %v7711_v54 = vpop.eup %7710  ;;  %v4263_v53 = vmul.f32 %v7709_v33, %v8331_v32  ;;  %7372 = vmatpush3.msra.mxu0 %v63_v4  ;;  %v46_v4 = vld [vmem:[%s10075_s2 + $0x78] sm:$0xff] }
 0x352   :  { %v7713_v18 = vpop.eup %7712  ;;  %v4269_v24 = vmul.f32 %v7711_v54, %v8341_v38 }
 0x353   :  { %v4262_v12 = vadd.f32 %v7709_v33, %v4256_v2  ;;  %v4258_v37 = vadd.f32 %v4257_v13, %v4252_v10  ;;  %v7715_v43 = vpop.eup %7714  ;;  %v4275_v44 = vmul.f32 %v7713_v18, %v8351_v8 }
 0x354   :  { %v4281_v15 = vmul.f32 %v7715_v43, %v8364_v14 }
 0x355   :  { %v4268_v57 = vadd.f32 %v7711_v54, %v4262_v12  ;;  %v4264_v19 = vadd.f32 %v4263_v53, %v4258_v37 }
 0x357   :  { %v4274_v39 = vadd.f32 %v7713_v18, %v4268_v57  ;;  %v4270_v46 = vadd.f32 %v4269_v24, %v4264_v19  ;;  %v9492_v19 = vld [vmem:[%s10078_s5] ss:$0 sm:$0xff] }
 0x359   :  { %v4280_v28 = vadd.f32 %v7715_v43, %v4274_v39  ;;  %v4276_v49 = vadd.f32 %v4275_v44, %v4270_v46  ;;  %v9498_v46 = vld [vmem:[%s10078_s5 + $0x1] ss:$0 sm:$0xff] }
 0x35b   :  { %7716 = vrcp.f32 %v4280_v28  ;;  %v4282_v0 = vadd.f32 %v4281_v15, %v4276_v49  ;;  %v54_v15 = vld [vmem:[%s10075_s2 + $0xb8] sm:$0xff] }
 0x35c   :  { %7395 = vmatpush3.msra.mxu1 %v54_v15  ;;  %v9625_v15 = vld [vmem:[%s10078_s5 + $0x4] ss:$0 sm:$0xff] }
 0x35d   :  { %7396 = vmatprep.subr.mxu1 %v7808_v6 }
 0x368   :  { %v7717_v3 = vpop.eup %7716 }
 0x369   :  { %v4284_v30 = vmul.f32 %v7717_v3, %v4282_v0  ;;  %v53_v0 = vld [vmem:[%s10075_s2 + $0xb0] sm:$0xff]  ;;  %v52_v3 = vld [vmem:[%s10075_s2 + $0xa8] sm:$0xff] }
 0x36a   :  { %v4387_v17 = vpop.f32.mrf.mxu1  ;;  %7397 = vmatpush3.msra.mxu1 %v53_v0 }
 0x36b   :  { %7355 = vmatmul.mubr.msk.f32.gmra.mxu1 %vm323_vm2, %v4284_v30  ;;  %v4415_v52 = vsel %vm323_vm2, %v4387_v17, 0.0  ;;  %7398 = vmatprep.subr.mxu1 %v7808_v6  ;;  %v51_v30 = vld [vmem:[%s10075_s2 + $0xa0] sm:$0xff] }
 0x36c   :  { %4416 = vadd.xlane.f32.xlu1 %v4415_v52  ;;  %v7347_v32 = vpop.f32.mrf.mxu1  ;;  %7426 = vmatprep.mubr.msk.f32.mxu1 %vm7809_vm1, %v7808_v6  ;;  %v49_v52 = vld [vmem:[%s10075_s2 + $0x90] sm:$0xff] }
 0x36d   :  { %7399 = vmatpush3.msra.mxu1 %v52_v3 }
 0x36e   :  { %7400 = vmatprep.subr.mxu1 %v7808_v6 }
 0x36f   :  { %7401 = vmatpush3.msra.mxu1 %v51_v30 }
 0x370   :  { %7402 = vmatprep.subr.mxu1 %v7808_v6 }
 0x3ad   :  { %v4392_v38 = vpop.f32.mrf.mxu1 }
 0x3ae   :  { %v4418_v61 = vsel %vm323_vm2, %v4392_v38, 0.0 }
 0x3af   :  { %4419 = vadd.xlane.f32.xlu0 %v4418_v61  ;;  %v7350_v8 = vpop.f32.mrf.mxu1 }
 0x3c9   :  { %v4408_v26 = vpop.xlane.xlu0 %4407 }
 0x3ca   :  { %v4428_v14 = vmul.f32 0.015625, %v4408_v26 }
 0x3cc   :  { %v9425_v31 = vsub.f32 %v9403_v20, %v4428_v14 }
 0x3cd   :  { %v4411_v48 = vpop.xlane.xlu0 %4410 }
 0x3ce   :  { %v4442_v50 = vmul.f32 %v9425_v31, %v9425_v31  ;;  %v4429_v56 = vmul.f32 0.015625, %v4411_v48 }
 0x3d0   :  { %v4414_v60 = vpop.xlane.xlu1 %4413  ;;  %v4449_v58 = vsel %vm323_vm2, %v4442_v50, 0.0 }
 0x3d1   :  { %v4430_v41 = vmul.f32 0.015625, %v4414_v60 }
 0x3d3   :  { %v9427_v5 = vsub.f32 %v4382_v22, %v4430_v41  ;;  %v9468_v22 = vsub.f32 %v9407_v11, %v4429_v56 }
 0x3d5   :  { %v4444_v29 = vmul.f32 %v9427_v5, %v9427_v5  ;;  %v4443_v27 = vmul.f32 %v9468_v22, %v9468_v22 }
 0x3d7   :  { %v4455_v20 = vsel %vm323_vm2, %v4444_v29, 0.0  ;;  %v4452_v42 = vsel %vm323_vm2, %v4443_v27, 0.0 }
 0x3e8   :  { %v4397_v45 = vpop.f32.mrf.mxu1 }
 0x3e9   :  { %v4421_v16 = vsel %vm323_vm2, %v4397_v45, 0.0 }
 0x3ea   :  { %4422 = vadd.xlane.f32.xlu1 %v4421_v16  ;;  %v7353_v1 = vpop.f32.mrf.mxu1 }
 0x3ee   :  { %4450 = vadd.xlane.f32.xlu1 %v4449_v58 }
 0x3f2   :  { %4456 = vadd.xlane.f32.xlu1 %v4455_v20 }
 0x3f5   :  { %v4417_v63 = vpop.xlane.xlu1 %4416 }
 0x3f6   :  { %v4431_v23 = vmul.f32 0.015625, %v4417_v63  ;;  %v45_v63 = vld [vmem:[%s10075_s2 + $0x70] sm:$0xff] }
 0x3f8   :  { %v9470_v47 = vsub.f32 %v4387_v17, %v4431_v23  ;;  %v50_v17 = vld [vmem:[%s10075_s2 + $0x98] sm:$0xff] }
 0x3f9   :  { %7403 = vmatpush3.msra.mxu1 %v50_v17  ;;  %v9633_v17 = vld [vmem:[%s10075_s2 + $0xf8] sm:$0xff] }
 0x3fa   :  { %v4445_v25 = vmul.f32 %v9470_v47, %v9470_v47  ;;  %7404 = vmatprep.subr.mxu1 %v7808_v6 }
 0x3fb   :  { %7405 = vmatpush3.msra.mxu1 %v49_v52  ;;  %v9640_v52 = vld [vmem:[%s10075_s2 + $0xf0] sm:$0xff] }
 0x3fc   :  { %v4458_v11 = vsel %vm323_vm2, %v4445_v25, 0.0  ;;  %7406 = vmatprep.subr.mxu1 %v7808_v6 }
 0x3fd   :  { %7407 = vmatpush3.msra.mxu1 %v48_v34 }
 0x3fe   :  { %7408 = vmatprep.subr.mxu1 %v7808_v6 }
 0x3ff   :  { %7409 = vmatpush3.msra.mxu1 %v47_v62 }
 0x400   :  { %7410 = vmatprep.subr.mxu1 %v7808_v6 }
 0x401   :  { %7411 = vmatpush3.msra.mxu1 %v46_v4 }
 0x402   :  { %7412 = vmatprep.subr.mxu1 %v7808_v6 }
 0x403   :  { %7413 = vmatpush3.msra.mxu1 %v45_v63 }
 0x404   :  { %7414 = vmatprep.subr.mxu1 %v7808_v6 }
 0x42b   :  { %v4402_v9 = vpop.f32.mrf.mxu1 }
 0x42c   :  { %v4424_v36 = vsel %vm323_vm2, %v4402_v9, 0.0 }
 0x42d   :  { %4425 = vadd.xlane.f32.xlu0 %v4424_v36  ;;  %v7356_v55 = vpop.f32.mrf.mxu1 }
 0x42e   :  { %v42_v55 = vld [vmem:[%s10075_s2 + $0x58] sm:$0xff] }
 0x431   :  { %4453 = vadd.xlane.f32.xlu0 %v4452_v42  ;;  %v41_v42 = vld [vmem:[%s10075_s2 + $0x50] sm:$0xff] }
 0x435   :  { %4459 = vadd.xlane.f32.xlu0 %v4458_v11  ;;  %v40_v11 = vld [vmem:[%s10075_s2 + $0x48] sm:$0xff] }
 0x438   :  { %v4420_v21 = vpop.xlane.xlu0 %4419 }
 0x439   :  { %v4432_v2 = vmul.f32 0.015625, %v4420_v21 }
 0x43b   :  { %v9479_v33 = vsub.f32 %v4392_v38, %v4432_v2 }
 0x43d   :  { %v4446_v12 = vmul.f32 %v9479_v33, %v9479_v33 }
 0x43f   :  { %v4461_v10 = vsel %vm323_vm2, %v4446_v12, 0.0  ;;  %v39_v12 = vld [vmem:[%s10075_s2 + $0x40] sm:$0xff] }
 0x440   :  { %4462 = vadd.xlane.f32.xlu1 %v4461_v10 }
 0x473   :  { %v4423_v54 = vpop.xlane.xlu1 %4422 }
 0x474   :  { %v4433_v57 = vmul.f32 0.015625, %v4423_v54 }
 0x476   :  { %v9484_v13 = vsub.f32 %v4397_v45, %v4433_v57 }
 0x477   :  { %v4451_v18 = vpop.xlane.xlu1 %4450 }
 0x478   :  { %v4470_v39 = vmul.f32 0.015625, %v4451_v18  ;;  %v4447_v37 = vmul.f32 %v9484_v13, %v9484_v13 }
 0x47a   :  { %v4477_v43 = vadd.f32 1e-05, %v4470_v39  ;;  %v4464_v28 = vsel %vm323_vm2, %v4447_v37, 0.0 }
 0x47b   :  { %4465 = vadd.xlane.f32.xlu0 %v4464_v28  ;;  %v4457_v32 = vpop.xlane.xlu1 %4456 }
 0x47c   :  { %7718 = vrsqrt.f32 %v4477_v43  ;;  %v4472_v38 = vmul.f32 0.015625, %v4457_v32 }
 0x47e   :  { %v4479_v26 = vadd.f32 1e-05, %v4472_v38 }
 0x480   :  { %7720 = vrsqrt.f32 %v4479_v26  ;;  %v9656_v26 = vld [vmem:[%s10075_s2 + $0xe0] sm:$0xff] }
 0x489   :  { %v7719_v53 = vpop.eup %7718 }
 0x48a   :  { %v4491_v24 = vmul.f32 %v7719_v53, %v9425_v31 }
 0x48c   :  { %v4502_v44 = vmul.f32 %v9492_v19, %v4491_v24 }
 0x48d   :  { %v7721_v20 = vpop.eup %7720 }
 0x48e   :  { %v9502_v49 = vadd.f32 %v9498_v46, %v4502_v44  ;;  %v4493_v7 = vmul.f32 %v7721_v20, %v9427_v5 }
 0x490   :  { %7374 = vmatmul.mubr.msk.f32.vlgmr.msra.gmra.mxu0 %vm323_vm2, %v9502_v49 }
 0x491   :  { %7376 = vmatprep.mubr.msk.f32.mxu0 %vm7809_vm1, %v7808_v6 }
 0x4b6   :  { %v4426_v61 = vpop.xlane.xlu0 %4425 }
 0x4b7   :  { %v4434_v8 = vmul.f32 0.015625, %v4426_v61  ;;  %v9648_v61 = vld [vmem:[%s10075_s2 + $0xe8] sm:$0xff] }
 0x4b9   :  { %v9532_v14 = vsub.f32 %v4402_v9, %v4434_v8  ;;  %v44_v9 = vld [vmem:[%s10075_s2 + $0x68] sm:$0xff] }
 0x4ba   :  { %v4454_v60 = vpop.xlane.xlu0 %4453  ;;  %7415 = vmatpush3.msra.mxu1 %v44_v9 }
 0x4bb   :  { %v4471_v31 = vmul.f32 0.015625, %v4454_v60  ;;  %v4448_v41 = vmul.f32 %v9532_v14, %v9532_v14  ;;  %7416 = vmatprep.subr.mxu1 %v7808_v6  ;;  %v9666_v60 = vld [vmem:[%s10075_s2 + $0xd8] sm:$0xff] }
 0x4bd   :  { %v4478_v45 = vadd.f32 1e-05, %v4471_v31  ;;  %v4467_v16 = vsel %vm323_vm2, %v4448_v41, 0.0  ;;  %v9690_v31 = vld [vmem:[%s10075_s2 + $0xc0] sm:$0xff] }
 0x4be   :  { %4468 = vadd.xlane.f32.xlu1 %v4467_v16  ;;  %v4460_v50 = vpop.xlane.xlu0 %4459 }
 0x4bf   :  { %7722 = vrsqrt.f32 %v4478_v45  ;;  %v4473_v1 = vmul.f32 0.015625, %v4460_v50 }
 0x4c1   :  { %v4480_v58 = vadd.f32 1e-05, %v4473_v1 }
 0x4c3   :  { %7724 = vrsqrt.f32 %v4480_v58 }
 0x4c9   :  { %v4463_v29 = vpop.xlane.xlu1 %4462 }
 0x4ca   :  { %v4474_v51 = vmul.f32 0.015625, %v4463_v29 }
 0x4cc   :  { %v7723_v59 = vpop.eup %7722  ;;  %v4481_v40 = vadd.f32 1e-05, %v4474_v51 }
 0x4cd   :  { %v4492_v35 = vmul.f32 %v7723_v59, %v9468_v22  ;;  %v4504_v22 = vmul.f32 %v9492_v19, %v4493_v7 }
 0x4ce   :  { %7726 = vrsqrt.f32 %v4481_v40 }
 0x4cf   :  { %v4503_v48 = vmul.f32 %v9492_v19, %v4492_v35  ;;  %v9572_v36 = vadd.f32 %v9498_v46, %v4504_v22 }
 0x4d0   :  { %v7725_v56 = vpop.eup %7724 }
 0x4d1   :  { %v9555_v5 = vadd.f32 %v9498_v46, %v4503_v48  ;;  %v4494_v23 = vmul.f32 %v7725_v56, %v9470_v47  ;;  %v43_v47 = vld [vmem:[%s10075_s2 + $0x60] sm:$0xff] }
 0x4d2   :  { %7417 = vmatpush3.msra.mxu1 %v43_v47 }
 0x4d3   :  { %7377 = vmatmul.mubr.msk.f32.gmra.mxu0 %vm323_vm2, %v9555_v5  ;;  %v4505_v27 = vmul.f32 %v9492_v19, %v4494_v23  ;;  %7418 = vmatprep.subr.mxu1 %v7808_v6  ;;  %v9712_v23 = vld [vmem:[%s10078_s5 + $0x5] ss:$0 sm:$0xff] }
 0x4d4   :  { %7379 = vmatprep.mubr.msk.f32.mxu0 %vm7809_vm1, %v7808_v6  ;;  %7419 = vmatpush3.msra.mxu1 %v42_v55 }
 0x4d5   :  { %v9588_v25 = vadd.f32 %v9498_v46, %v4505_v27  ;;  %7420 = vmatprep.subr.mxu1 %v7808_v6 }
 0x4d6   :  { %7421 = vmatpush3.msra.mxu1 %v41_v42 }
 0x4d7   :  { %7380 = vmatmul.mubr.msk.f32.gmra.mxu0 %vm323_vm2, %v9572_v36  ;;  %7422 = vmatprep.subr.mxu1 %v7808_v6 }
 0x4d8   :  { %7382 = vmatprep.mubr.msk.f32.mxu0 %vm7809_vm1, %v7808_v6  ;;  %7423 = vmatpush3.msra.mxu1 %v40_v11 }
 0x4d9   :  { %7424 = vmatprep.subr.mxu1 %v7808_v6 }
 0x4da   :  { %7425 = vmatpush3.msra.mxu1 %v39_v12 }
 0x4db   :  { %v7727_v21 = vpop.eup %7726  ;;  %7383 = vmatmul.mubr.msk.f32.gmra.mxu0 %vm323_vm2, %v9588_v25  ;;  %7447 = vmatprep.subr.mxu1 %v7808_v6 }
 0x4dc   :  { %7385 = vmatprep.mubr.msk.f32.mxu0 %vm7809_vm1, %v7808_v6  ;;  %v4495_v2 = vmul.f32 %v7727_v21, %v9479_v33 }
 0x4de   :  { %v4506_v10 = vmul.f32 %v9492_v19, %v4495_v2 }
 0x4e0   :  { %v9606_v54 = vadd.f32 %v9498_v46, %v4506_v10 }
 0x4e2   :  { %7386 = vmatmul.mubr.msk.f32.gmra.mxu0 %vm323_vm2, %v9606_v54 }
 0x4e3   :  { %7388 = vmatprep.mubr.msk.f32.mxu0 %vm7809_vm1, %v7808_v6 }
 0x504   :  { %v4466_v33 = vpop.xlane.xlu0 %4465 }
 0x505   :  { %v4475_v57 = vmul.f32 0.015625, %v4466_v33 }
 0x507   :  { %v4482_v18 = vadd.f32 1e-05, %v4475_v57 }
 0x509   :  { %7728 = vrsqrt.f32 %v4482_v18 }
 0x516   :  { %v7729_v39 = vpop.eup %7728 }
 0x517   :  { %v4496_v37 = vmul.f32 %v7729_v39, %v9484_v13 }
 0x519   :  { %v4507_v43 = vmul.f32 %v9492_v19, %v4496_v37 }
 0x51b   :  { %v9616_v28 = vadd.f32 %v9498_v46, %v4507_v43 }
 0x51d   :  { %7389 = vmatmul.mubr.msk.f32.gmra.mxu0 %vm323_vm2, %v9616_v28 }
 0x51e   :  { %7391 = vmatprep.mubr.msk.f32.mxu0 %vm7809_vm1, %v7808_v6 }
 0x547   :  { %v4469_v53 = vpop.xlane.xlu1 %4468 }
 0x548   :  { %v4476_v24 = vmul.f32 0.015625, %v4469_v53 }
 0x54a   :  { %v4483_v44 = vadd.f32 1e-05, %v4476_v24 }
 0x54c   :  { %7730 = vrsqrt.f32 %v4483_v44 }
 0x550   :  { %v4611_v13 = vpop.f32.mrf.mxu0 }
 0x551   :  { %v4612_v0 = vadd.f32 %v9625_v15, %v4611_v13 }
 0x552   :  { %v7375_v3 = vpop.f32.mrf.mxu0 }
 0x553   :  { %v4645_v30 = vmax.f32 %v4612_v0, 0.0 }
 0x555   :  { %7427 = vmatmul.mubr.f32.vlgmr.msra.gmra.mxu1 %v4645_v30 }
 0x556   :  { %7429 = vmatprep.mubr.msk.f32.mxu1 %vm7809_vm1, %v7808_v6  ;;  %7448 = vmatpush3.msra.mxu1 %v9633_v17 }
 0x557   :  { %7449 = vmatprep.subr.mxu1 %v7808_v6 }
 0x558   :  { %7450 = vmatpush3.msra.mxu1 %v9640_v52 }
 0x559   :  { %v7731_v32 = vpop.eup %7730  ;;  %7451 = vmatprep.subr.mxu1 %v7808_v6 }
 0x55a   :  { %v4497_v38 = vmul.f32 %v7731_v32, %v9532_v14  ;;  %7452 = vmatpush3.msra.mxu1 %v9648_v61 }
 0x55b   :  { %7453 = vmatprep.subr.mxu1 %v7808_v6 }
 0x55c   :  { %v4508_v8 = vmul.f32 %v9492_v19, %v4497_v38  ;;  %7454 = vmatpush3.msra.mxu1 %v9656_v26  ;;  %v9675_v19 = vld [vmem:[%s10075_s2 + $0xd0] sm:$0xff] }
 0x55d   :  { %7455 = vmatprep.subr.mxu1 %v7808_v6 }
 0x55e   :  { %v9661_v14 = vadd.f32 %v9498_v46, %v4508_v8  ;;  %7456 = vmatpush3.msra.mxu1 %v9666_v60  ;;  %v9683_v46 = vld [vmem:[%s10075_s2 + $0xc8] sm:$0xff] }
 0x55f   :  { %7457 = vmatprep.subr.mxu1 %v7808_v6 }
 0x560   :  { %7392 = vmatmul.mubr.msk.f32.gmra.mxu0 %vm323_vm2, %v9661_v14  ;;  %7458 = vmatpush3.msra.mxu1 %v9675_v19 }
 0x561   :  { %4984 = vmatprep.mubr.f32.mxu0 %v7808_v6  ;;  %7459 = vmatprep.subr.mxu1 %v7808_v6 }
 0x562   :  { %7460 = vmatpush3.msra.mxu1 %v9683_v46 }
 0x563   :  { %7461 = vmatprep.subr.mxu1 %v7808_v6 }
 0x564   :  { %7462 = vmatpush3.msra.mxu1 %v9690_v31 }
 0x565   :  { %7485 = vmatprep.subr.mxu1 %v7808_v6 }
 0x593   :  { %v4616_v41 = vpop.f32.mrf.mxu0 }
 0x594   :  { %v4617_v45 = vadd.f32 %v9625_v15, %v4616_v41 }
 0x595   :  { %v7378_v16 = vpop.f32.mrf.mxu0 }
 0x596   :  { %v4646_v50 = vmax.f32 %v4617_v45, 0.0 }
 0x597   :  { %v4621_v1 = vpop.f32.mrf.mxu0 }
 0x598   :  { %v4622_v58 = vadd.f32 %v9625_v15, %v4621_v1  ;;  %7430 = vmatmul.mubr.f32.gmra.mxu1 %v4646_v50 }
 0x599   :  { %v7381_v29 = vpop.f32.mrf.mxu0  ;;  %7432 = vmatprep.mubr.msk.f32.mxu1 %vm7809_vm1, %v7808_v6 }
 0x59a   :  { %v4647_v20 = vmax.f32 %v4622_v58, 0.0 }
 0x59b   :  { %v4626_v51 = vpop.f32.mrf.mxu0 }
 0x59c   :  { %v4627_v59 = vadd.f32 %v9625_v15, %v4626_v51  ;;  %7433 = vmatmul.mubr.f32.gmra.mxu1 %v4647_v20 }
 0x59d   :  { %v7384_v40 = vpop.f32.mrf.mxu0  ;;  %7435 = vmatprep.mubr.msk.f32.mxu1 %vm7809_vm1, %v7808_v6 }
 0x59e   :  { %v4648_v34 = vmax.f32 %v4627_v59, 0.0 }
 0x5a0   :  { %7436 = vmatmul.mubr.f32.gmra.mxu1 %v4648_v34 }
 0x5a1   :  { %7438 = vmatprep.mubr.msk.f32.mxu1 %vm7809_vm1, %v7808_v6 }
 0x5a2   :  { %v4631_v62 = vpop.f32.mrf.mxu0 }
 0x5a3   :  { %v4632_v35 = vadd.f32 %v9625_v15, %v4631_v62 }
 0x5a4   :  { %v7387_v7 = vpop.f32.mrf.mxu0 }
 0x5a5   :  { %v4649_v4 = vmax.f32 %v4632_v35, 0.0  ;;  %v4898_v35 = vld [vmem:[%s10076_s3 + $0x78] sm:$0xff]  ;;  %v4896_v7 = vld [vmem:[%s10076_s3 + $0x68] sm:$0xff] }
 0x5a6   :  { %4936 = vmatprep.subr.mxu0 %v4898_v35 }
 0x5a7   :  { %7439 = vmatmul.mubr.f32.gmra.mxu1 %v4649_v4  ;;  %v4895_v4 = vld [vmem:[%s10076_s3 + $0x60] sm:$0xff] }
 0x5a8   :  { %7441 = vmatprep.mubr.msk.f32.mxu1 %vm7809_vm1, %v7808_v6 }
 0x5dd   :  { %v4636_v48 = vpop.f32.mrf.mxu0 }
 0x5de   :  { %v4637_v56 = vadd.f32 %v9625_v15, %v4636_v48  ;;  %v4894_v48 = vld [vmem:[%s10076_s3 + $0x58] sm:$0xff] }
 0x5df   :  { %v7390_v63 = vpop.f32.mrf.mxu0 }
 0x5e0   :  { %v4650_v22 = vmax.f32 %v4637_v56, 0.0  ;;  %v4893_v56 = vld [vmem:[%s10076_s3 + $0x50] sm:$0xff]  ;;  %v4892_v63 = vld [vmem:[%s10076_s3 + $0x48] sm:$0xff] }
 0x5e2   :  { %7442 = vmatmul.mubr.f32.gmra.mxu1 %v4650_v22  ;;  %v4891_v22 = vld [vmem:[%s10076_s3 + $0x40] sm:$0xff] }
 0x5e3   :  { %7444 = vmatprep.mubr.msk.f32.mxu1 %vm7809_vm1, %v7808_v6 }
 0x615   :  { %v4722_v9 = vpop.f32.mrf.mxu1 }
 0x616   :  { %v4723_v47 = vadd.f32 %v9712_v23, %v4722_v9  ;;  %v4890_v9 = vld [vmem:[%s10076_s3 + $0x38] sm:$0xff] }
 0x617   :  { %v7428_v27 = vpop.f32.mrf.mxu1 }
 0x618   :  { %v4756_v55 = vmax.f32 %v4723_v47, 0.0  ;;  %v4889_v47 = vld [vmem:[%s10076_s3 + $0x30] sm:$0xff]  ;;  %v4888_v27 = vld [vmem:[%s10076_s3 + $0x28] sm:$0xff] }
 0x61a   :  { %v4763_v42 = vadd.f32 %v4756_v55, %v9502_v49  ;;  %v4887_v55 = vld [vmem:[%s10076_s3 + $0x20] sm:$0xff] }
 0x61c   :  { %v4770_v11 = vsel %vm323_vm2, %v4763_v42, 0.0 }
 0x61d   :  { %4771 = vadd.xlane.f32.xlu0 %v4770_v11  ;;  %v4885_v11 = vld [vmem:[%s10076_s3 + $0x10] sm:$0xff] }
 0x620   :  { %v4641_v21 = vpop.f32.mrf.mxu0 }
 0x621   :  { %v4642_v2 = vadd.f32 %v9625_v15, %v4641_v21  ;;  %v4884_v21 = vld [vmem:[%s10076_s3 + $0x8] sm:$0xff] }
 0x622   :  { %v7393_v12 = vpop.f32.mrf.mxu0 }
 0x623   :  { %v4651_v10 = vmax.f32 %v4642_v2, 0.0  ;;  %v4883_v2 = vld [vmem:[%s10076_s3] sm:$0xff] }
 0x625   :  { %7445 = vmatmul.mubr.f32.gmra.mxu1 %v4651_v10 }
 0x626   :  { %7463 = vmatprep.mubr.msk.f32.mxu1 %vm7809_vm1, %v7808_v6 }
 0x658   :  { %v4727_v33 = vpop.f32.mrf.mxu1 }
 0x659   :  { %v4728_v57 = vadd.f32 %v9712_v23, %v4727_v33 }
 0x65a   :  { %v7431_v18 = vpop.f32.mrf.mxu1 }
 0x65b   :  { %v4757_v39 = vmax.f32 %v4728_v57, 0.0 }
 0x65c   :  { %v4732_v37 = vpop.f32.mrf.mxu1 }
 0x65d   :  { %v4733_v49 = vadd.f32 %v9712_v23, %v4732_v37  ;;  %v9723_v43 = vadd.f32 %v4757_v39, %v9555_v5 }
 0x65e   :  { %v7434_v53 = vpop.f32.mrf.mxu1 }
 0x65f   :  { %v4758_v24 = vmax.f32 %v4733_v49, 0.0  ;;  %v4773_v44 = vsel %vm323_vm2, %v9723_v43, 0.0 }
 0x660   :  { %4774 = vadd.xlane.f32.xlu1 %v4773_v44  ;;  %v4737_v15 = vpop.f32.mrf.mxu1 }
 0x661   :  { %v4738_v13 = vadd.f32 %v9712_v23, %v4737_v15  ;;  %v9729_v0 = vadd.f32 %v4758_v24, %v9572_v36 }
 0x662   :  { %v7437_v3 = vpop.f32.mrf.mxu1 }
 0x663   :  { %v4759_v30 = vmax.f32 %v4738_v13, 0.0  ;;  %v4776_v32 = vsel %vm323_vm2, %v9729_v0, 0.0 }
 0x664   :  { %4777 = vadd.xlane.f32.xlu0 %v4776_v32 }
 0x665   :  { %v9734_v5 = vadd.f32 %v4759_v30, %v9588_v25 }
 0x667   :  { %v4779_v38 = vsel %vm323_vm2, %v9734_v5, 0.0  ;;  %v4742_v8 = vpop.f32.mrf.mxu1 }
 0x668   :  { %4780 = vadd.xlane.f32.xlu1 %v4779_v38  ;;  %v4743_v41 = vadd.f32 %v9712_v23, %v4742_v8 }
 0x669   :  { %v7440_v45 = vpop.f32.mrf.mxu1 }
 0x66a   :  { %v4760_v16 = vmax.f32 %v4743_v41, 0.0 }
 0x66c   :  { %v9740_v36 = vadd.f32 %v4760_v16, %v9606_v54 }
 0x66e   :  { %v4782_v50 = vsel %vm323_vm2, %v9740_v36, 0.0 }
 0x66f   :  { %4783 = vadd.xlane.f32.xlu0 %v4782_v50 }
 0x6a2   :  { %v4747_v1 = vpop.f32.mrf.mxu1 }
 0x6a3   :  { %v4748_v25 = vadd.f32 %v9712_v23, %v4747_v1 }
 0x6a4   :  { %v7443_v58 = vpop.f32.mrf.mxu1 }
 0x6a5   :  { %v4761_v29 = vmax.f32 %v4748_v25, 0.0 }
 0x6a6   :  { %v4772_v20 = vpop.xlane.xlu0 %4771 }
 0x6a7   :  { %v4791_v51 = vmul.f32 0.015625, %v4772_v20  ;;  %v9746_v59 = vadd.f32 %v4761_v29, %v9616_v28  ;;  %v4897_v28 = vld [vmem:[%s10076_s3 + $0x70] sm:$0xff] }
 0x6a8   :  { %4937 = vmatpush1.msra.mxu0 %v4897_v28 }
 0x6a9   :  { %v9748_v40 = vsub.f32 %v4763_v42, %v4791_v51  ;;  %v4785_v54 = vsel %vm323_vm2, %v9746_v59, 0.0  ;;  %4938 = vmatprep.subr.mxu0 %v4896_v7  ;;  %v4886_v42 = vld [vmem:[%s10076_s3 + $0x18] sm:$0xff] }
 0x6aa   :  { %4786 = vadd.xlane.f32.xlu1 %v4785_v54  ;;  %4939 = vmatpush1.msra.mxu0 %v4895_v4 }
 0x6ab   :  { %v4805_v34 = vmul.f32 %v9748_v40, %v9748_v40  ;;  %4940 = vmatprep.subr.mxu0 %v4894_v48 }
 0x6ac   :  { %4941 = vmatpush1.msra.mxu0 %v4893_v56 }
 0x6ad   :  { %v4812_v62 = vsel %vm323_vm2, %v4805_v34, 0.0  ;;  %4942 = vmatprep.subr.mxu0 %v4892_v63  ;;  %v9840_v34 = vld [vmem:[%s10078_s5 + $0x2] ss:$0 sm:$0xff] }
 0x6ae   :  { %4813 = vadd.xlane.f32.xlu1 %v4812_v62  ;;  %4943 = vmatpush1.msra.mxu0 %v4891_v22 }
 0x6af   :  { %4944 = vmatprep.subr.mxu0 %v4890_v9 }
 0x6b0   :  { %4945 = vmatpush1.msra.mxu0 %v4889_v47 }
 0x6b1   :  { %4946 = vmatprep.subr.mxu0 %v4888_v27 }
 0x6b2   :  { %4947 = vmatpush1.msra.mxu0 %v4887_v55 }
 0x6b3   :  { %4948 = vmatprep.subr.mxu0 %v4886_v42 }
 0x6b4   :  { %4949 = vmatpush1.msra.mxu0 %v4885_v11 }
 0x6b5   :  { %4950 = vmatprep.subr.mxu0 %v4884_v21 }
 0x6b6   :  { %4951 = vmatpush1.msra.mxu0 %v4883_v2 }
 0x6b7   :  { %7466 = vmatprep.subr.mxu0 %v7808_v6 }
 0x6e5   :  { %v4752_v12 = vpop.f32.mrf.mxu1 }
 0x6e6   :  { %v4753_v10 = vadd.f32 %v9712_v23, %v4752_v12 }
 0x6e7   :  { %v7446_v33 = vpop.f32.mrf.mxu1 }
 0x6e8   :  { %v4762_v57 = vmax.f32 %v4753_v10, 0.0 }
 0x6e9   :  { %v4775_v18 = vpop.xlane.xlu1 %4774 }
 0x6ea   :  { %v4792_v39 = vmul.f32 0.015625, %v4775_v18  ;;  %v4769_v37 = vadd.f32 %v4762_v57, %v9661_v14 }
 0x6ec   :  { %v9807_v49 = vsub.f32 %v9723_v43, %v4792_v39  ;;  %v4788_v53 = vsel %vm323_vm2, %v4769_v37, 0.0 }
 0x6ed   :  { %v4778_v24 = vpop.xlane.xlu0 %4777  ;;  %4789 = vadd.xlane.f32.xlu0 %v4788_v53 }
 0x6ee   :  { %v4793_v44 = vmul.f32 0.015625, %v4778_v24  ;;  %v4806_v15 = vmul.f32 %v9807_v49, %v9807_v49 }
 0x6f0   :  { %v9813_v13 = vsub.f32 %v9729_v0, %v4793_v44  ;;  %v4815_v23 = vsel %vm323_vm2, %v4806_v15, 0.0 }
 0x6f1   :  { %v4781_v3 = vpop.xlane.xlu1 %4780  ;;  %4816 = vadd.xlane.f32.xlu0 %v4815_v23 }
 0x6f2   :  { %v4794_v30 = vmul.f32 0.015625, %v4781_v3  ;;  %v4807_v14 = vmul.f32 %v9813_v13, %v9813_v13 }
 0x6f4   :  { %v9819_v43 = vsub.f32 %v9734_v5, %v4794_v30  ;;  %v4818_v32 = vsel %vm323_vm2, %v4807_v14, 0.0 }
 0x6f5   :  { %4819 = vadd.xlane.f32.xlu1 %v4818_v32 }
 0x6f6   :  { %v4808_v38 = vmul.f32 %v9819_v43, %v9819_v43 }
 0x6f8   :  { %v4821_v0 = vsel %vm323_vm2, %v4808_v38, 0.0  ;;  %v4784_v8 = vpop.xlane.xlu0 %4783 }
 0x6f9   :  { %4822 = vadd.xlane.f32.xlu0 %v4821_v0  ;;  %v4795_v41 = vmul.f32 0.015625, %v4784_v8 }
 0x6fb   :  { %v9826_v45 = vsub.f32 %v9740_v36, %v4795_v41 }
 0x6fd   :  { %v4809_v16 = vmul.f32 %v9826_v45, %v9826_v45 }
 0x6ff   :  { %v4824_v5 = vsel %vm323_vm2, %v4809_v16, 0.0 }
 0x700   :  { %4825 = vadd.xlane.f32.xlu1 %v4824_v5 }
 0x733   :  { %v4787_v50 = vpop.xlane.xlu1 %4786 }
 0x734   :  { %v4796_v1 = vmul.f32 0.015625, %v4787_v50 }
 0x736   :  { %v9832_v25 = vsub.f32 %v9746_v59, %v4796_v1  ;;  %v9846_v59 = vld [vmem:[%s10078_s5 + $0x3] ss:$0 sm:$0xff] }
 0x737   :  { %v4814_v58 = vpop.xlane.xlu1 %4813 }
 0x738   :  { %v4833_v29 = vmul.f32 0.015625, %v4814_v58  ;;  %v4810_v20 = vmul.f32 %v9832_v25, %v9832_v25  ;;  %v9901_v58 = vld [vmem:[%s10078_s5 + $0x6] ss:$0 sm:$0xff] }
 0x73a   :  { %v4840_v51 = vadd.f32 1e-05, %v4833_v29  ;;  %v4827_v36 = vsel %vm323_vm2, %v4810_v20, 0.0 }
 0x73b   :  { %4828 = vadd.xlane.f32.xlu0 %v4827_v36 }
 0x73c   :  { %7732 = vrsqrt.f32 %v4840_v51 }
 0x749   :  { %v7733_v54 = vpop.eup %7732 }
 0x74a   :  { %v4854_v62 = vmul.f32 %v7733_v54, %v9748_v40 }
 0x74c   :  { %v4865_v35 = vmul.f32 %v9840_v34, %v4854_v62 }
 0x74e   :  { %v4876_v28 = vadd.f32 %v9846_v59, %v4865_v35 }
 0x750   :  { %5772 = vmatmul.mubr.msk.f32.vlgmr.msra.gmra.mxu0 %vm323_vm2, %v4876_v28 }
 0x751   :  { %4990 = vmatprep.mubr.f32.mxu0 %v7808_v6  ;;  %7467 = vmatpush3.msra.mxu0 %v9633_v17 }
 0x752   :  { %7468 = vmatprep.subr.mxu0 %v7808_v6 }
 0x753   :  { %7469 = vmatpush3.msra.mxu0 %v9640_v52 }
 0x754   :  { %7470 = vmatprep.subr.mxu0 %v7808_v6 }
 0x755   :  { %7471 = vmatpush3.msra.mxu0 %v9648_v61 }
 0x756   :  { %7472 = vmatprep.subr.mxu0 %v7808_v6 }
 0x757   :  { %7473 = vmatpush3.msra.mxu0 %v9656_v26 }
 0x758   :  { %7474 = vmatprep.subr.mxu0 %v7808_v6 }
 0x759   :  { %7475 = vmatpush3.msra.mxu0 %v9666_v60 }
 0x75a   :  { %7476 = vmatprep.subr.mxu0 %v7808_v6 }
 0x75b   :  { %7477 = vmatpush3.msra.mxu0 %v9675_v19 }
 0x75c   :  { %7478 = vmatprep.subr.mxu0 %v7808_v6 }
 0x75d   :  { %7479 = vmatpush3.msra.mxu0 %v9683_v46 }
 0x75e   :  { %7480 = vmatprep.subr.mxu0 %v7808_v6 }
 0x75f   :  { %7481 = vmatpush3.msra.mxu0 %v9690_v31 }
 0x760   :  { %7504 = vmatprep.subr.mxu0 %v7808_v6 }
 0x776   :  { %v4790_v40 = vpop.xlane.xlu0 %4789 }
 0x777   :  { %v4797_v7 = vmul.f32 0.015625, %v4790_v40 }
 0x779   :  { %v9868_v4 = vsub.f32 %v4769_v37, %v4797_v7 }
 0x77a   :  { %v4817_v48 = vpop.xlane.xlu0 %4816 }
 0x77b   :  { %v4834_v56 = vmul.f32 0.015625, %v4817_v48  ;;  %v4811_v63 = vmul.f32 %v9868_v4, %v9868_v4 }
 0x77d   :  { %v4841_v22 = vadd.f32 1e-05, %v4834_v56  ;;  %v4830_v9 = vsel %vm323_vm2, %v4811_v63, 0.0 }
 0x77e   :  { %v4820_v47 = vpop.xlane.xlu1 %4819  ;;  %4831 = vadd.xlane.f32.xlu1 %v4830_v9 }
 0x77f   :  { %7734 = vrsqrt.f32 %v4841_v22  ;;  %v4835_v27 = vmul.f32 0.015625, %v4820_v47 }
 0x781   :  { %v4842_v55 = vadd.f32 1e-05, %v4835_v27 }
 0x782   :  { %v4823_v42 = vpop.xlane.xlu0 %4822 }
 0x783   :  { %7736 = vrsqrt.f32 %v4842_v55  ;;  %v4836_v11 = vmul.f32 0.015625, %v4823_v42 }
 0x785   :  { %v4843_v21 = vadd.f32 1e-05, %v4836_v11 }
 0x787   :  { %7738 = vrsqrt.f32 %v4843_v21 }
 0x789   :  { %v4826_v2 = vpop.xlane.xlu1 %4825 }
 0x78a   :  { %v4837_v12 = vmul.f32 0.015625, %v4826_v2 }
 0x78c   :  { %v7735_v10 = vpop.eup %7734  ;;  %v4844_v33 = vadd.f32 1e-05, %v4837_v12 }
 0x78d   :  { %v4855_v57 = vmul.f32 %v7735_v10, %v9807_v49  ;;  %v78_v10 = vld [vmem:[%s10077_s4 + $0x78] sm:$0xff] }
 0x78e   :  { %7740 = vrsqrt.f32 %v4844_v33  ;;  %v77_v33 = vld [vmem:[%s10077_s4 + $0x70] sm:$0xff] }
 0x78f   :  { %v4866_v18 = vmul.f32 %v9840_v34, %v4855_v57  ;;  %v76_v57 = vld [vmem:[%s10077_s4 + $0x68] sm:$0xff] }
 0x790   :  { %v7737_v39 = vpop.eup %7736 }
 0x791   :  { %v4877_v37 = vadd.f32 %v9846_v59, %v4866_v18  ;;  %v4856_v53 = vmul.f32 %v7737_v39, %v9813_v13  ;;  %v75_v18 = vld [vmem:[%s10077_s4 + $0x60] sm:$0xff]  ;;  %v74_v39 = vld [vmem:[%s10077_s4 + $0x58] sm:$0xff] }
 0x793   :  { %5773 = vmatmul.mubr.msk.f32.gmra.mxu0 %vm323_vm2, %v4877_v37  ;;  %v4867_v24 = vmul.f32 %v9840_v34, %v4856_v53  ;;  %v73_v37 = vld [vmem:[%s10077_s4 + $0x50] sm:$0xff]  ;;  %v72_v53 = vld [vmem:[%s10077_s4 + $0x48] sm:$0xff] }
 0x794   :  { %v7739_v44 = vpop.eup %7738  ;;  %4996 = vmatprep.mubr.f32.mxu0 %v7808_v6 }
 0x795   :  { %v4878_v15 = vadd.f32 %v9846_v59, %v4867_v24  ;;  %v4857_v23 = vmul.f32 %v7739_v44, %v9819_v43  ;;  %v71_v24 = vld [vmem:[%s10077_s4 + $0x40] sm:$0xff] }
 0x797   :  { %5774 = vmatmul.mubr.msk.f32.gmra.mxu0 %vm323_vm2, %v4878_v15  ;;  %v4868_v49 = vmul.f32 %v9840_v34, %v4857_v23 }
 0x798   :  { %5002 = vmatprep.mubr.f32.mxu0 %v7808_v6 }
 0x799   :  { %v4879_v3 = vadd.f32 %v9846_v59, %v4868_v49 }
 0x79b   :  { %v7741_v13 = vpop.eup %7740  ;;  %5775 = vmatmul.mubr.msk.f32.gmra.mxu0 %vm323_vm2, %v4879_v3 }
 0x79c   :  { %5008 = vmatprep.mubr.f32.mxu0 %v7808_v6  ;;  %v4858_v30 = vmul.f32 %v7741_v13, %v9826_v45 }
 0x79e   :  { %v4869_v14 = vmul.f32 %v9840_v34, %v4858_v30 }
 0x7a0   :  { %v4880_v32 = vadd.f32 %v9846_v59, %v4869_v14 }
 0x7a2   :  { %5776 = vmatmul.mubr.msk.f32.gmra.mxu0 %vm323_vm2, %v4880_v32 }
 0x7a3   :  { %5014 = vmatprep.mubr.f32.mxu0 %v7808_v6 }
 0x7c4   :  { %v4829_v43 = vpop.xlane.xlu0 %4828 }
 0x7c5   :  { %v4838_v38 = vmul.f32 0.015625, %v4829_v43 }
 0x7c7   :  { %v4845_v0 = vadd.f32 1e-05, %v4838_v38 }
 0x7c9   :  { %7742 = vrsqrt.f32 %v4845_v0 }
 0x7d6   :  { %v7743_v8 = vpop.eup %7742 }
 0x7d7   :  { %v4859_v41 = vmul.f32 %v7743_v8, %v9832_v25 }
 0x7d9   :  { %v4870_v16 = vmul.f32 %v9840_v34, %v4859_v41 }
 0x7db   :  { %v4881_v5 = vadd.f32 %v9846_v59, %v4870_v16 }
 0x7dd   :  { %5777 = vmatmul.mubr.msk.f32.gmra.mxu0 %vm323_vm2, %v4881_v5 }
 0x7de   :  { %5020 = vmatprep.mubr.f32.mxu0 %v7808_v6 }
 0x807   :  { %v4832_v45 = vpop.xlane.xlu1 %4831 }
 0x808   :  { %v4839_v50 = vmul.f32 0.015625, %v4832_v45 }
 0x80a   :  { %v4846_v1 = vadd.f32 1e-05, %v4839_v50 }
 0x80c   :  { %7744 = vrsqrt.f32 %v4846_v1 }
 0x810   :  { %v4986_v29 = vpop.f32.mrf.mxu0 }
 0x811   :  { %v5031_v25 = vmul.f32 %v9901_v58, %v4986_v29 }
 0x813   :  { %7464 = vmatmul.mubr.msk.f32.vlgmr.msra.gmra.mxu1 %vm323_vm2, %v5031_v25 }
 0x814   :  { %7486 = vmatpush3.msra.mxu1 %v9633_v17  ;;  %7501 = vmatprep.mubr.msk.f32.mxu1 %vm7809_vm1, %v7808_v6 }
 0x815   :  { %7487 = vmatprep.subr.mxu1 %v7808_v6 }
 0x816   :  { %7488 = vmatpush3.msra.mxu1 %v9640_v52 }
 0x817   :  { %7489 = vmatprep.subr.mxu1 %v7808_v6 }
 0x818   :  { %7490 = vmatpush3.msra.mxu1 %v9648_v61 }
 0x819   :  { %v7745_v20 = vpop.eup %7744  ;;  %7491 = vmatprep.subr.mxu1 %v7808_v6 }
 0x81a   :  { %v4860_v51 = vmul.f32 %v7745_v20, %v9868_v4  ;;  %7492 = vmatpush3.msra.mxu1 %v9656_v26 }
 0x81b   :  { %7493 = vmatprep.subr.mxu1 %v7808_v6 }
 0x81c   :  { %v4871_v36 = vmul.f32 %v9840_v34, %v4860_v51  ;;  %7494 = vmatpush3.msra.mxu1 %v9666_v60  ;;  %v9929_v34 = vpop.f32.mrf.mxu0 }
 0x81d   :  { %7495 = vmatprep.subr.mxu1 %v7808_v6 }
 0x81e   :  { %v4882_v54 = vadd.f32 %v9846_v59, %v4871_v36  ;;  %7496 = vmatpush3.msra.mxu1 %v9675_v19 }
 0x81f   :  { %7497 = vmatprep.subr.mxu1 %v7808_v6 }
 0x820   :  { %5778 = vmatmul.mubr.msk.f32.gmra.mxu0 %vm323_vm2, %v4882_v54  ;;  %7498 = vmatpush3.msra.mxu1 %v9683_v46 }
 0x821   :  { %7482 = vmatprep.mubr.msk.f32.mxu0 %vm7809_vm1, %v7808_v6  ;;  %7499 = vmatprep.subr.mxu1 %v7808_v6 }
 0x822   :  { %7500 = vmatpush3.msra.mxu1 %v9690_v31 }
 0x823   :  { %7523 = vmatprep.subr.mxu1 %v7808_v6 }
 0x853   :  { %v4992_v62 = vpop.f32.mrf.mxu0 }
 0x854   :  { %v5105_v59 = vmul.f32 %v9901_v58, %v4992_v62 }
 0x855   :  { %v9932_v35 = vpop.f32.mrf.mxu0 }
 0x856   :  { %7483 = vmatmul.mubr.msk.f32.vlgmr.msra.gmra.mxu0 %vm323_vm2, %v5105_v59 }
 0x857   :  { %7505 = vmatpush3.msra.mxu0 %v9633_v17  ;;  %v4998_v28 = vpop.f32.mrf.mxu0  ;;  %7520 = vmatprep.mubr.msk.f32.mxu0 %vm7809_vm1, %v7808_v6 }
 0x858   :  { %v5179_v40 = vmul.f32 %v9901_v58, %v4998_v28  ;;  %7506 = vmatprep.subr.mxu0 %v7808_v6 }
 0x859   :  { %7507 = vmatpush3.msra.mxu0 %v9640_v52  ;;  %v9941_v7 = vpop.f32.mrf.mxu0 }
 0x85a   :  { %7508 = vmatprep.subr.mxu0 %v7808_v6  ;;  %7502 = vmatmul.mubr.msk.f32.vlgmr.msra.gmra.mxu1 %vm323_vm2, %v5179_v40 }
 0x85b   :  { %7509 = vmatpush3.msra.mxu0 %v9648_v61  ;;  %7524 = vmatpush3.msra.mxu1 %v9633_v17  ;;  %v5004_v4 = vpop.f32.mrf.mxu0 }
 0x85c   :  { %7510 = vmatprep.subr.mxu0 %v7808_v6  ;;  %7525 = vmatprep.subr.mxu1 %v7808_v6  ;;  %v5253_v63 = vmul.f32 %v9901_v58, %v5004_v4 }
 0x85d   :  { %7511 = vmatpush3.msra.mxu0 %v9656_v26  ;;  %7526 = vmatpush3.msra.mxu1 %v9640_v52  ;;  %v9957_v48 = vpop.f32.mrf.mxu0 }
 0x85e   :  { %7512 = vmatprep.subr.mxu0 %v7808_v6  ;;  %7527 = vmatprep.subr.mxu1 %v7808_v6 }
 0x85f   :  { %7513 = vmatpush3.msra.mxu0 %v9666_v60  ;;  %7528 = vmatpush3.msra.mxu1 %v9648_v61 }
 0x860   :  { %7514 = vmatprep.subr.mxu0 %v7808_v6  ;;  %7529 = vmatprep.subr.mxu1 %v7808_v6 }
 0x861   :  { %7515 = vmatpush3.msra.mxu0 %v9675_v19  ;;  %7530 = vmatpush3.msra.mxu1 %v9656_v26 }
 0x862   :  { %7516 = vmatprep.subr.mxu0 %v7808_v6  ;;  %7531 = vmatprep.subr.mxu1 %v7808_v6  ;;  %v5010_v56 = vpop.f32.mrf.mxu0 }
 0x863   :  { %7517 = vmatpush3.msra.mxu0 %v9683_v46  ;;  %7532 = vmatpush3.msra.mxu1 %v9666_v60  ;;  %v5327_v22 = vmul.f32 %v9901_v58, %v5010_v56 }
 0x864   :  { %7518 = vmatprep.subr.mxu0 %v7808_v6  ;;  %7533 = vmatprep.subr.mxu1 %v7808_v6 }
 0x865   :  { %7519 = vmatpush3.msra.mxu0 %v9690_v31  ;;  %7534 = vmatpush3.msra.mxu1 %v9675_v19 }
 0x866   :  { %7521 = vmatmul.mubr.msk.f32.vlgmr.msra.gmra.mxu0 %vm323_vm2, %v5253_v63  ;;  %7535 = vmatprep.subr.mxu1 %v7808_v6 }
 0x867   :  { %7536 = vmatpush3.msra.mxu1 %v9683_v46  ;;  %7539 = vmatprep.mubr.msk.f32.mxu1 %vm7809_vm1, %v7808_v6 }
 0x868   :  { %7537 = vmatprep.subr.mxu1 %v7808_v6  ;;  %7542 = vmatprep.subr.mxu0 %v7808_v6 }
 0x869   :  { %7538 = vmatpush3.msra.mxu1 %v9690_v31  ;;  %7543 = vmatpush3.msra.mxu0 %v9633_v17 }
 0x86a   :  { %7540 = vmatmul.mubr.msk.f32.vlgmr.msra.gmra.mxu1 %vm323_vm2, %v5327_v22  ;;  %7544 = vmatprep.subr.mxu0 %v7808_v6 }
 0x86b   :  { %7545 = vmatpush3.msra.mxu0 %v9640_v52  ;;  %7558 = vmatprep.mubr.msk.f32.mxu0 %vm7809_vm1, %v7808_v6 }
 0x86c   :  { %7546 = vmatprep.subr.mxu0 %v7808_v6  ;;  %7561 = vmatprep.subr.mxu1 %v7808_v6 }
 0x86d   :  { %7547 = vmatpush3.msra.mxu0 %v9648_v61  ;;  %7562 = vmatpush3.msra.mxu1 %v9633_v17  ;;  %v10016_v17 = vpop.f32.mrf.mxu0 }
 0x86e   :  { %7548 = vmatprep.subr.mxu0 %v7808_v6  ;;  %7563 = vmatprep.subr.mxu1 %v7808_v6 }
 0x86f   :  { %7549 = vmatpush3.msra.mxu0 %v9656_v26  ;;  %7564 = vmatpush3.msra.mxu1 %v9640_v52 }
 0x870   :  { %7550 = vmatprep.subr.mxu0 %v7808_v6  ;;  %7565 = vmatprep.subr.mxu1 %v7808_v6 }
 0x871   :  { %7551 = vmatpush3.msra.mxu0 %v9666_v60  ;;  %7566 = vmatpush3.msra.mxu1 %v9648_v61 }
 0x872   :  { %7552 = vmatprep.subr.mxu0 %v7808_v6  ;;  %7567 = vmatprep.subr.mxu1 %v7808_v6 }
 0x873   :  { %7553 = vmatpush3.msra.mxu0 %v9675_v19  ;;  %7568 = vmatpush3.msra.mxu1 %v9656_v26 }
 0x874   :  { %7554 = vmatprep.subr.mxu0 %v7808_v6  ;;  %7569 = vmatprep.subr.mxu1 %v7808_v6 }
 0x875   :  { %7555 = vmatpush3.msra.mxu0 %v9683_v46  ;;  %7570 = vmatpush3.msra.mxu1 %v9666_v60 }
 0x876   :  { %7556 = vmatprep.subr.mxu0 %v7808_v6  ;;  %7571 = vmatprep.subr.mxu1 %v7808_v6 }
 0x877   :  { %7557 = vmatpush3.msra.mxu0 %v9690_v31  ;;  %7572 = vmatpush3.msra.mxu1 %v9675_v19 }
 0x878   :  { %7573 = vmatprep.subr.mxu1 %v7808_v6  ;;  %7577 = vmatprep.mubr.msk.f32.mxu1 %vm7809_vm1, %v7808_v6 }
 0x879   :  { %7574 = vmatpush3.msra.mxu1 %v9683_v46  ;;  %7580 = vmatprep.subr.mxu0 %v7808_v6 }
 0x87a   :  { %7575 = vmatprep.subr.mxu1 %v7808_v6 }
 0x87b   :  { %7576 = vmatpush3.msra.mxu1 %v9690_v31 }
 0x89d   :  { %v5016_v52 = vpop.f32.mrf.mxu0 }
 0x89e   :  { %v5401_v61 = vmul.f32 %v9901_v58, %v5016_v52 }
 0x89f   :  { %v10022_v19 = vpop.f32.mrf.mxu0 }
 0x8a0   :  { %7559 = vmatmul.mubr.msk.f32.vlgmr.msra.gmra.mxu0 %vm323_vm2, %v5401_v61 }
 0x8a1   :  { %7596 = vmatprep.mubr.msk.f32.mxu0 %vm7809_vm1, %v7808_v6  ;;  %7581 = vmatpush3.msra.mxu0 %v78_v10  ;;  %v5787_v10 = vld [vmem:[%s10078_s5 + $0x7] ss:$0 sm:$0xff] }
 0x8a2   :  { %7582 = vmatprep.subr.mxu0 %v7808_v6 }
 0x8a3   :  { %7583 = vmatpush3.msra.mxu0 %v77_v33 }
 0x8a4   :  { %7584 = vmatprep.subr.mxu0 %v7808_v6 }
 0x8a5   :  { %7585 = vmatpush3.msra.mxu0 %v76_v57 }
 0x8a6   :  { %7586 = vmatprep.subr.mxu0 %v7808_v6 }
 0x8a7   :  { %7587 = vmatpush3.msra.mxu0 %v75_v18 }
 0x8a8   :  { %7588 = vmatprep.subr.mxu0 %v7808_v6 }
 0x8a9   :  { %7589 = vmatpush3.msra.mxu0 %v74_v39 }
 0x8aa   :  { %7590 = vmatprep.subr.mxu0 %v7808_v6 }
 0x8ab   :  { %7591 = vmatpush3.msra.mxu0 %v73_v37 }
 0x8ac   :  { %7592 = vmatprep.subr.mxu0 %v7808_v6 }
 0x8ad   :  { %7593 = vmatpush3.msra.mxu0 %v72_v53 }
 0x8ae   :  { %7594 = vmatprep.subr.mxu0 %v7808_v6 }
 0x8af   :  { %7595 = vmatpush3.msra.mxu0 %v71_v24 }
 0x8d3   :  { %v5101_v26 = vpop.f32.mrf.mxu1 }
 0x8d5   :  { %v7465_v60 = vpop.f32.mrf.mxu1 }
 0x8e0   :  { %v5022_v46 = vpop.f32.mrf.mxu0 }
 0x8e1   :  { %v5475_v9 = vmul.f32 %v9901_v58, %v5022_v46 }
 0x8e2   :  { %v10026_v31 = vpop.f32.mrf.mxu0 }
 0x8e3   :  { %7578 = vmatmul.mubr.msk.f32.vlgmr.msra.gmra.mxu1 %vm323_vm2, %v5475_v9 }
 0x916   :  { %v5175_v47 = vpop.f32.mrf.mxu0 }
 0x917   :  { %v5549_v23 = vmax.f32 %v5101_v26, %v5175_v47 }
 0x918   :  { %v7484_v27 = vpop.f32.mrf.mxu0 }
 0x91a   :  { %v5249_v55 = vpop.f32.mrf.mxu1 }
 0x91b   :  { %v5550_v49 = vmax.f32 %v5549_v23, %v5249_v55 }
 0x91c   :  { %v7503_v42 = vpop.f32.mrf.mxu1 }
 0x926   :  { %v5323_v11 = vpop.f32.mrf.mxu0 }
 0x927   :  { %v5551_v3 = vmax.f32 %v5550_v49, %v5323_v11 }
 0x928   :  { %v7522_v21 = vpop.f32.mrf.mxu0 }
 0x92a   :  { %v5397_v2 = vpop.f32.mrf.mxu1 }
 0x92b   :  { %v5552_v13 = vmax.f32 %v5551_v3, %v5397_v2 }
 0x92c   :  { %v7541_v12 = vpop.f32.mrf.mxu1 }
 0x960   :  { %v5471_v44 = vpop.f32.mrf.mxu0 }
 0x961   :  { %v5553_v30 = vmax.f32 %v5552_v13, %v5471_v44 }
 0x962   :  { %v7560_v15 = vpop.f32.mrf.mxu0 }
 0x9a3   :  { %v5545_v14 = vpop.f32.mrf.mxu1 }
 0x9a4   :  { %v5554_v32 = vmax.f32 %v5553_v30, %v5545_v14 }
 0x9a5   :  { %v7579_v43 = vpop.f32.mrf.mxu1 }
 0x9a6   :  { %v5555_v38 = vsub.f32 %v5101_v26, %v5554_v32  ;;  %v5559_v0 = vsub.f32 %v5175_v47, %v5554_v32  ;;  %v5565_v8 = vsub.f32 %v5249_v55, %v5554_v32  ;;  %v5571_v41 = vsub.f32 %v5323_v11, %v5554_v32 }
 0x9a7   :  { %v5577_v50 = vsub.f32 %v5397_v2, %v5554_v32  ;;  %v5583_v1 = vsub.f32 %v5471_v44, %v5554_v32  ;;  %v5589_v29 = vsub.f32 %v5545_v14, %v5554_v32 }
 0x9a8   :  { %v5556_v16 = vmul.f32 1.442695, %v5555_v38  ;;  %v5560_v5 = vmul.f32 1.442695, %v5559_v0  ;;  %v5566_v45 = vmul.f32 1.442695, %v5565_v8 }
 0x9a9   :  { %v5572_v6 = vmul.f32 1.442695, %v5571_v41  ;;  %v5578_v58 = vmul.f32 1.442695, %v5577_v50  ;;  %v5584_v25 = vmul.f32 1.442695, %v5583_v1 }
 0x9aa   :  { %7746 = vpow2.f32 %v5556_v16  ;;  %v5590_v20 = vmul.f32 1.442695, %v5589_v29 }
 0x9ab   :  { %7748 = vpow2.f32 %v5560_v5 }
 0x9ac   :  { %7750 = vpow2.f32 %v5566_v45 }
 0x9ad   :  { %7752 = vpow2.f32 %v5572_v6 }
 0x9ae   :  { %7754 = vpow2.f32 %v5578_v58 }
 0x9af   :  { %7756 = vpow2.f32 %v5584_v25 }
 0x9b0   :  { %7758 = vpow2.f32 %v5590_v20 }
 0x9b7   :  { %v7747_v51 = vpop.eup %7746 }
 0x9b8   :  { %v7749_v36 = vpop.eup %7748  ;;  %v5558_v62 = vmul.f32 %v7747_v51, %v9929_v34 }
 0x9b9   :  { %v5562_v54 = vadd.f32 %v7749_v36, %v7747_v51  ;;  %v5563_v59 = vmul.f32 %v7749_v36, %v9932_v35  ;;  %v7751_v28 = vpop.eup %7750 }
 0x9ba   :  { %v7753_v4 = vpop.eup %7752  ;;  %v5569_v61 = vmul.f32 %v7751_v28, %v9941_v7 }
 0x9bb   :  { %v5568_v40 = vadd.f32 %v7751_v28, %v5562_v54  ;;  %v5564_v63 = vadd.f32 %v5563_v59, %v5558_v62  ;;  %v7755_v22 = vpop.eup %7754  ;;  %v5575_v27 = vmul.f32 %v7753_v4, %v9957_v48 }
 0x9bc   :  { %v7757_v26 = vpop.eup %7756  ;;  %v5581_v35 = vmul.f32 %v7755_v22, %v10016_v17 }
 0x9bd   :  { %v5574_v56 = vadd.f32 %v7753_v4, %v5568_v40  ;;  %v5570_v46 = vadd.f32 %v5569_v61, %v5564_v63  ;;  %v7759_v9 = vpop.eup %7758  ;;  %v5587_v42 = vmul.f32 %v7757_v26, %v10022_v19 }
 0x9be   :  { %v5593_v21 = vmul.f32 %v7759_v9, %v10026_v31 }
 0x9bf   :  { %v5580_v52 = vadd.f32 %v7755_v22, %v5574_v56  ;;  %v5576_v34 = vadd.f32 %v5575_v27, %v5570_v46 }
 0x9c1   :  { %v5586_v60 = vadd.f32 %v7757_v26, %v5580_v52  ;;  %v5582_v55 = vadd.f32 %v5581_v35, %v5576_v34 }
 0x9c3   :  { %v5592_v47 = vadd.f32 %v7759_v9, %v5586_v60  ;;  %v5588_v11 = vadd.f32 %v5587_v42, %v5582_v55 }
 0x9c5   :  { %7760 = vrcp.f32 %v5592_v47  ;;  %v5594_v2 = vadd.f32 %v5593_v21, %v5588_v11 }
 0x9d2   :  { %v7761_v12 = vpop.eup %7760 }
 0x9d3   :  { %v5596_v7 = vmul.f32 %v7761_v12, %v5594_v2 }
 0x9d5   :  { %7597 = vmatmul.mubr.msk.f32.vlgmr.msra.gmra.mxu0 %vm323_vm2, %v5596_v7 }
 0xa95   :  { %v5670_v48 = vpop.f32.mrf.mxu0 }
 0xa96   :  { %v5671_v33 = vadd.f32 %v5787_v10, %v5670_v48 }
 0xa97   :  { %v7598_v17 = vpop.f32.mrf.mxu0 }
 0xa98   :  { %5674 = vst [vmem:[#allocation2] sm:$0xff] %v5671_v33 }
 0xa99   :  { %7797 = shalt.err (!%p7794_p4)
}
 0xa9a   :  { %5684 = dma.vmem_to_hbm [thread:$0]  %s5682_s28, 128, %s10079_s6, [#allocation3]  }
 0xa9b   :  { %7806 = dma.done.wait [#allocation3], 128  }
 0xa9c   :  { %7807 = vsyncadd [#allocation3], 4294967168 }
 0xa9d   :  { %5688 = vsyncpa [#allocation3], 1 }

</bundles_post_ra>
